<compile_context>
chip_gen: v7x
topology: tpu7x:2x2x1
jax: 0.10.0
libtpu: 0.0.40
codegen_flags: <defaults>
</compile_context>

<pallas_src>
import jax
import jax.numpy as jnp
from jax.experimental import pallas as pl
from jax.experimental.pallas import tpu as pltpu

EPS = 1e-5
LANE = 128


def _round_up(x, m):
    return (x + m - 1) // m * m


# --------------------------------------------------------------------------
# Kernel 1: 3x3 conv (pad=1, no bias) + per-image BN partial stats.
# Optionally applies relu(x*scale_in + shift_in) to its input first (this is
# how the previous stage's BatchNorm+ReLU gets fused into this conv).
# --------------------------------------------------------------------------
def _make_conv_stats_kernel(H, W, apply_input_bn_relu):
    def kernel(x_ref, w_ref, sc_ref, sh_ref, raw_ref, stats_ref, xpad_ref):
        # x_ref    : (1, H, W, Cin_p)        activation block (one image), f32
        # w_ref    : (3, 3*Cin_p, Cout_p)    conv weights, bf16 (dy, dx*Cin, Cout)
        # sc_ref   : (1, Cin_p)              input-affine scale (prev BN), f32
        # sh_ref   : (1, Cin_p)              input-affine shift (prev BN), f32
        # raw_ref  : (1, H, W, Cout_p)       raw (pre-BN) conv output, f32
        # stats_ref: (1, 2, Cout_p)          per-image [sum; sum_sq] per channel
        # xpad_ref : (H+2, W+2, Cin_p) f32   VMEM scratch, zero-padded input
        Cin_p = x_ref.shape[-1]
        Cout_p = w_ref.shape[-1]

        x = x_ref[0].astype(jnp.float32)                       # (H, W, Cin_p)
        if apply_input_bn_relu:
            sc = sc_ref[...].reshape(1, 1, Cin_p)
            sh = sh_ref[...].reshape(1, 1, Cin_p)
            x = jnp.maximum(x * sc + sh, 0.0)                  # fused BN+ReLU

        # In-kernel zero padding of the 1-pixel border (no HBM round trip).
        xpad_ref[...] = jnp.zeros_like(xpad_ref)
        xpad_ref[1:H + 1, 1:W + 1, :] = x
        xp = xpad_ref[...]                                     # (H+2, W+2, Cin_p)

        # 3 matmuls, K = 3*Cin_p (dx neighbours concatenated along channels).
        acc = jnp.zeros((H * W, Cout_p), jnp.float32)
        for dy in range(3):
            rows = xp[dy:dy + H]                               # (H, W+2, Cin_p)
            patch = jnp.concatenate(
                [rows[:, 0:W, :], rows[:, 1:W + 1, :], rows[:, 2:W + 2, :]],
                axis=-1)                                       # (H, W, 3*Cin_p)
            patch = patch.reshape(H * W, 3 * Cin_p).astype(jnp.bfloat16)
            acc += jnp.dot(patch, w_ref[dy],
                           preferred_element_type=jnp.float32)

        raw_ref[0] = acc.reshape(H, W, Cout_p)

        s = jnp.sum(acc, axis=0, keepdims=True)                # (1, Cout_p)
        sq = jnp.sum(acc * acc, axis=0, keepdims=True)         # (1, Cout_p)
        stats_ref[0] = jnp.concatenate([s, sq], axis=0)        # (2, Cout_p)

    return kernel


def _conv_stage(x_p, w_bf, scale_in, shift_in, apply_input_bn_relu):
    """One conv stage over channel-padded NHWC input, tiled over the batch."""
    N, H, W, Cin_p = x_p.shape
    Cout_p = w_bf.shape[-1]

    kernel = _make_conv_stats_kernel(H, W, apply_input_bn_relu)

    flops = 2 * 9 * N * H * W * Cin_p * Cout_p
    bytes_accessed = (x_p.size * 4 + w_bf.size * 2
                      + N * H * W * Cout_p * 4 + N * 2 * Cout_p * 4)

    raw, stats = pl.pallas_call(
        kernel,
        out_shape=(
            jax.ShapeDtypeStruct((N, H, W, Cout_p), jnp.float32),
            jax.ShapeDtypeStruct((N, 2, Cout_p), jnp.float32),
        ),
        grid_spec=pltpu.PrefetchScalarGridSpec(
            num_scalar_prefetch=0,
            grid=(N,),
            in_specs=[
                pl.BlockSpec((1, H, W, Cin_p), lambda i: (i, 0, 0, 0)),
                pl.BlockSpec((3, 3 * Cin_p, Cout_p), lambda i: (0, 0, 0)),
                pl.BlockSpec((1, Cin_p), lambda i: (0, 0)),
                pl.BlockSpec((1, Cin_p), lambda i: (0, 0)),
            ],
            out_specs=[
                pl.BlockSpec((1, H, W, Cout_p), lambda i: (i, 0, 0, 0)),
                pl.BlockSpec((1, 2, Cout_p), lambda i: (i, 0, 0)),
            ],
            scratch_shapes=[pltpu.VMEM((H + 2, W + 2, Cin_p), jnp.float32)],
        ),
        compiler_params=pltpu.CompilerParams(
            dimension_semantics=("parallel",),
            vmem_limit_bytes=32 * 1024 * 1024,
        ),
        cost_estimate=pl.CostEstimate(
            flops=flops, transcendentals=0, bytes_accessed=bytes_accessed),
    )(x_p, w_bf, scale_in, shift_in)
    return raw, stats


# --------------------------------------------------------------------------
# Kernel 2: elementwise BN (precomputed scale/shift) + ReLU, lane-dense.
# --------------------------------------------------------------------------
def bn_relu_kernel(x_ref, sc_ref, sh_ref, o_ref):
    C = x_ref.shape[-1]
    sc = sc_ref[...].reshape(1, 1, 1, C)
    sh = sh_ref[...].reshape(1, 1, 1, C)
    o_ref[...] = jnp.maximum(x_ref[...] * sc + sh, 0.0)


def _bn_relu(x_p, scale, shift):
    N, H, W, Cp = x_p.shape
    return pl.pallas_call(
        bn_relu_kernel,
        out_shape=jax.ShapeDtypeStruct((N, H, W, Cp), jnp.float32),
        grid_spec=pltpu.PrefetchScalarGridSpec(
            num_scalar_prefetch=0,
            grid=(N,),
            in_specs=[
                pl.BlockSpec((1, H, W, Cp), lambda i: (i, 0, 0, 0)),
                pl.BlockSpec((1, Cp), lambda i: (0, 0)),
                pl.BlockSpec((1, Cp), lambda i: (0, 0)),
            ],
            out_specs=pl.BlockSpec((1, H, W, Cp), lambda i: (i, 0, 0, 0)),
        ),
        compiler_params=pltpu.CompilerParams(
            dimension_semantics=("parallel",),
            vmem_limit_bytes=32 * 1024 * 1024,
        ),
    )(x_p, scale, shift)


# --------------------------------------------------------------------------
# Glue: finalize training-mode batch statistics -> single per-channel FMA.
# --------------------------------------------------------------------------
def _bn_scale_shift(stats, gamma_p, beta_p, count):
    tot = jnp.sum(stats, axis=0)                       # (2, Cp): [sum, sum_sq]
    mean = tot[0] / count
    var = jnp.maximum(tot[1] / count - mean * mean, 0.0)   # biased (train-mode)
    scale = gamma_p * jax.lax.rsqrt(var + EPS)
    shift = beta_p - mean * scale
    return scale.reshape(1, -1), shift.reshape(1, -1)


def double_conv(x_nchw, params, out_channels):
    """DoubleConv forward. Input/output are NCHW like PyTorch."""
    w1_k, g1_p, b1_p, w2_k, g2_p, b2_p = params
    N, Cin, H, W = x_nchw.shape
    Cin_p = w1_k.shape[1] // 3
    count = N * H * W

    # NCHW -> NHWC, zero-pad channels to the lane width.
    x = jnp.transpose(x_nchw, (0, 2, 3, 1)).astype(jnp.float32)
    x_p = jnp.pad(x, ((0, 0), (0, 0), (0, 0), (0, Cin_p - Cin)))

    w1_bf = w1_k.astype(jnp.bfloat16)
    w2_bf = w2_k.astype(jnp.bfloat16)

    ones = jnp.ones((1, Cin_p), jnp.float32)
    zeros = jnp.zeros((1, Cin_p), jnp.float32)

    # Stage 1: conv1 raw output + per-image channel partials.
    raw1, stats1 = _conv_stage(x_p, w1_bf, ones, zeros, False)
    scale1, shift1 = _bn_scale_shift(stats1, g1_p, b1_p, count)

    # Stage 2: conv2 over relu(bn1(conv1)); BN1+ReLU fused into the input path.
    raw2, stats2 = _conv_stage(raw1, w2_bf, scale1, shift1, True)
    scale2, shift2 = _bn_scale_shift(stats2, g2_p, b2_p, count)

    # Final BN2 + ReLU.
    y_p = _bn_relu(raw2, scale2, shift2)

    y = y_p[..., :out_channels]
    return jnp.transpose(y, (0, 3, 1, 2))              # NHWC -> NCHW


def init_params(key, in_channels, out_channels, mid_channels=None):
    if not mid_channels:
        mid_channels = out_channels
    cin_p = _round_up(in_channels, LANE)
    cmid_p = _round_up(mid_channels, LANE)
    cout_p = _round_up(out_channels, LANE)

    k1, k2, k3, k4, k5, k6 = jax.random.split(key, 6)
    w1 = 0.1 * jax.random.normal(k1, (3, 3, in_channels, mid_channels), jnp.float32)
    w2 = 0.1 * jax.random.normal(k2, (3, 3, mid_channels, out_channels), jnp.float32)

    def pack(w, cin_pad_to, cout_pad_to):
        # (3,3,Cin,Cout) -> zero-pad channels -> fold dx into the contraction:
        # (3, 3*Cin_p, Cout_p), rows ordered dx-major / cin-minor (matches the
        # kernel's dx-neighbour concat order).
        cin, cout = w.shape[2], w.shape[3]
        w = jnp.pad(w, ((0, 0), (0, 0), (0, cin_pad_to - cin), (0, cout_pad_to - cout)))
        return w.reshape(3, 3 * cin_pad_to, cout_pad_to)

    w1_k = pack(w1, cin_p, cmid_p)
    w2_k = pack(w2, cmid_p, cout_p)

    # BN affine params (perturbed so the affine path is exercised).  Padded
    # channels get gamma=1, beta=0 so their outputs stay exactly 0.
    g1 = 1.0 + 0.1 * jax.random.normal(k3, (mid_channels,), jnp.float32)
    b1 = 0.1 * jax.random.normal(k4, (mid_channels,), jnp.float32)
    g2 = 1.0 + 0.1 * jax.random.normal(k5, (out_channels,), jnp.float32)
    b2 = 0.1 * jax.random.normal(k6, (out_channels,), jnp.float32)

    g1_p = jnp.concatenate([g1, jnp.ones((cmid_p - mid_channels,), jnp.float32)])
    b1_p = jnp.concatenate([b1, jnp.zeros((cmid_p - mid_channels,), jnp.float32)])
    g2_p = jnp.concatenate([g2, jnp.ones((cout_p - out_channels,), jnp.float32)])
    b2_p = jnp.concatenate([b2, jnp.zeros((cout_p - out_channels,), jnp.float32)])

    return (w1_k, g1_p, b1_p, w2_k, g2_p, b2_p)


if __name__ == "__main__":
    key = jax.random.PRNGKey(0)
    k_x, k_p = jax.random.split(key)

    N, C_IN, C_OUT, H, W = 2, 4, 8, 16, 16
    x = jax.random.normal(k_x, (N, C_IN, H, W), jnp.float32)   # NCHW, like PyTorch
    params = init_params(k_p, C_IN, C_OUT)

    fwd = jax.jit(lambda xx, pp: double_conv(xx, pp, C_OUT))
    out = jax.block_until_ready(fwd(x, params))

    assert out.shape == (N, C_OUT, H, W), out.shape
    assert bool(jnp.all(out >= 0.0))          # ReLU output is non-negative
    assert bool(jnp.all(jnp.isfinite(out)))
    print("KERNEL_OK")
</pallas_src>

<mosaic_0001>
module attributes {stable_mosaic.version = 11 : i64} {
  func.func @kernel(%arg0: i32, %arg1: memref<1x16x16x128xf32, #tpu.memory_space<vmem>>, %arg2: memref<3x384x128xbf16, #tpu.memory_space<vmem>>, %arg3: memref<1x128xf32, #tpu.memory_space<vmem>>, %arg4: memref<1x128xf32, #tpu.memory_space<vmem>>, %arg5: memref<1x16x16x128xf32, #tpu.memory_space<vmem>>, %arg6: memref<1x2x128xf32, #tpu.memory_space<vmem>>, %arg7: memref<18x18x128xf32, #tpu.memory_space<vmem>>) attributes {dimension_semantics = [#tpu.dimension_semantics<parallel>], iteration_bounds = array<i64: 2>, scalar_prefetch = 0 : i64, scratch_operands = 1 : i64, tpu.core_type = #tpu.core_type<tc>, window_params = [{transform_indices = @transform_0, window_bounds = array<i64: 1, 16, 16, 128>}, {pipeline_mode = #tpu.pipeline_mode<synchronous>, transform_indices = @transform_1, window_bounds = array<i64: 3, 384, 128>}, {pipeline_mode = #tpu.pipeline_mode<synchronous>, transform_indices = @transform_2, window_bounds = array<i64: 1, 128>}, {pipeline_mode = #tpu.pipeline_mode<synchronous>, transform_indices = @transform_3, window_bounds = array<i64: 1, 128>}, {transform_indices = @transform_4, window_bounds = array<i64: 1, 16, 16, 128>}, {transform_indices = @transform_5, window_bounds = array<i64: 1, 2, 128>}]} {
    %c0 = arith.constant 0 : index
    %c0_0 = arith.constant 0 : index
    %c0_1 = arith.constant 0 : index
    %c0_2 = arith.constant 0 : index
    %0 = vector.load %arg1[%c0, %c0_0, %c0_1, %c0_2] : memref<1x16x16x128xf32, #tpu.memory_space<vmem>>, vector<1x16x16x128xf32>
    %1 = vector.shape_cast %0 : vector<1x16x16x128xf32> to vector<16x16x128xf32>
    %c0_3 = arith.constant 0 : index
    %c0_4 = arith.constant 0 : index
    %2 = vector.load %arg3[%c0_3, %c0_4] : memref<1x128xf32, #tpu.memory_space<vmem>>, vector<1x128xf32>
    %3 = vector.shape_cast %2 : vector<1x128xf32> to vector<1x1x128xf32>
    %c0_5 = arith.constant 0 : index
    %c0_6 = arith.constant 0 : index
    %4 = vector.load %arg4[%c0_5, %c0_6] : memref<1x128xf32, #tpu.memory_space<vmem>>, vector<1x128xf32>
    %5 = vector.shape_cast %4 : vector<1x128xf32> to vector<1x1x128xf32>
    %6 = vector.broadcast %3 : vector<1x1x128xf32> to vector<16x16x128xf32>
    %7 = arith.mulf %1, %6 : vector<16x16x128xf32>
    %8 = vector.broadcast %5 : vector<1x1x128xf32> to vector<16x16x128xf32>
    %9 = arith.addf %7, %8 : vector<16x16x128xf32>
    %cst = arith.constant 0.000000e+00 : f32
    %10 = vector.broadcast %cst : f32 to vector<16x16x128xf32>
    %11 = arith.maximumf %9, %10 : vector<16x16x128xf32>
    %cst_7 = arith.constant 0.000000e+00 : f32
    %12 = vector.broadcast %cst_7 : f32 to vector<18x18x128xf32>
    %c0_8 = arith.constant 0 : index
    %c0_9 = arith.constant 0 : index
    %c0_10 = arith.constant 0 : index
    %13 = vector.load %arg7[%c0_8, %c0_9, %c0_10] : memref<18x18x128xf32, #tpu.memory_space<vmem>>, vector<18x18x128xf32>
    tpu.vector_store %arg7[%c0_8, %c0_9, %c0_10], %12 {strides = array<i32>} : memref<18x18x128xf32, #tpu.memory_space<vmem>>, vector<18x18x128xf32>,
    %c1 = arith.constant 1 : index
    %c1_11 = arith.constant 1 : index
    %c0_12 = arith.constant 0 : index
    %14 = vector.load %arg7[%c1, %c1_11, %c0_12] : memref<18x18x128xf32, #tpu.memory_space<vmem>>, vector<16x16x128xf32>
    tpu.vector_store %arg7[%c1, %c1_11, %c0_12], %11 {strides = array<i32>} : memref<18x18x128xf32, #tpu.memory_space<vmem>>, vector<16x16x128xf32>,
    %c0_13 = arith.constant 0 : index
    %c0_14 = arith.constant 0 : index
    %c0_15 = arith.constant 0 : index
    %15 = vector.load %arg7[%c0_13, %c0_14, %c0_15] : memref<18x18x128xf32, #tpu.memory_space<vmem>>, vector<18x18x128xf32>
    %cst_16 = arith.constant 0.000000e+00 : f32
    %16 = vector.broadcast %cst_16 : f32 to vector<256x128xf32>
    %17 = vector.extract_strided_slice %15 {offsets = [0, 0, 0], sizes = [16, 18, 128], strides = [1, 1, 1]} : vector<18x18x128xf32> to vector<16x18x128xf32>
    %18 = vector.extract_strided_slice %17 {offsets = [0, 0, 0], sizes = [16, 16, 128], strides = [1, 1, 1]} : vector<16x18x128xf32> to vector<16x16x128xf32>
    %19 = vector.extract_strided_slice %17 {offsets = [0, 1, 0], sizes = [16, 16, 128], strides = [1, 1, 1]} : vector<16x18x128xf32> to vector<16x16x128xf32>
    %20 = vector.extract_strided_slice %17 {offsets = [0, 2, 0], sizes = [16, 16, 128], strides = [1, 1, 1]} : vector<16x18x128xf32> to vector<16x16x128xf32>
    %21 = tpu.concatenate %18, %19, %20 in 2 : vector<16x16x128xf32>, vector<16x16x128xf32>, vector<16x16x128xf32> -> vector<16x16x384xf32>
    %22 = vector.shape_cast %21 : vector<16x16x384xf32> to vector<256x384xf32>
    %23 = arith.truncf %22 : vector<256x384xf32> to vector<256x384xbf16>
    %c0_17 = arith.constant 0 : index
    %c0_18 = arith.constant 0 : index
    %c0_19 = arith.constant 0 : index
    %24 = vector.load %arg2[%c0_17, %c0_18, %c0_19] : memref<3x384x128xbf16, #tpu.memory_space<vmem>>, vector<1x384x128xbf16>
    %25 = vector.shape_cast %24 : vector<1x384x128xbf16> to vector<384x128xbf16>
    %cst_20 = arith.constant dense<0.000000e+00> : vector<256x128xf32>
    %26 = tpu.matmul %23, %25, %cst_20 {dimension_numbers = #tpu.dot_dimension_numbers<[1], [0], [0], [1], [0, 0, 1, 1], [], []>} : vector<256x384xbf16>, vector<384x128xbf16>, vector<256x128xf32> -> vector<256x128xf32>
    %27 = arith.addf %16, %26 : vector<256x128xf32>
    %28 = vector.extract_strided_slice %15 {offsets = [1, 0, 0], sizes = [16, 18, 128], strides = [1, 1, 1]} : vector<18x18x128xf32> to vector<16x18x128xf32>
    %29 = vector.extract_strided_slice %28 {offsets = [0, 0, 0], sizes = [16, 16, 128], strides = [1, 1, 1]} : vector<16x18x128xf32> to vector<16x16x128xf32>
    %30 = vector.extract_strided_slice %28 {offsets = [0, 1, 0], sizes = [16, 16, 128], strides = [1, 1, 1]} : vector<16x18x128xf32> to vector<16x16x128xf32>
    %31 = vector.extract_strided_slice %28 {offsets = [0, 2, 0], sizes = [16, 16, 128], strides = [1, 1, 1]} : vector<16x18x128xf32> to vector<16x16x128xf32>
    %32 = tpu.concatenate %29, %30, %31 in 2 : vector<16x16x128xf32>, vector<16x16x128xf32>, vector<16x16x128xf32> -> vector<16x16x384xf32>
    %33 = vector.shape_cast %32 : vector<16x16x384xf32> to vector<256x384xf32>
    %34 = arith.truncf %33 : vector<256x384xf32> to vector<256x384xbf16>
    %c1_21 = arith.constant 1 : index
    %c0_22 = arith.constant 0 : index
    %c0_23 = arith.constant 0 : index
    %35 = vector.load %arg2[%c1_21, %c0_22, %c0_23] : memref<3x384x128xbf16, #tpu.memory_space<vmem>>, vector<1x384x128xbf16>
    %36 = vector.shape_cast %35 : vector<1x384x128xbf16> to vector<384x128xbf16>
    %cst_24 = arith.constant dense<0.000000e+00> : vector<256x128xf32>
    %37 = tpu.matmul %34, %36, %cst_24 {dimension_numbers = #tpu.dot_dimension_numbers<[1], [0], [0], [1], [0, 0, 1, 1], [], []>} : vector<256x384xbf16>, vector<384x128xbf16>, vector<256x128xf32> -> vector<256x128xf32>
    %38 = arith.addf %27, %37 : vector<256x128xf32>
    %39 = vector.extract_strided_slice %15 {offsets = [2, 0, 0], sizes = [16, 18, 128], strides = [1, 1, 1]} : vector<18x18x128xf32> to vector<16x18x128xf32>
    %40 = vector.extract_strided_slice %39 {offsets = [0, 0, 0], sizes = [16, 16, 128], strides = [1, 1, 1]} : vector<16x18x128xf32> to vector<16x16x128xf32>
    %41 = vector.extract_strided_slice %39 {offsets = [0, 1, 0], sizes = [16, 16, 128], strides = [1, 1, 1]} : vector<16x18x128xf32> to vector<16x16x128xf32>
    %42 = vector.extract_strided_slice %39 {offsets = [0, 2, 0], sizes = [16, 16, 128], strides = [1, 1, 1]} : vector<16x18x128xf32> to vector<16x16x128xf32>
    %43 = tpu.concatenate %40, %41, %42 in 2 : vector<16x16x128xf32>, vector<16x16x128xf32>, vector<16x16x128xf32> -> vector<16x16x384xf32>
    %44 = vector.shape_cast %43 : vector<16x16x384xf32> to vector<256x384xf32>
    %45 = arith.truncf %44 : vector<256x384xf32> to vector<256x384xbf16>
    %c2 = arith.constant 2 : index
    %c0_25 = arith.constant 0 : index
    %c0_26 = arith.constant 0 : index
    %46 = vector.load %arg2[%c2, %c0_25, %c0_26] : memref<3x384x128xbf16, #tpu.memory_space<vmem>>, vector<1x384x128xbf16>
    %47 = vector.shape_cast %46 : vector<1x384x128xbf16> to vector<384x128xbf16>
    %cst_27 = arith.constant dense<0.000000e+00> : vector<256x128xf32>
    %48 = tpu.matmul %45, %47, %cst_27 {dimension_numbers = #tpu.dot_dimension_numbers<[1], [0], [0], [1], [0, 0, 1, 1], [], []>} : vector<256x384xbf16>, vector<384x128xbf16>, vector<256x128xf32> -> vector<256x128xf32>
    %49 = arith.addf %38, %48 : vector<256x128xf32>
    %50 = vector.shape_cast %49 : vector<256x128xf32> to vector<16x16x128xf32>
    %c0_28 = arith.constant 0 : index
    %c0_29 = arith.constant 0 : index
    %c0_30 = arith.constant 0 : index
    %c0_31 = arith.constant 0 : index
    %51 = vector.load %arg5[%c0_28, %c0_29, %c0_30, %c0_31] : memref<1x16x16x128xf32, #tpu.memory_space<vmem>>, vector<1x16x16x128xf32>
    %52 = vector.shape_cast %51 : vector<1x16x16x128xf32> to vector<16x16x128xf32>
    %53 = vector.shape_cast %50 : vector<16x16x128xf32> to vector<1x16x16x128xf32>
    tpu.vector_store %arg5[%c0_28, %c0_29, %c0_30, %c0_31], %53 {strides = array<i32>} : memref<1x16x16x128xf32, #tpu.memory_space<vmem>>, vector<1x16x16x128xf32>,
    %cst_32 = arith.constant dense<0.000000e+00> : vector<128xf32>
    %54 = vector.multi_reduction <add>, %49, %cst_32 [0] : vector<256x128xf32> to vector<128xf32>
    %55 = vector.shape_cast %54 : vector<128xf32> to vector<1x128xf32>
    %56 = arith.mulf %49, %49 : vector<256x128xf32>
    %cst_33 = arith.constant dense<0.000000e+00> : vector<128xf32>
    %57 = vector.multi_reduction <add>, %56, %cst_33 [0] : vector<256x128xf32> to vector<128xf32>
    %58 = vector.shape_cast %57 : vector<128xf32> to vector<1x128xf32>
    %59 = tpu.concatenate %55, %58 in 0 : vector<1x128xf32>, vector<1x128xf32> -> vector<2x128xf32>
    %c0_34 = arith.constant 0 : index
    %c0_35 = arith.constant 0 : index
    %c0_36 = arith.constant 0 : index
    %60 = vector.load %arg6[%c0_34, %c0_35, %c0_36] : memref<1x2x128xf32, #tpu.memory_space<vmem>>, vector<1x2x128xf32>
    %61 = vector.shape_cast %60 : vector<1x2x128xf32> to vector<2x128xf32>
    %62 = vector.shape_cast %59 : vector<2x128xf32> to vector<1x2x128xf32>
    tpu.vector_store %arg6[%c0_34, %c0_35, %c0_36], %62 {strides = array<i32>} : memref<1x2x128xf32, #tpu.memory_space<vmem>>, vector<1x2x128xf32>,
    return
  }
  func.func @transform_0(%arg0: i32) -> (i32, i32, i32, i32) {
    %c0_i32 = arith.constant 0 : i32
    %c0_i32_0 = arith.constant 0 : i32
    %c0_i32_1 = arith.constant 0 : i32
    %c0_i32_2 = arith.constant 0 : i32
    return %arg0, %c0_i32, %c0_i32_0, %c0_i32_1 : i32, i32, i32, i32
  }
  func.func @transform_1(%arg0: i32) -> (i32, i32, i32) {
    %c0_i32 = arith.constant 0 : i32
    %c0_i32_0 = arith.constant 0 : i32
    %c0_i32_1 = arith.constant 0 : i32
    %c0_i32_2 = arith.constant 0 : i32
    return %c0_i32, %c0_i32_0, %c0_i32_1 : i32, i32, i32
  }
  func.func @transform_2(%arg0: i32) -> (i32, i32) {
    %c0_i32 = arith.constant 0 : i32
    %c0_i32_0 = arith.constant 0 : i32
    %c0_i32_1 = arith.constant 0 : i32
    return %c0_i32, %c0_i32_0 : i32, i32
  }
  func.func @transform_3(%arg0: i32) -> (i32, i32) {
    %c0_i32 = arith.constant 0 : i32
    %c0_i32_0 = arith.constant 0 : i32
    %c0_i32_1 = arith.constant 0 : i32
    return %c0_i32, %c0_i32_0 : i32, i32
  }
  func.func @transform_4(%arg0: i32) -> (i32, i32, i32, i32) {
    %c0_i32 = arith.constant 0 : i32
    %c0_i32_0 = arith.constant 0 : i32
    %c0_i32_1 = arith.constant 0 : i32
    %c0_i32_2 = arith.constant 0 : i32
    return %arg0, %c0_i32, %c0_i32_0, %c0_i32_1 : i32, i32, i32, i32
  }
  func.func @transform_5(%arg0: i32) -> (i32, i32, i32) {
    %c0_i32 = arith.constant 0 : i32
    %c0_i32_0 = arith.constant 0 : i32
    %c0_i32_1 = arith.constant 0 : i32
    return %arg0, %c0_i32, %c0_i32_0 : i32, i32, i32
  }
}

module attributes {stable_mosaic.version = 11 : i64} {
  func.func @kernel(%arg0: i32, %arg1: memref<1x16x16x128xf32, #tpu.memory_space<vmem>>, %arg2: memref<3x384x128xbf16, #tpu.memory_space<vmem>>, %arg3: memref<1x128xf32, #tpu.memory_space<vmem>>, %arg4: memref<1x128xf32, #tpu.memory_space<vmem>>, %arg5: memref<1x16x16x128xf32, #tpu.memory_space<vmem>>, %arg6: memref<1x2x128xf32, #tpu.memory_space<vmem>>, %arg7: memref<18x18x128xf32, #tpu.memory_space<vmem>>) attributes {dimension_semantics = [#tpu.dimension_semantics<parallel>], iteration_bounds = array<i64: 2>, scalar_prefetch = 0 : i64, scratch_operands = 1 : i64, tpu.core_type = #tpu.core_type<tc>, window_params = [{transform_indices = @transform_0, window_bounds = array<i64: 1, 16, 16, 128>}, {pipeline_mode = #tpu.pipeline_mode<synchronous>, transform_indices = @transform_1, window_bounds = array<i64: 3, 384, 128>}, {pipeline_mode = #tpu.pipeline_mode<synchronous>, transform_indices = @transform_2, window_bounds = array<i64: 1, 128>}, {pipeline_mode = #tpu.pipeline_mode<synchronous>, transform_indices = @transform_3, window_bounds = array<i64: 1, 128>}, {transform_indices = @transform_4, window_bounds = array<i64: 1, 16, 16, 128>}, {transform_indices = @transform_5, window_bounds = array<i64: 1, 2, 128>}]} {
    %c0 = arith.constant 0 : index
    %c0_0 = arith.constant 0 : index
    %c0_1 = arith.constant 0 : index
    %c0_2 = arith.constant 0 : index
    %0 = vector.load %arg1[%c0, %c0_0, %c0_1, %c0_2] : memref<1x16x16x128xf32, #tpu.memory_space<vmem>>, vector<1x16x16x128xf32>
    %1 = vector.shape_cast %0 : vector<1x16x16x128xf32> to vector<16x16x128xf32>
    %cst = arith.constant 0.000000e+00 : f32
    %2 = vector.broadcast %cst : f32 to vector<18x18x128xf32>
    %c0_3 = arith.constant 0 : index
    %c0_4 = arith.constant 0 : index
    %c0_5 = arith.constant 0 : index
    %3 = vector.load %arg7[%c0_3, %c0_4, %c0_5] : memref<18x18x128xf32, #tpu.memory_space<vmem>>, vector<18x18x128xf32>
    tpu.vector_store %arg7[%c0_3, %c0_4, %c0_5], %2 {strides = array<i32>} : memref<18x18x128xf32, #tpu.memory_space<vmem>>, vector<18x18x128xf32>,
    %c1 = arith.constant 1 : index
    %c1_6 = arith.constant 1 : index
    %c0_7 = arith.constant 0 : index
    %4 = vector.load %arg7[%c1, %c1_6, %c0_7] : memref<18x18x128xf32, #tpu.memory_space<vmem>>, vector<16x16x128xf32>
    tpu.vector_store %arg7[%c1, %c1_6, %c0_7], %1 {strides = array<i32>} : memref<18x18x128xf32, #tpu.memory_space<vmem>>, vector<16x16x128xf32>,
    %c0_8 = arith.constant 0 : index
    %c0_9 = arith.constant 0 : index
    %c0_10 = arith.constant 0 : index
    %5 = vector.load %arg7[%c0_8, %c0_9, %c0_10] : memref<18x18x128xf32, #tpu.memory_space<vmem>>, vector<18x18x128xf32>
    %cst_11 = arith.constant 0.000000e+00 : f32
    %6 = vector.broadcast %cst_11 : f32 to vector<256x128xf32>
    %7 = vector.extract_strided_slice %5 {offsets = [0, 0, 0], sizes = [16, 18, 128], strides = [1, 1, 1]} : vector<18x18x128xf32> to vector<16x18x128xf32>
    %8 = vector.extract_strided_slice %7 {offsets = [0, 0, 0], sizes = [16, 16, 128], strides = [1, 1, 1]} : vector<16x18x128xf32> to vector<16x16x128xf32>
    %9 = vector.extract_strided_slice %7 {offsets = [0, 1, 0], sizes = [16, 16, 128], strides = [1, 1, 1]} : vector<16x18x128xf32> to vector<16x16x128xf32>
    %10 = vector.extract_strided_slice %7 {offsets = [0, 2, 0], sizes = [16, 16, 128], strides = [1, 1, 1]} : vector<16x18x128xf32> to vector<16x16x128xf32>
    %11 = tpu.concatenate %8, %9, %10 in 2 : vector<16x16x128xf32>, vector<16x16x128xf32>, vector<16x16x128xf32> -> vector<16x16x384xf32>
    %12 = vector.shape_cast %11 : vector<16x16x384xf32> to vector<256x384xf32>
    %13 = arith.truncf %12 : vector<256x384xf32> to vector<256x384xbf16>
    %c0_12 = arith.constant 0 : index
    %c0_13 = arith.constant 0 : index
    %c0_14 = arith.constant 0 : index
    %14 = vector.load %arg2[%c0_12, %c0_13, %c0_14] : memref<3x384x128xbf16, #tpu.memory_space<vmem>>, vector<1x384x128xbf16>
    %15 = vector.shape_cast %14 : vector<1x384x128xbf16> to vector<384x128xbf16>
    %cst_15 = arith.constant dense<0.000000e+00> : vector<256x128xf32>
    %16 = tpu.matmul %13, %15, %cst_15 {dimension_numbers = #tpu.dot_dimension_numbers<[1], [0], [0], [1], [0, 0, 1, 1], [], []>} : vector<256x384xbf16>, vector<384x128xbf16>, vector<256x128xf32> -> vector<256x128xf32>
    %17 = arith.addf %6, %16 : vector<256x128xf32>
    %18 = vector.extract_strided_slice %5 {offsets = [1, 0, 0], sizes = [16, 18, 128], strides = [1, 1, 1]} : vector<18x18x128xf32> to vector<16x18x128xf32>
    %19 = vector.extract_strided_slice %18 {offsets = [0, 0, 0], sizes = [16, 16, 128], strides = [1, 1, 1]} : vector<16x18x128xf32> to vector<16x16x128xf32>
    %20 = vector.extract_strided_slice %18 {offsets = [0, 1, 0], sizes = [16, 16, 128], strides = [1, 1, 1]} : vector<16x18x128xf32> to vector<16x16x128xf32>
    %21 = vector.extract_strided_slice %18 {offsets = [0, 2, 0], sizes = [16, 16, 128], strides = [1, 1, 1]} : vector<16x18x128xf32> to vector<16x16x128xf32>
    %22 = tpu.concatenate %19, %20, %21 in 2 : vector<16x16x128xf32>, vector<16x16x128xf32>, vector<16x16x128xf32> -> vector<16x16x384xf32>
    %23 = vector.shape_cast %22 : vector<16x16x384xf32> to vector<256x384xf32>
    %24 = arith.truncf %23 : vector<256x384xf32> to vector<256x384xbf16>
    %c1_16 = arith.constant 1 : index
    %c0_17 = arith.constant 0 : index
    %c0_18 = arith.constant 0 : index
    %25 = vector.load %arg2[%c1_16, %c0_17, %c0_18] : memref<3x384x128xbf16, #tpu.memory_space<vmem>>, vector<1x384x128xbf16>
    %26 = vector.shape_cast %25 : vector<1x384x128xbf16> to vector<384x128xbf16>
    %cst_19 = arith.constant dense<0.000000e+00> : vector<256x128xf32>
    %27 = tpu.matmul %24, %26, %cst_19 {dimension_numbers = #tpu.dot_dimension_numbers<[1], [0], [0], [1], [0, 0, 1, 1], [], []>} : vector<256x384xbf16>, vector<384x128xbf16>, vector<256x128xf32> -> vector<256x128xf32>
    %28 = arith.addf %17, %27 : vector<256x128xf32>
    %29 = vector.extract_strided_slice %5 {offsets = [2, 0, 0], sizes = [16, 18, 128], strides = [1, 1, 1]} : vector<18x18x128xf32> to vector<16x18x128xf32>
    %30 = vector.extract_strided_slice %29 {offsets = [0, 0, 0], sizes = [16, 16, 128], strides = [1, 1, 1]} : vector<16x18x128xf32> to vector<16x16x128xf32>
    %31 = vector.extract_strided_slice %29 {offsets = [0, 1, 0], sizes = [16, 16, 128], strides = [1, 1, 1]} : vector<16x18x128xf32> to vector<16x16x128xf32>
    %32 = vector.extract_strided_slice %29 {offsets = [0, 2, 0], sizes = [16, 16, 128], strides = [1, 1, 1]} : vector<16x18x128xf32> to vector<16x16x128xf32>
    %33 = tpu.concatenate %30, %31, %32 in 2 : vector<16x16x128xf32>, vector<16x16x128xf32>, vector<16x16x128xf32> -> vector<16x16x384xf32>
    %34 = vector.shape_cast %33 : vector<16x16x384xf32> to vector<256x384xf32>
    %35 = arith.truncf %34 : vector<256x384xf32> to vector<256x384xbf16>
    %c2 = arith.constant 2 : index
    %c0_20 = arith.constant 0 : index
    %c0_21 = arith.constant 0 : index
    %36 = vector.load %arg2[%c2, %c0_20, %c0_21] : memref<3x384x128xbf16, #tpu.memory_space<vmem>>, vector<1x384x128xbf16>
    %37 = vector.shape_cast %36 : vector<1x384x128xbf16> to vector<384x128xbf16>
    %cst_22 = arith.constant dense<0.000000e+00> : vector<256x128xf32>
    %38 = tpu.matmul %35, %37, %cst_22 {dimension_numbers = #tpu.dot_dimension_numbers<[1], [0], [0], [1], [0, 0, 1, 1], [], []>} : vector<256x384xbf16>, vector<384x128xbf16>, vector<256x128xf32> -> vector<256x128xf32>
    %39 = arith.addf %28, %38 : vector<256x128xf32>
    %40 = vector.shape_cast %39 : vector<256x128xf32> to vector<16x16x128xf32>
    %c0_23 = arith.constant 0 : index
    %c0_24 = arith.constant 0 : index
    %c0_25 = arith.constant 0 : index
    %c0_26 = arith.constant 0 : index
    %41 = vector.load %arg5[%c0_23, %c0_24, %c0_25, %c0_26] : memref<1x16x16x128xf32, #tpu.memory_space<vmem>>, vector<1x16x16x128xf32>
    %42 = vector.shape_cast %41 : vector<1x16x16x128xf32> to vector<16x16x128xf32>
    %43 = vector.shape_cast %40 : vector<16x16x128xf32> to vector<1x16x16x128xf32>
    tpu.vector_store %arg5[%c0_23, %c0_24, %c0_25, %c0_26], %43 {strides = array<i32>} : memref<1x16x16x128xf32, #tpu.memory_space<vmem>>, vector<1x16x16x128xf32>,
    %cst_27 = arith.constant dense<0.000000e+00> : vector<128xf32>
    %44 = vector.multi_reduction <add>, %39, %cst_27 [0] : vector<256x128xf32> to vector<128xf32>
    %45 = vector.shape_cast %44 : vector<128xf32> to vector<1x128xf32>
    %46 = arith.mulf %39, %39 : vector<256x128xf32>
    %cst_28 = arith.constant dense<0.000000e+00> : vector<128xf32>
    %47 = vector.multi_reduction <add>, %46, %cst_28 [0] : vector<256x128xf32> to vector<128xf32>
    %48 = vector.shape_cast %47 : vector<128xf32> to vector<1x128xf32>
    %49 = tpu.concatenate %45, %48 in 0 : vector<1x128xf32>, vector<1x128xf32> -> vector<2x128xf32>
    %c0_29 = arith.constant 0 : index
    %c0_30 = arith.constant 0 : index
    %c0_31 = arith.constant 0 : index
    %50 = vector.load %arg6[%c0_29, %c0_30, %c0_31] : memref<1x2x128xf32, #tpu.memory_space<vmem>>, vector<1x2x128xf32>
    %51 = vector.shape_cast %50 : vector<1x2x128xf32> to vector<2x128xf32>
    %52 = vector.shape_cast %49 : vector<2x128xf32> to vector<1x2x128xf32>
    tpu.vector_store %arg6[%c0_29, %c0_30, %c0_31], %52 {strides = array<i32>} : memref<1x2x128xf32, #tpu.memory_space<vmem>>, vector<1x2x128xf32>,
    return
  }
  func.func @transform_0(%arg0: i32) -> (i32, i32, i32, i32) {
    %c0_i32 = arith.constant 0 : i32
    %c0_i32_0 = arith.constant 0 : i32
    %c0_i32_1 = arith.constant 0 : i32
    %c0_i32_2 = arith.constant 0 : i32
    return %arg0, %c0_i32, %c0_i32_0, %c0_i32_1 : i32, i32, i32, i32
  }
  func.func @transform_1(%arg0: i32) -> (i32, i32, i32) {
    %c0_i32 = arith.constant 0 : i32
    %c0_i32_0 = arith.constant 0 : i32
    %c0_i32_1 = arith.constant 0 : i32
    %c0_i32_2 = arith.constant 0 : i32
    return %c0_i32, %c0_i32_0, %c0_i32_1 : i32, i32, i32
  }
  func.func @transform_2(%arg0: i32) -> (i32, i32) {
    %c0_i32 = arith.constant 0 : i32
    %c0_i32_0 = arith.constant 0 : i32
    %c0_i32_1 = arith.constant 0 : i32
    return %c0_i32, %c0_i32_0 : i32, i32
  }
  func.func @transform_3(%arg0: i32) -> (i32, i32) {
    %c0_i32 = arith.constant 0 : i32
    %c0_i32_0 = arith.constant 0 : i32
    %c0_i32_1 = arith.constant 0 : i32
    return %c0_i32, %c0_i32_0 : i32, i32
  }
  func.func @transform_4(%arg0: i32) -> (i32, i32, i32, i32) {
    %c0_i32 = arith.constant 0 : i32
    %c0_i32_0 = arith.constant 0 : i32
    %c0_i32_1 = arith.constant 0 : i32
    %c0_i32_2 = arith.constant 0 : i32
    return %arg0, %c0_i32, %c0_i32_0, %c0_i32_1 : i32, i32, i32, i32
  }
  func.func @transform_5(%arg0: i32) -> (i32, i32, i32) {
    %c0_i32 = arith.constant 0 : i32
    %c0_i32_0 = arith.constant 0 : i32
    %c0_i32_1 = arith.constant 0 : i32
    return %arg0, %c0_i32, %c0_i32_0 : i32, i32, i32
  }
}

module attributes {stable_mosaic.version = 11 : i64} {
  func.func @bn_relu_kernel(%arg0: i32, %arg1: memref<1x16x16x128xf32, #tpu.memory_space<vmem>>, %arg2: memref<1x128xf32, #tpu.memory_space<vmem>>, %arg3: memref<1x128xf32, #tpu.memory_space<vmem>>, %arg4: memref<1x16x16x128xf32, #tpu.memory_space<vmem>>) attributes {dimension_semantics = [#tpu.dimension_semantics<parallel>], iteration_bounds = array<i64: 2>, scalar_prefetch = 0 : i64, scratch_operands = 0 : i64, tpu.core_type = #tpu.core_type<tc>, window_params = [{transform_indices = @transform_0, window_bounds = array<i64: 1, 16, 16, 128>}, {pipeline_mode = #tpu.pipeline_mode<synchronous>, transform_indices = @transform_1, window_bounds = array<i64: 1, 128>}, {pipeline_mode = #tpu.pipeline_mode<synchronous>, transform_indices = @transform_2, window_bounds = array<i64: 1, 128>}, {transform_indices = @transform_3, window_bounds = array<i64: 1, 16, 16, 128>}]} {
    %c0 = arith.constant 0 : index
    %c0_0 = arith.constant 0 : index
    %0 = vector.load %arg2[%c0, %c0_0] : memref<1x128xf32, #tpu.memory_space<vmem>>, vector<1x128xf32>
    %1 = vector.shape_cast %0 : vector<1x128xf32> to vector<1x1x1x128xf32>
    %c0_1 = arith.constant 0 : index
    %c0_2 = arith.constant 0 : index
    %2 = vector.load %arg3[%c0_1, %c0_2] : memref<1x128xf32, #tpu.memory_space<vmem>>, vector<1x128xf32>
    %3 = vector.shape_cast %2 : vector<1x128xf32> to vector<1x1x1x128xf32>
    %c0_3 = arith.constant 0 : index
    %c0_4 = arith.constant 0 : index
    %c0_5 = arith.constant 0 : index
    %c0_6 = arith.constant 0 : index
    %4 = vector.load %arg1[%c0_3, %c0_4, %c0_5, %c0_6] : memref<1x16x16x128xf32, #tpu.memory_space<vmem>>, vector<1x16x16x128xf32>
    %5 = vector.broadcast %1 : vector<1x1x1x128xf32> to vector<1x16x16x128xf32>
    %6 = arith.mulf %4, %5 : vector<1x16x16x128xf32>
    %7 = vector.broadcast %3 : vector<1x1x1x128xf32> to vector<1x16x16x128xf32>
    %8 = arith.addf %6, %7 : vector<1x16x16x128xf32>
    %cst = arith.constant 0.000000e+00 : f32
    %9 = vector.broadcast %cst : f32 to vector<1x16x16x128xf32>
    %10 = arith.maximumf %8, %9 : vector<1x16x16x128xf32>
    %c0_7 = arith.constant 0 : index
    %c0_8 = arith.constant 0 : index
    %c0_9 = arith.constant 0 : index
    %c0_10 = arith.constant 0 : index
    %11 = vector.load %arg4[%c0_7, %c0_8, %c0_9, %c0_10] : memref<1x16x16x128xf32, #tpu.memory_space<vmem>>, vector<1x16x16x128xf32>
    tpu.vector_store %arg4[%c0_7, %c0_8, %c0_9, %c0_10], %10 {strides = array<i32>} : memref<1x16x16x128xf32, #tpu.memory_space<vmem>>, vector<1x16x16x128xf32>,
    return
  }
  func.func @transform_0(%arg0: i32) -> (i32, i32, i32, i32) {
    %c0_i32 = arith.constant 0 : i32
    %c0_i32_0 = arith.constant 0 : i32
    %c0_i32_1 = arith.constant 0 : i32
    %c0_i32_2 = arith.constant 0 : i32
    return %arg0, %c0_i32, %c0_i32_0, %c0_i32_1 : i32, i32, i32, i32
  }
  func.func @transform_1(%arg0: i32) -> (i32, i32) {
    %c0_i32 = arith.constant 0 : i32
    %c0_i32_0 = arith.constant 0 : i32
    %c0_i32_1 = arith.constant 0 : i32
    return %c0_i32, %c0_i32_0 : i32, i32
  }
  func.func @transform_2(%arg0: i32) -> (i32, i32) {
    %c0_i32 = arith.constant 0 : i32
    %c0_i32_0 = arith.constant 0 : i32
    %c0_i32_1 = arith.constant 0 : i32
    return %c0_i32, %c0_i32_0 : i32, i32
  }
  func.func @transform_3(%arg0: i32) -> (i32, i32, i32, i32) {
    %c0_i32 = arith.constant 0 : i32
    %c0_i32_0 = arith.constant 0 : i32
    %c0_i32_1 = arith.constant 0 : i32
    %c0_i32_2 = arith.constant 0 : i32
    return %arg0, %c0_i32, %c0_i32_0, %c0_i32_1 : i32, i32, i32, i32
  }
}

</mosaic_0001>

<bundles_post_ra>
// kernel: _lambda_.5
= control target key start
LH: loop header
LB: loop body
LE: loop exit
PB: predicated region body
PF: predicated region fallthrough
CT: control target
= control target key end

     0   :  { %s451_s12 = smov 0   ;;  %s610_s0 = inlined_call_operand.vmem [shape: f32[2,16,16,128], index: 0, kind: input, shape index: {}]   ;;  %s611_s1 = inlined_call_operand.vmem [shape: f32[1,128], index: 1, kind: input, shape index: {}]   ;;  %s612_s2 = inlined_call_operand.vmem [shape: f32[1,128], index: 2, kind: input, shape index: {}]   ;;  %s613_s3 = inlined_call_operand.vmem [shape: f32[2,16,16,128], index: 3, kind: output, shape index: {}]  }
   0x1 LB: > { %s400_s13 = sadd.s32 4294967295, %s429_s12   ;;  %p404_p0 = scmp.ge.s32.totalorder %s429_s12, 1  ;;  %s429_s12 = sphi %s451_s12, %s13_s12  }
   0x2   : > { %p137_p1 = scmp.lt.s32.totalorder %s429_s12, 3 }
   0x4   : > { %p138_p2 = pnand %p404_p0, %p137_p1 }
   0x5   : > { %p161_p3 = scmp.lt.s32.totalorder (!%p138_p2), %s400_s13, 1  ;;  %v462_v0 = vld [vmem:[%s611_s1] ss:$0 sm:$0xff] (!%p138_p2) }
   0x6   : > { %141 = sbr.rel (%p138_p2) target bundleno = 46 (0x2e), region = 32  ;;  %v472_v1 = vld [vmem:[%s612_s2] ss:$0 sm:$0xff] (!%p138_p2) }
   0xd   : > { %s615_s13 = smov (!%p161_p3, %s400_s13), 1 }
   0xe   : > { %s413_s14 = sshll.u32 %s615_s13, 8 }
   0xf   : > { %s467_s19 = scalar_lea.vmem %s610_s0, %s413_s14  ;;  %s495_s24 = scalar_lea.vmem %s613_s3, %s413_s14 }
  0x10   : > { %v173_v2 = vld [vmem:[%s467_s19] sm:$0xff]  ;;  %v174_v3 = vld [vmem:[%s467_s19 + $0x8] sm:$0xff]  ;;  %v175_v4 = vld [vmem:[%s467_s19 + $0x10] sm:$0xff] }
  0x11   : > { %v211_v5 = vmul.f32 %v462_v0, %v173_v2  ;;  %v212_v6 = vmul.f32 %v462_v0, %v174_v3  ;;  %v213_v7 = vmul.f32 %v462_v0, %v175_v4  ;;  %v176_v8 = vld [vmem:[%s467_s19 + $0x18] sm:$0xff]  ;;  %v177_v9 = vld [vmem:[%s467_s19 + $0x20] sm:$0xff]  ;;  %v178_v10 = vld [vmem:[%s467_s19 + $0x28] sm:$0xff] }
  0x12   : > { %v214_v11 = vmul.f32 %v462_v0, %v176_v8  ;;  %v215_v12 = vmul.f32 %v462_v0, %v177_v9  ;;  %v216_v13 = vmul.f32 %v462_v0, %v178_v10  ;;  %v179_v14 = vld [vmem:[%s467_s19 + $0x30] sm:$0xff]  ;;  %v180_v15 = vld [vmem:[%s467_s19 + $0x38] sm:$0xff]  ;;  %v181_v24 = vld [vmem:[%s467_s19 + $0x40] sm:$0xff] }
  0x13   : > { %v249_v16 = vadd.f32 %v472_v1, %v211_v5  ;;  %v250_v17 = vadd.f32 %v472_v1, %v212_v6  ;;  %v251_v18 = vadd.f32 %v472_v1, %v213_v7  ;;  %v217_v19 = vmul.f32 %v462_v0, %v179_v14  ;;  %v182_v25 = vld [vmem:[%s467_s19 + $0x48] sm:$0xff]  ;;  %v183_v26 = vld [vmem:[%s467_s19 + $0x50] sm:$0xff]  ;;  %v184_v31 = vld [vmem:[%s467_s19 + $0x58] sm:$0xff] }
  0x14   : > { %v252_v20 = vadd.f32 %v472_v1, %v214_v11  ;;  %v253_v21 = vadd.f32 %v472_v1, %v215_v12  ;;  %v254_v22 = vadd.f32 %v472_v1, %v216_v13  ;;  %v218_v23 = vmul.f32 %v462_v0, %v180_v15  ;;  %v185_v32 = vld [vmem:[%s467_s19 + $0x60] sm:$0xff]  ;;  %v186_v33 = vld [vmem:[%s467_s19 + $0x68] sm:$0xff]  ;;  %v187_v38 = vld [vmem:[%s467_s19 + $0x70] sm:$0xff] }
  0x15   : > { %v281_v27 = vmax.f32 %v249_v16, 0.0  ;;  %v282_v28 = vmax.f32 %v250_v17, 0.0  ;;  %v283_v29 = vmax.f32 %v251_v18, 0.0  ;;  %v255_v30 = vadd.f32 %v472_v1, %v217_v19  ;;  %v188_v43 = vld [vmem:[%s467_s19 + $0x78] sm:$0xff]  ;;  %v189_v56 = vld [vmem:[%s467_s19 + $0x80] sm:$0xff]  ;;  %v190_v57 = vld [vmem:[%s467_s19 + $0x88] sm:$0xff] }
  0x16   : > { %v284_v34 = vmax.f32 %v252_v20, 0.0  ;;  %v285_v35 = vmax.f32 %v253_v21, 0.0  ;;  %v286_v36 = vmax.f32 %v254_v22, 0.0  ;;  %v256_v37 = vadd.f32 %v472_v1, %v218_v23  ;;  %v191_v58 = vld [vmem:[%s467_s19 + $0x90] sm:$0xff]  ;;  %v192_v63 = vld [vmem:[%s467_s19 + $0x98] sm:$0xff]  ;;  %v193_v2 = vld [vmem:[%s467_s19 + $0xa0] sm:$0xff] }
  0x17   : > { %313 = vst [vmem:[%s495_s24] sm:$0xff] %v281_v27  ;;  %314 = vst [vmem:[%s495_s24 + $0x8] sm:$0xff] %v282_v28  ;;  %v287_v39 = vmax.f32 %v255_v30, 0.0  ;;  %v219_v40 = vmul.f32 %v462_v0, %v181_v24  ;;  %v220_v41 = vmul.f32 %v462_v0, %v182_v25  ;;  %v221_v42 = vmul.f32 %v462_v0, %v183_v26  ;;  %v194_v3 = vld [vmem:[%s467_s19 + $0xa8] sm:$0xff]  ;;  %v195_v8 = vld [vmem:[%s467_s19 + $0xb0] sm:$0xff] }
  0x18   : > { %315 = vst [vmem:[%s495_s24 + $0x10] sm:$0xff] %v283_v29  ;;  %316 = vst [vmem:[%s495_s24 + $0x18] sm:$0xff] %v284_v34  ;;  %v288_v44 = vmax.f32 %v256_v37, 0.0  ;;  %v222_v45 = vmul.f32 %v462_v0, %v184_v31  ;;  %v223_v46 = vmul.f32 %v462_v0, %v185_v32  ;;  %v224_v47 = vmul.f32 %v462_v0, %v186_v33  ;;  %v196_v13 = vld [vmem:[%s467_s19 + $0xb8] sm:$0xff]  ;;  %v197_v26 = vld [vmem:[%s467_s19 + $0xc0] sm:$0xff] }
  0x19   : > { %317 = vst [vmem:[%s495_s24 + $0x20] sm:$0xff] %v285_v35  ;;  %318 = vst [vmem:[%s495_s24 + $0x28] sm:$0xff] %v286_v36  ;;  %v257_v48 = vadd.f32 %v472_v1, %v219_v40  ;;  %v258_v49 = vadd.f32 %v472_v1, %v220_v41  ;;  %v259_v50 = vadd.f32 %v472_v1, %v221_v42  ;;  %v198_v27 = vld [vmem:[%s467_s19 + $0xc8] sm:$0xff]  ;;  %v199_v28 = vld [vmem:[%s467_s19 + $0xd0] sm:$0xff] }
  0x1a   : > { %319 = vst [vmem:[%s495_s24 + $0x30] sm:$0xff] %v287_v39  ;;  %v225_v51 = vmul.f32 %v462_v0, %v187_v38  ;;  %320 = vst [vmem:[%s495_s24 + $0x38] sm:$0xff] %v288_v44  ;;  %v260_v52 = vadd.f32 %v472_v1, %v222_v45  ;;  %v261_v53 = vadd.f32 %v472_v1, %v223_v46  ;;  %v200_v33 = vld [vmem:[%s467_s19 + $0xd8] sm:$0xff]  ;;  %v201_v34 = vld [vmem:[%s467_s19 + $0xe0] sm:$0xff] }
  0x1b   : > { %v262_v54 = vadd.f32 %v472_v1, %v224_v47  ;;  %v226_v55 = vmul.f32 %v462_v0, %v188_v43  ;;  %v289_v59 = vmax.f32 %v257_v48, 0.0  ;;  %v290_v60 = vmax.f32 %v258_v49, 0.0  ;;  %v202_v35 = vld [vmem:[%s467_s19 + $0xe8] sm:$0xff]  ;;  %v203_v40 = vld [vmem:[%s467_s19 + $0xf0] sm:$0xff]  ;;  %v204_v45 = vld [vmem:[%s467_s19 + $0xf8] sm:$0xff] }
  0x1c   : > { %v291_v61 = vmax.f32 %v259_v50, 0.0  ;;  %v263_v62 = vadd.f32 %v472_v1, %v225_v51  ;;  %v292_v4 = vmax.f32 %v260_v52, 0.0  ;;  %v293_v5 = vmax.f32 %v261_v53, 0.0 }
  0x1d   : > { %v294_v6 = vmax.f32 %v262_v54, 0.0  ;;  %v264_v7 = vadd.f32 %v472_v1, %v226_v55  ;;  %321 = vst [vmem:[%s495_s24 + $0x40] sm:$0xff] %v289_v59  ;;  %322 = vst [vmem:[%s495_s24 + $0x48] sm:$0xff] %v290_v60  ;;  %v227_v10 = vmul.f32 %v462_v0, %v189_v56  ;;  %v228_v11 = vmul.f32 %v462_v0, %v190_v57 }
  0x1e   : > { %323 = vst [vmem:[%s495_s24 + $0x50] sm:$0xff] %v291_v61  ;;  %v295_v9 = vmax.f32 %v263_v62, 0.0  ;;  %v229_v12 = vmul.f32 %v462_v0, %v191_v58  ;;  %324 = vst [vmem:[%s495_s24 + $0x58] sm:$0xff] %v292_v4  ;;  %v230_v15 = vmul.f32 %v462_v0, %v192_v63  ;;  %v231_v16 = vmul.f32 %v462_v0, %v193_v2 }
  0x1f   : > { %325 = vst [vmem:[%s495_s24 + $0x60] sm:$0xff] %v293_v5  ;;  %326 = vst [vmem:[%s495_s24 + $0x68] sm:$0xff] %v294_v6  ;;  %v296_v14 = vmax.f32 %v264_v7, 0.0  ;;  %v232_v17 = vmul.f32 %v462_v0, %v194_v3  ;;  %v265_v18 = vadd.f32 %v472_v1, %v227_v10  ;;  %v266_v19 = vadd.f32 %v472_v1, %v228_v11 }
  0x20   : > { %327 = vst [vmem:[%s495_s24 + $0x70] sm:$0xff] %v295_v9  ;;  %v267_v20 = vadd.f32 %v472_v1, %v229_v12  ;;  %v233_v21 = vmul.f32 %v462_v0, %v195_v8  ;;  %v268_v22 = vadd.f32 %v472_v1, %v230_v15  ;;  %v269_v23 = vadd.f32 %v472_v1, %v231_v16 }
  0x21   : > { %328 = vst [vmem:[%s495_s24 + $0x78] sm:$0xff] %v296_v14  ;;  %v270_v24 = vadd.f32 %v472_v1, %v232_v17  ;;  %v234_v25 = vmul.f32 %v462_v0, %v196_v13  ;;  %v297_v29 = vmax.f32 %v265_v18, 0.0  ;;  %v298_v30 = vmax.f32 %v266_v19, 0.0 }
  0x22   : > { %v299_v31 = vmax.f32 %v267_v20, 0.0  ;;  %v271_v32 = vadd.f32 %v472_v1, %v233_v21  ;;  %v300_v36 = vmax.f32 %v268_v22, 0.0  ;;  %v301_v37 = vmax.f32 %v269_v23, 0.0 }
  0x23   : > { %v302_v38 = vmax.f32 %v270_v24, 0.0  ;;  %v272_v39 = vadd.f32 %v472_v1, %v234_v25  ;;  %329 = vst [vmem:[%s495_s24 + $0x80] sm:$0xff] %v297_v29  ;;  %330 = vst [vmem:[%s495_s24 + $0x88] sm:$0xff] %v298_v30  ;;  %v235_v42 = vmul.f32 %v462_v0, %v197_v26  ;;  %v236_v43 = vmul.f32 %v462_v0, %v198_v27 }
  0x24   : > { %331 = vst [vmem:[%s495_s24 + $0x90] sm:$0xff] %v299_v31  ;;  %v303_v41 = vmax.f32 %v271_v32, 0.0  ;;  %v237_v44 = vmul.f32 %v462_v0, %v199_v28  ;;  %332 = vst [vmem:[%s495_s24 + $0x98] sm:$0xff] %v300_v36  ;;  %v238_v47 = vmul.f32 %v462_v0, %v200_v33  ;;  %v239_v48 = vmul.f32 %v462_v0, %v201_v34 }
  0x25   : > { %333 = vst [vmem:[%s495_s24 + $0xa0] sm:$0xff] %v301_v37  ;;  %334 = vst [vmem:[%s495_s24 + $0xa8] sm:$0xff] %v302_v38  ;;  %v304_v46 = vmax.f32 %v272_v39, 0.0  ;;  %v240_v49 = vmul.f32 %v462_v0, %v202_v35  ;;  %v273_v50 = vadd.f32 %v472_v1, %v235_v42  ;;  %v274_v51 = vadd.f32 %v472_v1, %v236_v43 }
  0x26   : > { %335 = vst [vmem:[%s495_s24 + $0xb0] sm:$0xff] %v303_v41  ;;  %v275_v52 = vadd.f32 %v472_v1, %v237_v44  ;;  %v241_v53 = vmul.f32 %v462_v0, %v203_v40  ;;  %v276_v54 = vadd.f32 %v472_v1, %v238_v47  ;;  %v277_v55 = vadd.f32 %v472_v1, %v239_v48 }
  0x27   : > { %336 = vst [vmem:[%s495_s24 + $0xb8] sm:$0xff] %v304_v46  ;;  %v278_v56 = vadd.f32 %v472_v1, %v240_v49  ;;  %v242_v57 = vmul.f32 %v462_v0, %v204_v45  ;;  %v305_v58 = vmax.f32 %v273_v50, 0.0  ;;  %v306_v59 = vmax.f32 %v274_v51, 0.0 }
  0x28   : > { %v307_v60 = vmax.f32 %v275_v52, 0.0  ;;  %v279_v61 = vadd.f32 %v472_v1, %v241_v53  ;;  %v308_v62 = vmax.f32 %v276_v54, 0.0  ;;  %v309_v63 = vmax.f32 %v277_v55, 0.0 }
  0x29   : > { %v310_v2 = vmax.f32 %v278_v56, 0.0  ;;  %v280_v3 = vadd.f32 %v472_v1, %v242_v57  ;;  %337 = vst [vmem:[%s495_s24 + $0xc0] sm:$0xff] %v305_v58  ;;  %338 = vst [vmem:[%s495_s24 + $0xc8] sm:$0xff] %v306_v59 }
  0x2a   : > { %339 = vst [vmem:[%s495_s24 + $0xd0] sm:$0xff] %v307_v60  ;;  %v311_v4 = vmax.f32 %v279_v61, 0.0  ;;  %340 = vst [vmem:[%s495_s24 + $0xd8] sm:$0xff] %v308_v62 }
  0x2b   : > { %341 = vst [vmem:[%s495_s24 + $0xe0] sm:$0xff] %v309_v63  ;;  %342 = vst [vmem:[%s495_s24 + $0xe8] sm:$0xff] %v310_v2  ;;  %v312_v0 = vmax.f32 %v280_v3, 0.0 }
  0x2c   : > { %343 = vst [vmem:[%s495_s24 + $0xf0] sm:$0xff] %v311_v4 }
  0x2d   : > { %344 = vst [vmem:[%s495_s24 + $0xf8] sm:$0xff] %v312_v0 }
  0x2e PF: > { %s13_s12 = sadd.s32 1, %s429_s12  }
  0x2f   : > { %p10_p4 = scmp.ge.s32.totalorder %s13_s12, 4  }
  0x31   :  { %12 = sbr.rel (!%p10_p4) target bundleno = 1 (0x1), region = 62 }

// kernel: _lambda_.4
= control target key start
LH: loop header
LB: loop body
LE: loop exit
PB: predicated region body
PF: predicated region fallthrough
CT: control target
= control target key end

     0   :  { %s3719_s18 = smov 0   ;;  %s5077_s0 = inlined_call_operand.vmem [shape: f32[2,16,16,128], index: 0, kind: input, shape index: {}]   ;;  %s5078_s1 = inlined_call_operand.vmem [shape: bf16[3,384,128], index: 1, kind: input, shape index: {}]   ;;  %s5079_s2 = inlined_call_operand.vmem [shape: f32[1,128], index: 2, kind: input, shape index: {}]   ;;  %s5080_s3 = inlined_call_operand.vmem [shape: f32[1,128], index: 3, kind: input, shape index: {}]   ;;  %s5081_s4 = inlined_call_operand.vmem [shape: f32[2,16,16,128], index: 4, kind: output, shape index: {0}]   ;;  %s5082_s5 = inlined_call_operand.vmem [shape: f32[2,2,128], index: 5, kind: output, shape index: {1}]  }
   0x1 LB: > { %s2685_s19 = sadd.s32 4294967295, %s3685_s18   ;;  %p2689_p0 = scmp.ge.s32.totalorder %s3685_s18, 1  ;;  %s3685_s18 = sphi %s3719_s18, %s16_s18  }
   0x2   : > { %p190_p1 = scmp.lt.s32.totalorder %s3685_s18, 3 }
   0x4   : > { %p191_p2 = pnand %p2689_p0, %p190_p1 }
   0x6   : > { %194 = sbr.rel (%p191_p2) target bundleno = 583 (0x247), region = 36 }
   0xd   : > { %v3606_v0 = vld [vmem:[%s5078_s1 + $0x100] sm:$0xff]   ;;  %v3687_v3 = vmov 0.0   ;;  %v3609_v4 = vld [vmem:[%s5078_s1 + $0x108] sm:$0xff]   ;;  %v3612_v7 = vld [vmem:[%s5078_s1 + $0x110] sm:$0xff]   ;;  %p222_p3 = scmp.lt.s32.totalorder %s2685_s19, 1  ;;  %vm568_vm0 = vcmask 1046528  }
   0xe   : > { %v3733_v1 = vld [vmem:[%s5078_s1 + $0x140] sm:$0xff]   ;;  %2869 = vmatprep.subr.bf16.mxu0 %v3606_v0  ;;  %382 = vst [vmem:[#allocation2 + $0x18] sm:$0xff] %v3687_v3  ;;  %383 = vst [vmem:[#allocation2 + $0x20] sm:$0xff] %v3687_v3  ;;  %v3797_v5 = vld [vmem:[%s5078_s1 + $0x148] sm:$0xff]   ;;  %vm681_vm1 = vcmask 1045504   ;;  %vm2596_vm2 = vcmask 1040384  }
   0xf   : > { %v3608_v2 = vld [vmem:[%s5078_s1 + $0xc0] sm:$0xff]   ;;  %384 = vst [vmem:[#allocation2 + $0x28] sm:$0x3] %v3687_v3  ;;  %379 = vst [vmem:[#allocation2] sm:$0xff] %v3687_v3  ;;  %3421 = vmatprep.subr.bf16.mxu1 %v3733_v1  ;;  %v3611_v6 = vld [vmem:[%s5078_s1 + $0xc8] sm:$0xff]   ;;  %s5158_s19 = smov (!%p222_p3, %s2685_s19), 1 }
  0x10   : > { %381 = vst [vmem:[#allocation2 + $0x10] sm:$0x3] %v3687_v3  ;;  %385 = vst [vmem:[#allocation2 + $0x30] sm:$0xff] %v3687_v3  ;;  %2870 = vmatpush3.bf16.msra.mxu0 %v3608_v2  ;;  %3429 = vmatpush3.bf16.msra.mxu1 %v3733_v1  ;;  %v3809_v8 = vld [vmem:[%s5078_s1 + $0x150] sm:$0xff]   ;;  %v3615_v10 = vld [vmem:[%s5078_s1 + $0x118] sm:$0xff]   ;;  %s2867_s6 = sshll.u32 %s5158_s19, 8 }
  0x11   : > { %386 = vst [vmem:[#allocation2 + $0x38] sm:$0xff] %v3687_v3  ;;  %387 = vst [vmem:[#allocation2 + $0x40] sm:$0x3] %v3687_v3  ;;  %2871 = vmatprep.subr.bf16.mxu0 %v3609_v4  ;;  %3422 = vmatprep.subr.bf16.mxu1 %v3797_v5  ;;  %v3614_v9 = vld [vmem:[%s5078_s1 + $0xd0] sm:$0xff]   ;;  %v3822_v11 = vld [vmem:[%s5078_s1 + $0x158] sm:$0xff]   ;;  %s3875_s15 = scalar_lea.vmem %s5077_s0, %s2867_s6 }
  0x12   : > { %388 = vst [vmem:[#allocation2 + $0x48] sm:$0xff] %v3687_v3  ;;  %389 = vst [vmem:[#allocation2 + $0x50] sm:$0xff] %v3687_v3  ;;  %v3617_v12 = vld [vmem:[%s5078_s1 + $0xd8] sm:$0xff]   ;;  %v3618_v13 = vld [vmem:[%s5078_s1 + $0x120] sm:$0xff]  }
  0x13   : > { %390 = vst [vmem:[#allocation2 + $0x58] sm:$0x3] %v3687_v3  ;;  %391 = vst [vmem:[#allocation2 + $0x60] sm:$0xff] %v3687_v3  ;;  %v3837_v14 = vld [vmem:[%s5078_s1 + $0x160] sm:$0xff]   ;;  %v3621_v16 = vld [vmem:[%s5078_s1 + $0x128] sm:$0xff]  }
  0x14   : > { %392 = vst [vmem:[#allocation2 + $0x68] sm:$0xff] %v3687_v3  ;;  %393 = vst [vmem:[#allocation2 + $0x70] sm:$0x3] %v3687_v3  ;;  %2872 = vmatpush3.bf16.msra.mxu0 %v3611_v6  ;;  %3430 = vmatpush3.bf16.msra.mxu1 %v3797_v5  ;;  %v3620_v15 = vld [vmem:[%s5078_s1 + $0xe0] sm:$0xff]   ;;  %v3854_v17 = vld [vmem:[%s5078_s1 + $0x168] sm:$0xff]   ;;  %v3944_v6 = vrot.slane %v3687_v3, 1 }
  0x15   : > { %394 = vst [vmem:[#allocation2 + $0x78] sm:$0xff] %v3687_v3  ;;  %395 = vst [vmem:[#allocation2 + $0x80] sm:$0xff] %v3687_v3  ;;  %2873 = vmatprep.subr.bf16.mxu0 %v3612_v7  ;;  %3423 = vmatprep.subr.bf16.mxu1 %v3809_v8  ;;  %v3623_v18 = vld [vmem:[%s5078_s1 + $0xe8] sm:$0xff]   ;;  %v3624_v19 = vld [vmem:[%s5078_s1 + $0x130] sm:$0xff]  }
  0x16   : > { %396 = vst [vmem:[#allocation2 + $0x88] sm:$0x3] %v3687_v3  ;;  %397 = vst [vmem:[#allocation2 + $0x90] sm:$0xff] %v3687_v3  ;;  %v3868_v20 = vld [vmem:[%s5078_s1 + $0x170] sm:$0xff]   ;;  %v3627_v22 = vld [vmem:[%s5078_s1 + $0x138] sm:$0xff]  }
  0x17   : > { %398 = vst [vmem:[#allocation2 + $0x98] sm:$0xff] %v3687_v3  ;;  %399 = vst [vmem:[#allocation2 + $0xa0] sm:$0x3] %v3687_v3  ;;  %v3626_v21 = vld [vmem:[%s5078_s1 + $0xf0] sm:$0xff]   ;;  %v3886_v23 = vld [vmem:[%s5078_s1 + $0x178] sm:$0xff]  }
  0x18   : > { %400 = vst [vmem:[#allocation2 + $0xa8] sm:$0xff] %v3687_v3  ;;  %401 = vst [vmem:[#allocation2 + $0xb0] sm:$0xff] %v3687_v3  ;;  %2874 = vmatpush3.bf16.msra.mxu0 %v3614_v9  ;;  %3431 = vmatpush3.bf16.msra.mxu1 %v3809_v8  ;;  %v237_v24 = vld [vmem:[%s3875_s15] sm:$0xff]  ;;  %v238_v25 = vld [vmem:[%s3875_s15 + $0x8] sm:$0xff] }
  0x19   : > { %402 = vst [vmem:[#allocation2 + $0xb8] sm:$0x3] %v3687_v3  ;;  %403 = vst [vmem:[#allocation2 + $0xc0] sm:$0xff] %v3687_v3  ;;  %2875 = vmatprep.subr.bf16.mxu0 %v3615_v10  ;;  %3424 = vmatprep.subr.bf16.mxu1 %v3822_v11  ;;  %v3894_v26 = vld [vmem:[%s5079_s2] ss:$0 sm:$0xff]  ;;  %v254_v31 = vld [vmem:[%s3875_s15 + $0x88] sm:$0xff] }
  0x1a   : > { %404 = vst [vmem:[#allocation2 + $0xc8] sm:$0xff] %v3687_v3  ;;  %405 = vst [vmem:[#allocation2 + $0xd0] sm:$0x3] %v3687_v3  ;;  %v3900_v27 = vld [vmem:[%s5080_s3] ss:$0 sm:$0xff]  ;;  %v277_v28 = vmul.f32 %v3894_v26, %v237_v24  ;;  %v278_v29 = vmul.f32 %v3894_v26, %v238_v25  ;;  %v294_v33 = vmul.f32 %v3894_v26, %v254_v31  ;;  %v255_v34 = vld [vmem:[%s3875_s15 + $0x90] sm:$0xff] }
  0x1b   : > { %406 = vst [vmem:[#allocation2 + $0xd8] sm:$0xff] %v3687_v3  ;;  %407 = vst [vmem:[#allocation2 + $0xe0] sm:$0xff] %v3687_v3  ;;  %v253_v30 = vld [vmem:[%s3875_s15 + $0x80] sm:$0xff]  ;;  %v256_v35 = vld [vmem:[%s3875_s15 + $0x98] sm:$0xff]  ;;  %v295_v38 = vmul.f32 %v3894_v26, %v255_v34 }
  0x1c   : > { %408 = vst [vmem:[#allocation2 + $0xe8] sm:$0x3] %v3687_v3  ;;  %409 = vst [vmem:[#allocation2 + $0xf0] sm:$0xff] %v3687_v3  ;;  %2876 = vmatpush3.bf16.msra.mxu0 %v3617_v12  ;;  %3432 = vmatpush3.bf16.msra.mxu1 %v3822_v11  ;;  %v293_v32 = vmul.f32 %v3894_v26, %v253_v30  ;;  %v315_v36 = vadd.f32 %v3900_v27, %v277_v28  ;;  %v3629_v40 = vld [vmem:[%s5078_s1 + $0xf8] sm:$0xff]   ;;  %v3630_v47 = vld [vmem:[%s5078_s1 + $0x40] sm:$0xff]  }
  0x1d   : > { %410 = vst [vmem:[#allocation2 + $0xf8] sm:$0xff] %v3687_v3  ;;  %411 = vst [vmem:[#allocation2 + $0x100] sm:$0x3] %v3687_v3  ;;  %2877 = vmatprep.subr.bf16.mxu0 %v3618_v13  ;;  %3425 = vmatprep.subr.bf16.mxu1 %v3837_v14  ;;  %v316_v37 = vadd.f32 %v3900_v27, %v278_v29  ;;  %v296_v39 = vmul.f32 %v3894_v26, %v256_v35  ;;  %v239_v52 = vld [vmem:[%s3875_s15 + $0x10] sm:$0xff]  ;;  %v240_v53 = vld [vmem:[%s3875_s15 + $0x18] sm:$0xff] }
  0x1e   : > { %412 = vst [vmem:[#allocation2 + $0x108] sm:$0xff] %v3687_v3  ;;  %413 = vst [vmem:[#allocation2 + $0x110] sm:$0xff] %v3687_v3  ;;  %v331_v41 = vadd.f32 %v3900_v27, %v293_v32  ;;  %v332_v42 = vadd.f32 %v3900_v27, %v294_v33  ;;  %v347_v43 = vmax.f32 %v315_v36, 0.0  ;;  %v333_v45 = vadd.f32 %v3900_v27, %v295_v38  ;;  %v257_v54 = vld [vmem:[%s3875_s15 + $0xa0] sm:$0xff]  ;;  %v258_v57 = vld [vmem:[%s3875_s15 + $0xa8] sm:$0xff] }
  0x1f   : > { %414 = vst [vmem:[#allocation2 + $0x118] sm:$0x3] %v3687_v3  ;;  %415 = vst [vmem:[#allocation2 + $0x120] sm:$0xff] %v3687_v3  ;;  %v348_v44 = vmax.f32 %v316_v37, 0.0  ;;  %v334_v46 = vadd.f32 %v3900_v27, %v296_v39  ;;  %v279_v55 = vmul.f32 %v3894_v26, %v239_v52  ;;  %v280_v56 = vmul.f32 %v3894_v26, %v240_v53  ;;  %v259_v59 = vld [vmem:[%s3875_s15 + $0xb0] sm:$0xff]  ;;  %v260_v60 = vld [vmem:[%s3875_s15 + $0xb8] sm:$0xff] }
  0x20   : > { %416 = vst [vmem:[#allocation2 + $0x128] sm:$0xff] %v3687_v3  ;;  %417 = vst [vmem:[#allocation2 + $0x130] sm:$0x3] %v3687_v3  ;;  %2878 = vmatpush3.bf16.msra.mxu0 %v3620_v15  ;;  %3433 = vmatpush3.bf16.msra.mxu1 %v3837_v14  ;;  %v363_v48 = vmax.f32 %v331_v41, 0.0  ;;  %v364_v49 = vmax.f32 %v332_v42, 0.0  ;;  %v365_v50 = vmax.f32 %v333_v45, 0.0  ;;  %v297_v58 = vmul.f32 %v3894_v26, %v257_v54 }
  0x21   : > { %418 = vst [vmem:[#allocation2 + $0x138] sm:$0xff] %v3687_v3  ;;  %419 = vst [vmem:[#allocation2 + $0x140] sm:$0xff] %v3687_v3  ;;  %2879 = vmatprep.subr.bf16.mxu0 %v3621_v16  ;;  %3426 = vmatprep.subr.bf16.mxu1 %v3854_v17  ;;  %v366_v51 = vmax.f32 %v334_v46, 0.0  ;;  %v298_v61 = vmul.f32 %v3894_v26, %v258_v57  ;;  %v299_v62 = vmul.f32 %v3894_v26, %v259_v59  ;;  %v242_v46 = vld [vmem:[%s3875_s15 + $0x28] sm:$0xff]  ;;  %v263_v53 = vld [vmem:[%s3875_s15 + $0xd0] sm:$0xff] }
  0x22   : > { %420 = vst [vmem:[#allocation2 + $0x148] sm:$0x3] %v3687_v3  ;;  %421 = vst [vmem:[#allocation2 + $0x150] sm:$0xff] %v3687_v3  ;;  %v300_v63 = vmul.f32 %v3894_v26, %v260_v60  ;;  %v317_v0 = vadd.f32 %v3900_v27, %v279_v55  ;;  %v318_v2 = vadd.f32 %v3900_v27, %v280_v56  ;;  %v262_v52 = vld [vmem:[%s3875_s15 + $0xc8] sm:$0xff]  ;;  %v3631_v55 = vld [vmem:[%s5078_s1] sm:$0xff]  }
  0x23   : > { %422 = vst [vmem:[#allocation2 + $0x158] sm:$0xff] %v3687_v3  ;;  %423 = vst [vmem:[#allocation2 + $0x160] sm:$0x3] %v3687_v3  ;;  %v335_v4 = vadd.f32 %v3900_v27, %v297_v58  ;;  %v336_v7 = vadd.f32 %v3900_v27, %v298_v61  ;;  %v337_v9 = vadd.f32 %v3900_v27, %v299_v62  ;;  %v3632_v62 = vld [vmem:[%s5078_s1 + $0x48] sm:$0xff]  }
  0x24   : > { %424 = vst [vmem:[#allocation2 + $0x168] sm:$0xff] %v3687_v3  ;;  %425 = vst [vmem:[#allocation2 + $0x170] sm:$0xff] %v3687_v3  ;;  %2880 = vmatpush3.bf16.msra.mxu0 %v3623_v18  ;;  %3434 = vmatpush3.bf16.msra.mxu1 %v3854_v17  ;;  %v338_v10 = vadd.f32 %v3900_v27, %v300_v63  ;;  %v349_v12 = vmax.f32 %v317_v0, 0.0  ;;  %v350_v13 = vmax.f32 %v318_v2, 0.0 }
  0x25   : > { %426 = vst [vmem:[#allocation2 + $0x178] sm:$0x3] %v3687_v3  ;;  %427 = vst [vmem:[#allocation2 + $0x180] sm:$0xff] %v3687_v3  ;;  %2881 = vmatprep.subr.bf16.mxu0 %v3624_v19  ;;  %3427 = vmatprep.subr.bf16.mxu1 %v3868_v20  ;;  %v367_v15 = vmax.f32 %v335_v4, 0.0  ;;  %v368_v16 = vmax.f32 %v336_v7, 0.0  ;;  %v369_v18 = vmax.f32 %v337_v9, 0.0  ;;  %v282_v56 = vmul.f32 %v3894_v26, %v242_v46 }
  0x26   : > { %428 = vst [vmem:[#allocation2 + $0x188] sm:$0xff] %v3687_v3  ;;  %429 = vst [vmem:[#allocation2 + $0x190] sm:$0x3] %v3687_v3  ;;  %v370_v19 = vmax.f32 %v338_v10, 0.0  ;;  %v302_v63 = vmul.f32 %v3894_v26, %v262_v52 }
  0x27   : > { %432 = vst [vmem:[#allocation2 + $0x1a8] sm:$0x3] %v3687_v3  ;;  %434 = vst [vmem:[#allocation2 + $0x19] sm:$0xff] %v347_v43  ;;  %v320_v9 = vadd.f32 %v3900_v27, %v282_v56  ;;  %v3635_v56 = vld [vmem:[%s5078_s1 + $0x10] sm:$0xff]  }
  0x28   : > { %2882 = vmatpush3.bf16.msra.mxu0 %v3626_v21  ;;  %3435 = vmatpush3.bf16.msra.mxu1 %v3868_v20  ;;  %435 = vst [vmem:[#allocation2 + $0x21] sm:$0xff] %v348_v44  ;;  %450 = vst [vmem:[#allocation2 + $0xd9] sm:$0xff] %v363_v48  ;;  %v241_v21 = vld [vmem:[%s3875_s15 + $0x20] sm:$0xff] }
  0x29   : > { %2883 = vmatprep.subr.bf16.mxu0 %v3627_v22  ;;  %3428 = vmatprep.subr.bf16.mxu1 %v3886_v23  ;;  %451 = vst [vmem:[#allocation2 + $0xe1] sm:$0xff] %v364_v49  ;;  %452 = vst [vmem:[#allocation2 + $0xf1] sm:$0xff] %v365_v50  ;;  %v281_v25 = vmul.f32 %v3894_v26, %v241_v21 }
  0x2a   : > { %453 = vst [vmem:[#allocation2 + $0xf9] sm:$0xff] %v366_v51  ;;  %436 = vst [vmem:[#allocation2 + $0x31] sm:$0xff] %v349_v12  ;;  %v303_v12 = vmul.f32 %v3894_v26, %v263_v53 }
  0x2b   : > { %437 = vst [vmem:[#allocation2 + $0x39] sm:$0xff] %v350_v13  ;;  %454 = vst [vmem:[#allocation2 + $0x109] sm:$0xff] %v367_v15  ;;  %v3633_v13 = vld [vmem:[%s5078_s1 + $0x8] sm:$0xff]  }
  0x2c   : > { %2884 = vmatpush3.bf16.msra.mxu0 %v3629_v40  ;;  %3436 = vmatpush3.bf16.msra.mxu1 %v3886_v23  ;;  %455 = vst [vmem:[#allocation2 + $0x111] sm:$0xff] %v368_v16  ;;  %456 = vst [vmem:[#allocation2 + $0x121] sm:$0xff] %v369_v18  ;;  %v319_v40 = vadd.f32 %v3900_v27, %v281_v25 }
  0x2d   : > { %3277 = vmatprep.subr.bf16.mxu0 %v3733_v1  ;;  %3005 = vmatprep.subr.bf16.mxu1 %v3630_v47  ;;  %457 = vst [vmem:[#allocation2 + $0x129] sm:$0xff] %v370_v19  ;;  %v261_v47 = vld [vmem:[%s3875_s15 + $0xc0] sm:$0xff] }
  0x2e   : > { %v3950_v22 = vld [vmem:[#allocation2 + $0x18] sm:$0xff]  ;;  %v351_v57 = vmax.f32 %v319_v40, 0.0  ;;  %v301_v58 = vmul.f32 %v3894_v26, %v261_v47 }
  0x2f   : > { %v3952_v24 = vld [vmem:[#allocation2 + $0x20] sm:$0xff]  ;;  %v3954_v3 = vld [vmem:[#allocation2 + $0x28] sm:$0x3]  ;;  %v574_v28 = vrot.slane %v3950_v22, 1  ;;  %v3961_v32 = vld [vmem:[#allocation2 + $0xd8] sm:$0xff] }
  0x30   : > { %v575_v29 = vrot.slane %v3952_v24, 1  ;;  %v577_v30 = vrot.slane %v3954_v3, 1  ;;  %v3963_v33 = vld [vmem:[#allocation2 + $0xe0] sm:$0xff]  ;;  %v3965_v34 = vld [vmem:[#allocation2 + $0xe8] sm:$0x3]  ;;  %v727_v35 = vrot.slane %v3961_v32, 2  ;;  %v3971_v37 = vpack.c.bf16 %v3952_v24, %v3950_v22 }
  0x31   : > { %v728_v36 = vrot.slane %v3963_v33, 2  ;;  %v3973_v38 = vld [vmem:[#allocation2 + $0xf0] sm:$0xff]  ;;  %v3975_v39 = vld [vmem:[#allocation2 + $0xf8] sm:$0xff]  ;;  %v730_v43 = vrot.slane %v3965_v34, 2  ;;  %v3981_v44 = vld [vmem:[#allocation2 + $0x100] sm:$0x3]  ;;  %v339_v10 = vadd.f32 %v3900_v27, %v301_v58  ;;  %v340_v58 = vadd.f32 %v3900_v27, %v302_v63 }
  0x32   : > { %v576_v41 = vsel %vm568_vm0, %v574_v28, %v575_v29  ;;  %v578_v42 = vsel %vm568_vm0, %v575_v29, %v577_v30  ;;  %v732_v45 = vrot.slane %v3973_v38, 2  ;;  %v733_v50 = vrot.slane %v3975_v39, 2  ;;  %v4011_v2 = vld [vmem:[#allocation2 + $0x30] sm:$0xff]  ;;  %v4013_v4 = vld [vmem:[#allocation2 + $0x38] sm:$0xff]  ;;  %v4015_v7 = vld [vmem:[#allocation2 + $0x40] sm:$0x3] }
  0x33   : > { %v3986_v48 = vpack.c.bf16 %v578_v42, %v576_v41  ;;  %v729_v49 = vsel %vm681_vm1, %v727_v35, %v728_v36  ;;  %v735_v51 = vrot.slane %v3981_v44, 2  ;;  %v731_v54 = vsel %vm681_vm1, %v728_v36, %v730_v43  ;;  %438 = vst [vmem:[#allocation2 + $0x49] sm:$0xff] %v351_v57  ;;  %v4029_v21 = vld [vmem:[#allocation2 + $0x108] sm:$0xff]  ;;  %v4031_v25 = vld [vmem:[#allocation2 + $0x110] sm:$0xff]  ;;  %v264_v28 = vld [vmem:[%s3875_s15 + $0xd8] sm:$0xff] }
  0x34   : > { %v4000_v59 = vpack.c.bf16 %v731_v54, %v729_v49  ;;  %v734_v60 = vsel %vm681_vm1, %v732_v45, %v733_v50  ;;  %v579_v15 = vrot.slane %v4011_v2, 1  ;;  %v580_v16 = vrot.slane %v4013_v4, 1  ;;  %v4037_v30 = vld [vmem:[#allocation2 + $0x118] sm:$0x3]  ;;  %v4049_v45 = vld [vmem:[#allocation2 + $0x120] sm:$0xff]  ;;  %v4051_v46 = vld [vmem:[#allocation2 + $0x128] sm:$0xff] }
  0x35   : > { %1135 = vmatprep.mubr.bf16.mxu0 %v3986_v48  ;;  %v736_v61 = vsel %vm681_vm1, %v733_v50, %v735_v51  ;;  %v582_v18 = vrot.slane %v4015_v7, 1  ;;  %v737_v35 = vrot.slane %v4029_v21, 2  ;;  %v738_v36 = vrot.slane %v4031_v25, 2  ;;  %v4053_v47 = vld [vmem:[#allocation2 + $0x130] sm:$0x3] }
  0x36   : > { %5112 = vst [vmem:[#allocation3_spill] sm:$0xff] %v4000_v59  ;;  %1136 = vmatmul.mubr.bf16.vlgmr.msra.gmra.mrb[0].mxu0 %v3971_v37  ;;  %v4009_v0 = vpack.c.bf16 %v736_v61, %v734_v60  ;;  %3309 = vmatprep.mubr.bf16.mxu1 %v4000_v59  ;;  %v581_v40 = vsel %vm568_vm0, %v579_v15, %v580_v16  ;;  %v740_v42 = vrot.slane %v4037_v30, 2  ;;  %v742_v51 = vrot.slane %v4049_v45, 2 }
  0x37   : > { %3278 = vmatpush3.bf16.msra.mxu0 %v3733_v1  ;;  %v583_v41 = vsel %vm568_vm0, %v580_v16, %v582_v18  ;;  %v4047_v43 = vpack.c.bf16 %v4013_v4, %v4011_v2  ;;  %v739_v50 = vsel %vm681_vm1, %v737_v35, %v738_v36  ;;  %v743_v52 = vrot.slane %v4051_v46, 2  ;;  %v244_v18 = vld [vmem:[%s3875_s15 + $0x38] sm:$0xff] }
  0x38   : > { %5113 = vst [vmem:[#allocation4_spill] sm:$0xff] %v4009_v0  ;;  %3310 = vmatmul.mubr.bf16.vlgmr.msra.gmra.mrb[0].mxu1 %v4009_v0  ;;  %3279 = vmatprep.subr.bf16.mxu0 %v3797_v5  ;;  %v4055_v49 = vpack.c.bf16 %v583_v41, %v581_v40  ;;  %v741_v53 = vsel %vm681_vm1, %v738_v36, %v740_v42  ;;  %v745_v54 = vrot.slane %v4053_v47, 2  ;;  %v352_v57 = vmax.f32 %v320_v9, 0.0  ;;  %v243_v9 = vld [vmem:[%s3875_s15 + $0x30] sm:$0xff]  ;;  %v266_v41 = vld [vmem:[%s3875_s15 + $0xe8] sm:$0xff] }
  0x39   : > { %3006 = vmatpush3.bf16.msra.mxu1 %v3631_v55  ;;  %5114 = vst [vmem:[#allocation5_spill] sm:$0xff] %v4047_v43  ;;  %v3634_v55 = vld [vmem:[%s5078_s1 + $0x50] sm:$0xff]   ;;  %v4071_v60 = vpack.c.bf16 %v741_v53, %v739_v50  ;;  %v744_v61 = vsel %vm681_vm1, %v742_v51, %v743_v52  ;;  %v371_v15 = vmax.f32 %v339_v10, 0.0  ;;  %v304_v16 = vmul.f32 %v3894_v26, %v264_v28  ;;  %v265_v10 = vld [vmem:[%s3875_s15 + $0xe0] sm:$0xff] }
  0x3a   : > { %3007 = vmatprep.subr.bf16.mxu1 %v3632_v62  ;;  %1143 = vmatprep.mubr.bf16.mxu0 %v4055_v49  ;;  %v3636_v62 = vld [vmem:[%s5078_s1 + $0x58] sm:$0xff]   ;;  %439 = vst [vmem:[#allocation2 + $0x51] sm:$0xff] %v352_v57  ;;  %v4082_v63 = vld [vmem:[#allocation2 + $0x48] sm:$0xff]  ;;  %v372_v35 = vmax.f32 %v340_v58, 0.0  ;;  %v341_v36 = vadd.f32 %v3900_v27, %v303_v12  ;;  %v283_v40 = vmul.f32 %v3894_v26, %v243_v9  ;;  %v267_v51 = vld [vmem:[%s3875_s15 + $0xf0] sm:$0xff] }
  0x3b   : > { %3280 = vmatpush3.bf16.msra.mxu0 %v3797_v5  ;;  %5115 = vst [vmem:[#allocation6_spill] sm:$0xff] %v4071_v60  ;;  %v746_v5 = vsel %vm681_vm1, %v743_v52, %v745_v54  ;;  %3313 = vmatprep.mubr.bf16.mxu1 %v4071_v60  ;;  %458 = vst [vmem:[#allocation2 + $0x139] sm:$0xff] %v371_v15  ;;  %v342_v42 = vadd.f32 %v3900_v27, %v304_v16  ;;  %v268_v52 = vld [vmem:[%s3875_s15 + $0xf8] sm:$0xff] }
  0x3c   : > { %3281 = vmatprep.subr.bf16.mxu0 %v3809_v8  ;;  %v4090_v28 = vpack.c.bf16 %v746_v5, %v744_v61  ;;  %v284_v50 = vmul.f32 %v3894_v26, %v244_v18  ;;  %459 = vst [vmem:[#allocation2 + $0x141] sm:$0xff] %v372_v35  ;;  %v373_v12 = vmax.f32 %v341_v36, 0.0  ;;  %v321_v53 = vadd.f32 %v3900_v27, %v283_v40  ;;  %v3637_v16 = vld [vmem:[%s5078_s1 + $0x18] sm:$0xff]  }
  0x3d   : > { %3008 = vmatpush3.bf16.msra.mxu1 %v3633_v13  ;;  %v584_v13 = vrot.slane %v4082_v63, 1  ;;  %v305_v54 = vmul.f32 %v3894_v26, %v265_v10  ;;  %v306_v57 = vmul.f32 %v3894_v26, %v266_v41  ;;  %v374_v58 = vmax.f32 %v342_v42, 0.0  ;;  %v245_v10 = vld [vmem:[%s3875_s15 + $0x40] sm:$0xff] }
  0x3e   : > { %1144 = vmatmul.mubr.bf16.gmra.mrb[4].mxu0 %v4047_v43  ;;  %5116 = vst [vmem:[#allocation7_spill] sm:$0xff] %v4090_v28  ;;  %3009 = vmatprep.subr.bf16.mxu1 %v3634_v55  ;;  %v322_v61 = vadd.f32 %v3900_v27, %v284_v50  ;;  %v307_v15 = vmul.f32 %v3894_v26, %v267_v51  ;;  %460 = vst [vmem:[#allocation2 + $0x151] sm:$0xff] %v373_v12  ;;  %v353_v9 = vmax.f32 %v321_v53, 0.0  ;;  %v3639_v42 = vld [vmem:[%s5078_s1 + $0x20] sm:$0xff]   ;;  %v246_v51 = vld [vmem:[%s3875_s15 + $0x48] sm:$0xff] }
  0x3f   : > { %3282 = vmatpush3.bf16.msra.mxu0 %v3809_v8  ;;  %v308_v55 = vmul.f32 %v3894_v26, %v268_v52  ;;  %v343_v8 = vadd.f32 %v3900_v27, %v305_v54  ;;  %v344_v18 = vadd.f32 %v3900_v27, %v306_v57  ;;  %v4113_v5 = vpack.c.bf16 %v3963_v33, %v3961_v32  ;;  %v4127_v12 = vld [vmem:[#allocation2 + $0x10] sm:$0x3] }
  0x40   : > { %3314 = vmatmul.mubr.bf16.gmra.mrb[4].mxu1 %v4090_v28  ;;  %3283 = vmatprep.subr.bf16.mxu0 %v3822_v11  ;;  %461 = vst [vmem:[#allocation2 + $0x159] sm:$0xff] %v374_v58  ;;  %v354_v35 = vmax.f32 %v322_v61, 0.0  ;;  %v345_v36 = vadd.f32 %v3900_v27, %v307_v15  ;;  %440 = vst [vmem:[#allocation2 + $0x61] sm:$0xff] %v353_v9  ;;  %v285_v52 = vmul.f32 %v3894_v26, %v245_v10  ;;  %v3640_v58 = vld [vmem:[%s5078_s1 + $0x68] sm:$0xff]  }
  0x41   : > { %3010 = vmatpush3.bf16.msra.mxu1 %v3635_v56  ;;  %5117 = vst [vmem:[#allocation8_spill] sm:$0xff] %v4113_v5  ;;  %v3638_v56 = vld [vmem:[%s5078_s1 + $0x60] sm:$0xff]   ;;  %v346_v40 = vadd.f32 %v3900_v27, %v308_v55  ;;  %v375_v50 = vmax.f32 %v343_v8, 0.0  ;;  %5118 = vst [vmem:[#allocation9_spill] sm:$0xff] %v4127_v12  ;;  %v4132_v53 = vpack.c.bf16 %v3975_v39, %v3973_v38  ;;  %v4134_v54 = vld [vmem:[#allocation2 + $0x50] sm:$0xff] }
  0x42   : > { %3011 = vmatprep.subr.bf16.mxu1 %v3636_v62  ;;  %v376_v62 = vmax.f32 %v344_v18, 0.0  ;;  %5120 = vst [vmem:[#allocation11_spill] sm:$0xff] %v4134_v54  ;;  %v4136_v57 = vld [vmem:[#allocation2 + $0x58] sm:$0x3]  ;;  %441 = vst [vmem:[#allocation2 + $0x69] sm:$0xff] %v354_v35  ;;  %v377_v61 = vmax.f32 %v345_v36, 0.0  ;;  %v286_v55 = vmul.f32 %v3894_v26, %v246_v51  ;;  %v4150_v10 = vpack.c.bf16 %v4134_v54, %v4082_v63 }
  0x43   : > { %3284 = vmatpush3.bf16.msra.mxu0 %v3822_v11  ;;  %5119 = vst [vmem:[#allocation10_spill] sm:$0xff] %v4132_v53  ;;  %5121 = vst [vmem:[#allocation12_spill] sm:$0xff] %v4136_v57  ;;  %v378_v15 = vmax.f32 %v346_v40, 0.0  ;;  %v572_v11 = vrot.slane %v4127_v12, 1  ;;  %v585_v9 = vrot.slane %v4134_v54, 1  ;;  %v587_v8 = vrot.slane %v4136_v57, 1 }
  0x44   : > { %3285 = vmatprep.subr.bf16.mxu0 %v3837_v14  ;;  %v4146_v18 = vld [vmem:[#allocation2 + $0x138] sm:$0xff]  ;;  %5122 = vst [vmem:[#allocation13_spill] sm:$0xff] %v4150_v10  ;;  %462 = vst [vmem:[#allocation2 + $0x169] sm:$0xff] %v375_v50  ;;  %v323_v35 = vadd.f32 %v3900_v27, %v285_v52  ;;  %v247_v36 = vld [vmem:[%s3875_s15 + $0x50] sm:$0xff]  ;;  %v324_v29 = vadd.f32 %v3900_v27, %v286_v55 }
  0x45   : > { %3012 = vmatpush3.bf16.msra.mxu1 %v3637_v16  ;;  %463 = vst [vmem:[#allocation2 + $0x171] sm:$0xff] %v376_v62  ;;  %v4154_v40 = vld [vmem:[#allocation2 + $0x140] sm:$0xff]  ;;  %v4156_v16 = vld [vmem:[#allocation2 + $0x148] sm:$0x3]  ;;  %v747_v51 = vrot.slane %v4146_v18, 2  ;;  %464 = vst [vmem:[#allocation2 + $0x181] sm:$0xff] %v377_v61  ;;  %v4162_v50 = vsel %vm568_vm0, %v3944_v6, %v572_v11  ;;  %v287_v62 = vmul.f32 %v3894_v26, %v247_v36 }
  0x46   : > { %3013 = vmatprep.subr.bf16.mxu1 %v3638_v56  ;;  %465 = vst [vmem:[#allocation2 + $0x189] sm:$0xff] %v378_v15  ;;  %v586_v52 = vsel %vm568_vm0, %v584_v13, %v585_v9  ;;  %v588_v19 = vsel %vm568_vm0, %v585_v9, %v587_v8  ;;  %v748_v1 = vrot.slane %v4154_v40, 2  ;;  %v750_v56 = vrot.slane %v4156_v16, 2  ;;  %v3641_v61 = vld [vmem:[%s5078_s1 + $0x28] sm:$0xff]   ;;  %v248_v15 = vld [vmem:[%s3875_s15 + $0x58] sm:$0xff]  ;;  %v249_v55 = vld [vmem:[%s3875_s15 + $0x60] sm:$0xff] }
  0x47   : > { %3286 = vmatpush3.bf16.msra.mxu0 %v3837_v14  ;;  %v4177_v11 = vpack.c.bf16 %v588_v19, %v586_v52  ;;  %v4179_v36 = vld [vmem:[#allocation2 + $0x150] sm:$0xff]  ;;  %v355_v31 = vmax.f32 %v323_v35, 0.0  ;;  %v356_v13 = vmax.f32 %v324_v29, 0.0  ;;  %v250_v8 = vld [vmem:[%s3875_s15 + $0x68] sm:$0xff]  ;;  %v4187_v60 = vld [vmem:[#allocation2 + $0x158] sm:$0xff]  ;;  %v288_v19 = vmul.f32 %v3894_v26, %v248_v15 }
  0x48   : > { %3287 = vmatprep.subr.bf16.mxu0 %v3854_v17  ;;  %v749_v41 = vsel %vm681_vm1, %v747_v51, %v748_v1  ;;  %v751_v28 = vsel %vm681_vm1, %v748_v1, %v750_v56  ;;  %v4189_v0 = vld [vmem:[#allocation2 + $0x160] sm:$0x3]  ;;  %v752_v14 = vrot.slane %v4179_v36, 2  ;;  %v753_v35 = vrot.slane %v4187_v60, 2  ;;  %v3642_v1 = vld [vmem:[%s5078_s1 + $0x70] sm:$0xff]  }
  0x49   : > { %5123 = vst [vmem:[#allocation14_spill] sm:$0xff] %v4177_v11  ;;  %3014 = vmatpush3.bf16.msra.mxu1 %v3639_v42  ;;  %1151 = vmatprep.mubr.bf16.mxu0 %v4177_v11  ;;  %v4194_v29 = vpack.c.bf16 %v751_v28, %v749_v41  ;;  %v755_v52 = vrot.slane %v4189_v0, 2  ;;  %v4198_v51 = vld [vmem:[#allocation2 + $0x60] sm:$0xff]  ;;  %442 = vst [vmem:[#allocation2 + $0x79] sm:$0xff] %v355_v31  ;;  %v325_v42 = vadd.f32 %v3900_v27, %v287_v62  ;;  %v4205_v56 = vld [vmem:[#allocation2 + $0x68] sm:$0xff] }
  0x4a   : > { %3015 = vmatprep.subr.bf16.mxu1 %v3640_v58  ;;  %5125 = vst [vmem:[#allocation16_spill] sm:$0xff] %v4198_v51  ;;  %443 = vst [vmem:[#allocation2 + $0x81] sm:$0xff] %v356_v13  ;;  %1152 = vmatmul.mubr.bf16.gmra.mrb[8].mxu0 %v4150_v10  ;;  %v4207_v28 = vld [vmem:[#allocation2 + $0x70] sm:$0x3]  ;;  %v589_v41 = vrot.slane %v4198_v51, 1  ;;  %v326_v58 = vadd.f32 %v3900_v27, %v288_v19  ;;  %v289_v15 = vmul.f32 %v3894_v26, %v249_v55  ;;  %v3644_v11 = vld [vmem:[%s5078_s1 + $0x78] sm:$0xff]  }
  0x4b   : > { %5124 = vst [vmem:[#allocation15_spill] sm:$0xff] %v4194_v29  ;;  %5126 = vst [vmem:[#allocation17_spill] sm:$0xff] %v4205_v56  ;;  %v290_v9 = vmul.f32 %v3894_v26, %v250_v8  ;;  %3317 = vmatprep.mubr.bf16.mxu1 %v4194_v29  ;;  %v754_v31 = vsel %vm681_vm1, %v752_v14, %v753_v35  ;;  %v756_v62 = vsel %vm681_vm1, %v753_v35, %v755_v52  ;;  %v4218_v12 = vld [vmem:[#allocation2 + $0x168] sm:$0xff]  ;;  %v3643_v29 = vld [vmem:[%s5078_s1 + $0x30] sm:$0xff]  }
  0x4c   : > { %5127 = vst [vmem:[#allocation18_spill] sm:$0xff] %v4207_v28  ;;  %v590_v13 = vrot.slane %v4205_v56, 1  ;;  %v592_v59 = vrot.slane %v4207_v28, 1  ;;  %v4220_v53 = vld [vmem:[#allocation2 + $0x170] sm:$0xff]  ;;  %v4222_v5 = vld [vmem:[#allocation2 + $0x178] sm:$0x3]  ;;  %3288 = vmatpush3.bf16.msra.mxu0 %v3854_v17  ;;  %v4225_v55 = vpack.c.bf16 %v756_v62, %v754_v31  ;;  %v4242_v31 = vpack.c.bf16 %v4205_v56, %v4198_v51 }
  0x4d   : > { %3016 = vmatpush3.bf16.msra.mxu1 %v3641_v61  ;;  %v757_v8 = vrot.slane %v4218_v12, 2  ;;  %v758_v14 = vrot.slane %v4220_v53, 2  ;;  %v760_v19 = vrot.slane %v4222_v5, 2  ;;  %v4230_v35 = vld [vmem:[#allocation2 + $0x180] sm:$0xff]  ;;  %v4232_v52 = vld [vmem:[#allocation2 + $0x188] sm:$0xff]  ;;  %3289 = vmatprep.subr.bf16.mxu0 %v3868_v20  ;;  %v3645_v28 = vld [vmem:[%s5078_s1 + $0x38] sm:$0xff]  }
  0x4e   : > { %5128 = vst [vmem:[#allocation19_spill] sm:$0xff] %v4225_v55  ;;  %v591_v17 = vsel %vm568_vm0, %v589_v41, %v590_v13  ;;  %v593_v61 = vsel %vm568_vm0, %v590_v13, %v592_v59  ;;  %v4244_v62 = vld [vmem:[#allocation2 + $0x190] sm:$0x3]  ;;  %v900_v10 = vrot.slane %v4230_v35, 2  ;;  %3017 = vmatprep.subr.bf16.mxu1 %v3642_v1  ;;  %3318 = vmatmul.mubr.bf16.gmra.mrb[8].mxu1 %v4225_v55  ;;  %v901_v13 = vrot.slane %v4232_v52, 2  ;;  %v252_v55 = vld [vmem:[%s3875_s15 + $0x78] sm:$0xff] }
  0x4f   : > { %v4251_v43 = vpack.c.bf16 %v593_v61, %v591_v17  ;;  %v759_v59 = vsel %vm681_vm1, %v757_v8, %v758_v14  ;;  %v761_v41 = vsel %vm681_vm1, %v758_v14, %v760_v19  ;;  %v251_v56 = vld [vmem:[%s3875_s15 + $0x70] sm:$0xff]  ;;  %v903_v51 = vrot.slane %v4244_v62, 2  ;;  %s4975_s15 = scalar_lea.vmem %s5081_s4, %s2867_s6  ;;  %s2694_s6 = sshll.u32 %s5158_s19, 1 }
  0x50   : > { %v4260_v1 = vpack.c.bf16 %v761_v41, %v759_v59  ;;  %v357_v57 = vmax.f32 %v325_v42, 0.0  ;;  %v358_v54 = vmax.f32 %v326_v58, 0.0  ;;  %3290 = vmatpush3.bf16.msra.mxu0 %v3868_v20  ;;  %v902_v8 = vsel %vm681_vm1, %v900_v10, %v901_v13  ;;  %v4267_v14 = vld [vmem:[#allocation2 + $0x78] sm:$0xff]  ;;  %v4284_v41 = vld [vmem:[%s5078_s1 + $0x80] sm:$0xff]   ;;  %s235_s22 = scalar_lea.vmem %s5082_s5, %s2694_s6 }
  0x51   : > { %1159 = vmatprep.mubr.bf16.mxu0 %v4251_v43  ;;  %3018 = vmatpush3.bf16.msra.mxu1 %v3643_v29  ;;  %v4269_v19 = vld [vmem:[#allocation2 + $0x80] sm:$0xff]  ;;  %v4271_v17 = vld [vmem:[#allocation2 + $0x88] sm:$0x3]  ;;  %v327_v61 = vadd.f32 %v3900_v27, %v289_v15  ;;  %v328_v59 = vadd.f32 %v3900_v27, %v290_v9  ;;  %v615_v42 = vrot.slane %v3963_v33, 1  ;;  %v904_v20 = vsel %vm681_vm1, %v901_v13, %v903_v51 }
  0x52   : > { %5129 = vst [vmem:[#allocation20_spill] sm:$0xff] %v4260_v1  ;;  %3321 = vmatprep.mubr.bf16.mxu1 %v4260_v1  ;;  %3019 = vmatprep.subr.bf16.mxu1 %v3644_v11  ;;  %v594_v10 = vrot.slane %v4267_v14, 1  ;;  %v595_v29 = vrot.slane %v4269_v19, 1  ;;  %v597_v58 = vrot.slane %v4271_v17, 1  ;;  %444 = vst [vmem:[#allocation2 + $0x91] sm:$0xff] %v357_v57  ;;  %v4287_v33 = vpack.c.bf16 %v904_v20, %v902_v8 }
  0x53   : > { %445 = vst [vmem:[#allocation2 + $0x99] sm:$0xff] %v358_v54  ;;  %1160 = vmatmul.mubr.bf16.gmra.mrb[12].mxu0 %v4242_v31  ;;  %v4291_v11 = vpack.c.bf16 %v4269_v19, %v4267_v14  ;;  %v359_v9 = vmax.f32 %v327_v61, 0.0  ;;  %v360_v51 = vmax.f32 %v328_v59, 0.0  ;;  %3291 = vmatprep.subr.bf16.mxu0 %v3886_v23  ;;  %v291_v1 = vmul.f32 %v3894_v26, %v251_v56  ;;  %v3653_v56 = vld [vmem:[%s5078_s1 + $0x1c0] sm:$0xff]  }
  0x54   : > { %5130 = vst [vmem:[#allocation21_spill] sm:$0xff] %v4287_v33  ;;  %v596_v15 = vsel %vm568_vm0, %v594_v10, %v595_v29  ;;  %v598_v13 = vsel %vm568_vm0, %v595_v29, %v597_v58  ;;  %v292_v54 = vmul.f32 %v3894_v26, %v252_v55  ;;  %3292 = vmatpush3.bf16.msra.mxu0 %v3886_v23  ;;  %v5131_v8 = vrot.slane %v3961_v32, 1 }
  0x55   : > { %3020 = vmatpush3.bf16.msra.mxu1 %v3645_v28  ;;  %v4299_v57 = vpack.c.bf16 %v598_v13, %v596_v15  ;;  %446 = vst [vmem:[#allocation2 + $0xa9] sm:$0xff] %v359_v9  ;;  %447 = vst [vmem:[#allocation2 + $0xb1] sm:$0xff] %v360_v51  ;;  %v617_v59 = vrot.slane %v3965_v34, 1  ;;  %v619_v20 = vrot.slane %v3973_v38, 1  ;;  %v329_v23 = vadd.f32 %v3900_v27, %v291_v1 }
  0x56   : > { %v616_v61 = vsel %vm568_vm0, %v5131_v8, %v615_v42  ;;  %3325 = vmatprep.subr.bf16.mxu1 %v4284_v41  ;;  %v330_v26 = vadd.f32 %v3900_v27, %v292_v54  ;;  %v620_v28 = vrot.slane %v3975_v39, 1  ;;  %v622_v32 = vrot.slane %v3981_v44, 1  ;;  %3322 = vmatmul.mubr.bf16.gmra.mrb[12].mxu1 %v4287_v33 }
  0x57   : > { %1167 = vmatprep.mubr.bf16.mxu0 %v4299_v57  ;;  %v618_v34 = vsel %vm568_vm0, %v615_v42, %v617_v59  ;;  %v624_v38 = vrot.slane %v4029_v21, 1  ;;  %v625_v55 = vrot.slane %v4031_v25, 1  ;;  %v627_v10 = vrot.slane %v4037_v30, 1  ;;  %3141 = vmatprep.subr.bf16.mxu0 %v3653_v56 }
  0x58   : > { %v5132_v1 = vpack.c.bf16 %v4162_v50, %v3944_v6  ;;  %v361_v27 = vmax.f32 %v329_v23, 0.0  ;;  %v362_v39 = vmax.f32 %v330_v26, 0.0  ;;  %v4323_v29 = vpack.c.bf16 %v618_v34, %v616_v61 }
  0x59   : > { %v621_v44 = vsel %vm568_vm0, %v619_v20, %v620_v28  ;;  %v4326_v58 = vld [vmem:[#allocation2 + $0x90] sm:$0xff]  ;;  %v623_v51 = vsel %vm568_vm0, %v620_v28, %v622_v32  ;;  %v626_v30 = vsel %vm568_vm0, %v624_v38, %v625_v55  ;;  %v628_v6 = vsel %vm568_vm0, %v625_v55, %v627_v10 }
  0x5a   : > { %1601 = vmatprep.mubr.bf16.mxu1 %v5132_v1  ;;  %v4328_v42 = vld [vmem:[#allocation2 + $0x98] sm:$0xff]  ;;  %v4330_v9 = vld [vmem:[#allocation2 + $0xa0] sm:$0x3]  ;;  %v4337_v50 = vpack.c.bf16 %v4031_v25, %v4029_v21  ;;  %v599_v15 = vrot.slane %v4326_v58, 1  ;;  %448 = vst [vmem:[#allocation2 + $0xc1] sm:$0xff] %v361_v27  ;;  %449 = vst [vmem:[#allocation2 + $0xc9] sm:$0xff] %v362_v39  ;;  %v4347_v61 = vpack.c.bf16 %v623_v51, %v621_v44 }
  0x5b   : > { %v600_v13 = vrot.slane %v4328_v42, 1  ;;  %v602_v54 = vrot.slane %v4330_v9, 1  ;;  %v4344_v8 = vpack.c.bf16 %v4328_v42, %v4326_v58  ;;  %1168 = vmatmul.mubr.bf16.gmra.mrb[16].mxu0 %v4291_v11  ;;  %v4349_v59 = vpack.c.bf16 %v628_v6, %v626_v30  ;;  %v3647_v27 = vld [vmem:[%s5078_s1 + $0x88] sm:$0xff]  }
  0x5c   : > { %v629_v21 = vrot.slane %v4049_v45, 1  ;;  %v630_v25 = vrot.slane %v4051_v46, 1  ;;  %v4355_v23 = vld [vmem:[#allocation2 + $0xa8] sm:$0xff]  ;;  %v4357_v26 = vld [vmem:[#allocation2 + $0xb0] sm:$0xff]  ;;  %v4359_v28 = vld [vmem:[#allocation2 + $0xb8] sm:$0x3]  ;;  %v4364_v34 = vpack.c.bf16 %v4051_v46, %v4049_v45 }
  0x5d   : > { %v601_v20 = vsel %vm568_vm0, %v599_v15, %v600_v13  ;;  %v603_v56 = vsel %vm568_vm0, %v600_v13, %v602_v54  ;;  %v632_v32 = vrot.slane %v4053_v47, 1  ;;  %v604_v55 = vrot.slane %v4355_v23, 1  ;;  %v3648_v54 = vld [vmem:[%s5078_s1 + $0x90] sm:$0xff]  }
  0x5e   : > { %v4366_v38 = vpack.c.bf16 %v603_v56, %v601_v20  ;;  %v605_v10 = vrot.slane %v4357_v26, 1  ;;  %v607_v1 = vrot.slane %v4359_v28, 1  ;;  %v4376_v39 = vpack.c.bf16 %v4357_v26, %v4355_v23 }
  0x5f   : > { %v631_v47 = vsel %vm568_vm0, %v629_v21, %v630_v25  ;;  %v633_v45 = vsel %vm568_vm0, %v630_v25, %v632_v32  ;;  %v634_v46 = vrot.slane %v4146_v18, 1  ;;  %v3688_v44 = vmov 0.0|0.0  }
  0x60   : > { %1602 = vmatmul.mubr.bf16.vlgmr.msra.gmra.mrb[16].mxu1 %v3688_v44  ;;  %1175 = vmatprep.mubr.bf16.mxu0 %v4366_v38  ;;  %v606_v51 = vsel %vm568_vm0, %v604_v55, %v605_v10  ;;  %v608_v30 = vsel %vm568_vm0, %v605_v10, %v607_v1  ;;  %v4384_v6 = vpack.c.bf16 %v633_v45, %v631_v47  ;;  %v635_v15 = vrot.slane %v4154_v40, 1 }
  0x61   : > { %3326 = vmatpush3.bf16.msra.mxu1 %v4284_v41  ;;  %1609 = vmatprep.mubr.bf16.mxu1 %v3986_v48  ;;  %v4389_v13 = vpack.c.bf16 %v608_v30, %v606_v51  ;;  %v637_v21 = vrot.slane %v4156_v16, 1  ;;  %v4397_v25 = vpack.c.bf16 %v4154_v40, %v4146_v18  ;;  %v639_v20 = vrot.slane %v4179_v36, 1  ;;  %v4400_v56 = vld [vmem:[#allocation2 + $0xc0] sm:$0xff]  ;;  %v4402_v41 = vld [vmem:[#allocation2 + $0xc8] sm:$0xff]  ;;  %v4404_v48 = vld [vmem:[#allocation2 + $0xd0] sm:$0x3] }
  0x62   : > { %3327 = vmatprep.subr.bf16.mxu1 %v3647_v27  ;;  %v636_v32 = vsel %vm568_vm0, %v634_v46, %v635_v15  ;;  %v640_v55 = vrot.slane %v4187_v60, 1  ;;  %v642_v10 = vrot.slane %v4189_v0, 1  ;;  %v4411_v16 = vpack.c.bf16 %v4187_v60, %v4179_v36 }
  0x63   : > { %v609_v18 = vrot.slane %v4400_v56, 1  ;;  %v610_v40 = vrot.slane %v4402_v41, 1  ;;  %v612_v1 = vrot.slane %v4404_v48, 1  ;;  %v4418_v47 = vpack.c.bf16 %v4402_v41, %v4400_v56  ;;  %1176 = vmatmul.mubr.bf16.gmra.mrb[20].mxu0 %v4344_v8 }
  0x64   : > { %v638_v45 = vsel %vm568_vm0, %v635_v15, %v637_v21  ;;  %v641_v0 = vsel %vm568_vm0, %v639_v20, %v640_v55  ;;  %v643_v46 = vsel %vm568_vm0, %v640_v55, %v642_v10  ;;  %v644_v60 = vrot.slane %v4218_v12, 1  ;;  %1183 = vmatprep.mubr.bf16.mxu0 %v4389_v13  ;;  %v3649_v15 = vld [vmem:[%s5078_s1 + $0x98] sm:$0xff]  }
  0x65   : > { %3328 = vmatpush3.bf16.msra.mxu1 %v3647_v27  ;;  %v611_v36 = vsel %vm568_vm0, %v609_v18, %v610_v40  ;;  %v613_v44 = vsel %vm568_vm0, %v610_v40, %v612_v1  ;;  %v4428_v51 = vpack.c.bf16 %v638_v45, %v636_v32  ;;  %v645_v30 = vrot.slane %v4220_v53, 1 }
  0x66   : > { %v4431_v33 = vpack.c.bf16 %v613_v44, %v611_v36  ;;  %3329 = vmatprep.subr.bf16.mxu1 %v3648_v54  ;;  %v4436_v21 = vpack.c.bf16 %v643_v46, %v641_v0  ;;  %v647_v20 = vrot.slane %v4222_v5, 1  ;;  %v4441_v27 = vpack.c.bf16 %v4220_v53, %v4218_v12  ;;  %v3650_v53 = vld [vmem:[%s5078_s1 + $0xa0] sm:$0xff]  }
  0x67   : > { %v646_v32 = vsel %vm568_vm0, %v644_v60, %v645_v30  ;;  %v893_v55 = vrot.slane %v4230_v35, 1  ;;  %v894_v10 = vrot.slane %v4232_v52, 1  ;;  %v896_v18 = vrot.slane %v4244_v62, 1 }
  0x68   : > { %1610 = vmatmul.mubr.bf16.gmra.mrb[20].mxu1 %v3971_v37  ;;  %v648_v40 = vsel %vm568_vm0, %v645_v30, %v647_v20  ;;  %v4451_v1 = vpack.c.bf16 %v4232_v52, %v4230_v35  ;;  %v687_v5 = vrot.slane %v3950_v22, 2  ;;  %v688_v12 = vrot.slane %v3952_v24, 2  ;;  %v5138_v20 = vld [vmem:[#allocation11_spill] sm:$0xff] }
  0x69   : > { %1617 = vmatprep.mubr.bf16.mxu1 %v4055_v49  ;;  %3330 = vmatpush3.bf16.msra.mxu1 %v3648_v54  ;;  %v4459_v62 = vpack.c.bf16 %v648_v40, %v646_v32  ;;  %v895_v37 = vsel %vm568_vm0, %v893_v55, %v894_v10  ;;  %v897_v45 = vsel %vm568_vm0, %v894_v10, %v896_v18  ;;  %v697_v35 = vrot.slane %v4082_v63, 2  ;;  %v5139_v55 = vld [vmem:[#allocation12_spill] sm:$0xff]  ;;  %v5141_v40 = vld [vmem:[#allocation17_spill] sm:$0xff] }
  0x6a   : > { %3331 = vmatprep.subr.bf16.mxu1 %v3649_v15  ;;  %v4464_v52 = vpack.c.bf16 %v897_v45, %v895_v37  ;;  %v689_v22 = vsel %vm681_vm1, %v687_v5, %v688_v12  ;;  %v5133_v24 = vrot.slane %v3954_v3, 2  ;;  %v5134_v0 = vrot.slane %v4013_v4, 2  ;;  %v5140_v18 = vld [vmem:[#allocation16_spill] sm:$0xff] }
  0x6b   : > { %v5135_v46 = vrot.slane %v4011_v2, 2  ;;  %v5136_v44 = vrot.slane %v4015_v7, 2  ;;  %v698_v32 = vrot.slane %v5138_v20, 2  ;;  %v700_v3 = vrot.slane %v5139_v55, 2  ;;  %1184 = vmatmul.mubr.bf16.gmra.mrb[24].mxu0 %v4376_v39  ;;  %v5144_v55 = vld [vmem:[#allocation14_spill] sm:$0xff] }
  0x6c   : > { %v691_v54 = vsel %vm681_vm1, %v688_v12, %v5133_v24  ;;  %v5137_v63 = vmov %v5134_v0  ;;  %v702_v2 = vrot.slane %v5140_v18, 2  ;;  %v703_v5 = vrot.slane %v5141_v40, 2  ;;  %v5142_v12 = vld [vmem:[#allocation18_spill] sm:$0xff]  ;;  %1191 = vmatprep.mubr.bf16.mxu0 %v4431_v33 }
  0x6d   : > { %v694_v60 = vsel %vm681_vm1, %v5135_v46, %v5134_v0  ;;  %v4475_v36 = vpack.c.bf16 %v691_v54, %v689_v22  ;;  %v696_v30 = vsel %vm681_vm1, %v5137_v63, %v5136_v44  ;;  %v705_v37 = vrot.slane %v5142_v12, 2  ;;  %3332 = vmatpush3.bf16.msra.mxu1 %v3649_v15  ;;  %v3651_v24 = vld [vmem:[%s5078_s1 + $0xa8] sm:$0xff]   ;;  %v5143_v44 = vld [vmem:[#allocation5_spill] sm:$0xff]  ;;  %v3652_v63 = vld [vmem:[%s5078_s1 + $0xb0] sm:$0xff]  }
  0x6e   : > { %v4485_v10 = vpack.c.bf16 %v696_v30, %v694_v60  ;;  %v699_v4 = vsel %vm681_vm1, %v697_v35, %v698_v32  ;;  %v701_v7 = vsel %vm681_vm1, %v698_v32, %v700_v3  ;;  %v707_v45 = vrot.slane %v4267_v14, 2  ;;  %3333 = vmatprep.subr.bf16.mxu1 %v3650_v53 }
  0x6f   : > { %v708_v22 = vrot.slane %v4269_v19, 2  ;;  %v4498_v54 = vpack.c.bf16 %v701_v7, %v699_v4  ;;  %v704_v0 = vsel %vm681_vm1, %v702_v2, %v703_v5  ;;  %v706_v46 = vsel %vm681_vm1, %v703_v5, %v705_v37  ;;  %v4545_v37 = vld [vmem:[%s5078_s1 + $0x200] sm:$0xff]   ;;  %v5146_v4 = vld [vmem:[#allocation8_spill] sm:$0xff]  ;;  %v5147_v7 = vld [vmem:[#allocation10_spill] sm:$0xff] }
  0x70   : > { %v710_v15 = vrot.slane %v4271_v17, 2  ;;  %v4503_v35 = vpack.c.bf16 %v706_v46, %v704_v0  ;;  %v712_v14 = vrot.slane %v4326_v58, 2  ;;  %v713_v19 = vrot.slane %v4328_v42, 2  ;;  %1618 = vmatmul.mubr.bf16.gmra.mrb[24].mxu1 %v5143_v44  ;;  %v3657_v0 = vld [vmem:[%s5078_s1 + $0x1d0] sm:$0xff]  }
  0x71   : > { %v709_v60 = vsel %vm681_vm1, %v707_v45, %v708_v22  ;;  %v715_v20 = vrot.slane %v4330_v9, 2  ;;  %v717_v17 = vrot.slane %v4355_v23, 2  ;;  %v718_v32 = vrot.slane %v4357_v26, 2  ;;  %1625 = vmatprep.mubr.bf16.mxu1 %v5144_v55  ;;  %3334 = vmatpush3.bf16.msra.mxu1 %v3650_v53  ;;  %v3654_v45 = vld [vmem:[%s5078_s1 + $0x180] sm:$0xff]   ;;  %v3658_v46 = vld [vmem:[%s5078_s1 + $0x190] sm:$0xff]  }
  0x72   : > { %v711_v30 = vsel %vm681_vm1, %v708_v22, %v710_v15  ;;  %v714_v42 = vsel %vm681_vm1, %v712_v14, %v713_v19  ;;  %v720_v3 = vrot.slane %v4359_v28, 2  ;;  %v722_v18 = vrot.slane %v4400_v56, 2  ;;  %3335 = vmatprep.subr.bf16.mxu1 %v3651_v24  ;;  %v3655_v22 = vld [vmem:[%s5078_s1 + $0x1c8] sm:$0xff]   ;;  %v3659_v15 = vld [vmem:[%s5078_s1 + $0x1d8] sm:$0xff]   ;;  %v3662_v14 = vld [vmem:[%s5078_s1 + $0x1e0] sm:$0xff]  }
  0x73   : > { %v4517_v58 = vpack.c.bf16 %v711_v30, %v709_v60  ;;  %v716_v2 = vsel %vm681_vm1, %v713_v19, %v715_v20  ;;  %v719_v9 = vsel %vm681_vm1, %v717_v17, %v718_v32  ;;  %v723_v23 = vrot.slane %v4402_v41, 2  ;;  %1192 = vmatmul.mubr.bf16.gmra.mrb[28].mxu0 %v4418_v47  ;;  %v3661_v41 = vld [vmem:[%s5078_s1 + $0xb8] sm:$0xff]   ;;  %v3663_v19 = vld [vmem:[%s5078_s1 + $0x1a0] sm:$0xff]   ;;  %v3665_v30 = vld [vmem:[%s5078_s1 + $0x1a8] sm:$0xff]  }
  0x74   : > { %v725_v26 = vrot.slane %v4404_v48, 2  ;;  %v4526_v40 = vpack.c.bf16 %v716_v2, %v714_v42  ;;  %v721_v53 = vsel %vm681_vm1, %v718_v32, %v720_v3  ;;  %1199 = vmatprep.mubr.bf16.mxu0 %v4323_v29  ;;  %v5145_v48 = vld [vmem:[#allocation13_spill] sm:$0xff]  ;;  %v3660_v60 = vld [vmem:[%s5078_s1 + $0x198] sm:$0xff]   ;;  %v3666_v20 = vld [vmem:[%s5078_s1 + $0x1f0] sm:$0xff]  }
  0x75   : > { %v4530_v5 = vpack.c.bf16 %v721_v53, %v719_v9  ;;  %v724_v28 = vsel %vm681_vm1, %v722_v18, %v723_v23  ;;  %3336 = vmatpush3.bf16.msra.mxu1 %v3651_v24  ;;  %v3656_v24 = vld [vmem:[%s5078_s1 + $0x188] sm:$0xff]   ;;  %v4626_v17 = vld [vmem:[#allocation2] sm:$0xff]  ;;  %v3667_v18 = vld [vmem:[%s5078_s1 + $0x1b0] sm:$0xff]  }
  0x76   : > { %v726_v56 = vsel %vm681_vm1, %v723_v23, %v725_v26  ;;  %3337 = vmatprep.subr.bf16.mxu1 %v3652_v63  ;;  %v4629_v32 = vrot.slane %v4626_v17, 2  ;;  %v5148_v42 = vld [vmem:[#allocation9_spill] sm:$0xff]  ;;  %v3668_v2 = vld [vmem:[%s5078_s1 + $0x1f8] sm:$0xff]   ;;  %v3671_v53 = vld [vmem:[%s5078_s1 + $0x208] sm:$0xff]  }
  0x77   : > { %v4535_v12 = vpack.c.bf16 %v726_v56, %v724_v28  ;;  %v685_v3 = vrot.slane %v5148_v42, 2  ;;  %v3669_v23 = vld [vmem:[%s5078_s1 + $0x1b8] sm:$0xff]   ;;  %v5152_v28 = vld [vmem:[#allocation7_spill] sm:$0xff] }
  0x78   : > { %1626 = vmatmul.mubr.bf16.gmra.mrb[28].mxu1 %v5145_v48 }
  0x79   : > { %1633 = vmatprep.mubr.bf16.mxu1 %v4251_v43  ;;  %3338 = vmatpush3.bf16.msra.mxu1 %v3652_v63  ;;  %v3664_v63 = vld [vmem:[%s5078_s1 + $0x1e8] sm:$0xff]   ;;  %v686_v9 = vsel %vm681_vm1, %v4629_v32, %v685_v3 }
  0x7a   : > { %3339 = vmatprep.subr.bf16.mxu1 %v3661_v41  ;;  %v796_v26 = vpack.c.bf16 %v686_v9, %v4629_v32 }
  0x7b   : > { %1200 = vmatmul.mubr.bf16.gmra.mrb[32].mxu0 %v5146_v4 }
  0x7c   : > { %1207 = vmatprep.mubr.bf16.mxu0 %v4347_v61 }
  0x7d   : > { %3340 = vmatpush3.bf16.msra.mxu1 %v3661_v41 }
  0x7e   : > { %3373 = vmatprep.subr.bf16.mxu1 %v4545_v37 }
  0x80   : > { %1634 = vmatmul.mubr.bf16.gmra.mrb[32].mxu1 %v4242_v31 }
  0x81   : > { %1641 = vmatprep.mubr.bf16.mxu1 %v4299_v57 }
  0x83   : > { %1208 = vmatmul.mubr.bf16.gmra.mrb[36].mxu0 %v5147_v7 }
  0x84   : > { %1215 = vmatprep.mubr.bf16.mxu0 %v4349_v59 }
  0x88   : > { %1642 = vmatmul.mubr.bf16.gmra.mrb[36].mxu1 %v4291_v11 }
  0x89   : > { %1649 = vmatprep.mubr.bf16.mxu1 %v4366_v38 }
  0x8b   : > { %1216 = vmatmul.mubr.bf16.gmra.mrb[40].mxu0 %v4337_v50 }
  0x8c   : > { %1223 = vmatprep.mubr.bf16.mxu0 %v4384_v6 }
  0x90   : > { %1650 = vmatmul.mubr.bf16.gmra.mrb[40].mxu1 %v4344_v8 }
  0x91   : > { %1657 = vmatprep.mubr.bf16.mxu1 %v4389_v13 }
  0x93   : > { %1224 = vmatmul.mubr.bf16.gmra.mrb[44].mxu0 %v4364_v34 }
  0x94   : > { %1231 = vmatprep.mubr.bf16.mxu0 %v4428_v51 }
  0x98   : > { %1658 = vmatmul.mubr.bf16.gmra.mrb[44].mxu1 %v4376_v39 }
  0x99   : > { %1665 = vmatprep.mubr.bf16.mxu1 %v4431_v33 }
  0x9b   : > { %1232 = vmatmul.mubr.bf16.gmra.mrb[48].mxu0 %v4397_v25 }
  0x9c   : > { %1239 = vmatprep.mubr.bf16.mxu0 %v4436_v21 }
  0xa0   : > { %1666 = vmatmul.mubr.bf16.gmra.mrb[48].mxu1 %v4418_v47 }
  0xa1   : > { %1673 = vmatprep.mubr.bf16.mxu1 %v4323_v29 }
  0xa3   : > { %1240 = vmatmul.mubr.bf16.gmra.mrb[52].mxu0 %v4411_v16 }
  0xa4   : > { %1247 = vmatprep.mubr.bf16.mxu0 %v4459_v62 }
  0xa8   : > { %1674 = vmatmul.mubr.bf16.gmra.mrb[52].mxu1 %v5146_v4 }
  0xa9   : > { %1681 = vmatprep.mubr.bf16.mxu1 %v4347_v61 }
  0xab   : > { %1248 = vmatmul.mubr.bf16.gmra.mrb[56].mxu0 %v4441_v27 }
  0xac   : > { %1255 = vmatprep.mubr.bf16.mxu0 %v4464_v52 }
  0xb0   : > { %1682 = vmatmul.mubr.bf16.gmra.mrb[56].mxu1 %v5147_v7 }
  0xb1   : > { %1689 = vmatprep.mubr.bf16.mxu1 %v4349_v59 }
  0xb3   : > { %1256 = vmatmul.mubr.bf16.gmra.mrb[60].mxu0 %v4451_v1 }
  0xb4   : > { %3293 = vmatprep.mubr.bf16.mxu0 %v4475_v36 }
  0xb8   : > { %1690 = vmatmul.mubr.bf16.gmra.mrb[60].mxu1 %v4337_v50 }
  0xb9   : > { %1697 = vmatprep.mubr.bf16.mxu1 %v4384_v6 }
  0xbb   : > { %3294 = vmatmul.mubr.bf16.vlgmr.msra.gmra.mrb[64].mxu0 %v4485_v10 }
  0xbc   : > { %3142 = vmatpush3.bf16.msra.mxu0 %v3654_v45  ;;  %3297 = vmatprep.mubr.bf16.mxu0 %v4498_v54  ;;  %v5153_v45 = vld [vmem:[#allocation15_spill] sm:$0xff] }
  0xbd   : > { %3143 = vmatprep.subr.bf16.mxu0 %v3655_v22 }
  0xc0   : > { %1698 = vmatmul.mubr.bf16.gmra.mrb[64].mxu1 %v4364_v34  ;;  %3144 = vmatpush3.bf16.msra.mxu0 %v3656_v24 }
  0xc1   : > { %1705 = vmatprep.mubr.bf16.mxu1 %v4428_v51  ;;  %3145 = vmatprep.subr.bf16.mxu0 %v3657_v0 }
  0xc3   : > { %3298 = vmatmul.mubr.bf16.gmra.mrb[68].mxu0 %v4503_v35 }
  0xc4   : > { %3146 = vmatpush3.bf16.msra.mxu0 %v3658_v46  ;;  %3301 = vmatprep.mubr.bf16.mxu0 %v4517_v58 }
  0xc5   : > { %3147 = vmatprep.subr.bf16.mxu0 %v3659_v15  ;;  %v5155_v15 = vld [vmem:[#allocation20_spill] sm:$0xff] }
  0xc8   : > { %1706 = vmatmul.mubr.bf16.gmra.mrb[68].mxu1 %v4397_v25  ;;  %3148 = vmatpush3.bf16.msra.mxu0 %v3660_v60 }
  0xc9   : > { %1713 = vmatprep.mubr.bf16.mxu1 %v4436_v21  ;;  %3149 = vmatprep.subr.bf16.mxu0 %v3662_v14 }
  0xcb   : > { %3302 = vmatmul.mubr.bf16.gmra.mrb[72].mxu0 %v4526_v40 }
  0xcc   : > { %3150 = vmatpush3.bf16.msra.mxu0 %v3663_v19  ;;  %3305 = vmatprep.mubr.bf16.mxu0 %v4530_v5 }
  0xcd   : > { %3151 = vmatprep.subr.bf16.mxu0 %v3664_v63 }
  0xd0   : > { %1714 = vmatmul.mubr.bf16.gmra.mrb[72].mxu1 %v4411_v16  ;;  %3152 = vmatpush3.bf16.msra.mxu0 %v3665_v30 }
  0xd1   : > { %1721 = vmatprep.mubr.bf16.mxu1 %v4459_v62  ;;  %3153 = vmatprep.subr.bf16.mxu0 %v3666_v20 }
  0xd3   : > { %3306 = vmatmul.mubr.bf16.gmra.mrb[76].mxu0 %v4535_v12 }
  0xd4   : > { %3154 = vmatpush3.bf16.msra.mxu0 %v3667_v18  ;;  %2136 = vmatprep.mubr.bf16.mxu0 %v4055_v49  ;;  %v3672_v49 = vld [vmem:[%s5078_s1 + $0x210] sm:$0xff]  }
  0xd5   : > { %3155 = vmatprep.subr.bf16.mxu0 %v3668_v2 }
  0xd8   : > { %1722 = vmatmul.mubr.bf16.gmra.mrb[76].mxu1 %v4441_v27  ;;  %3156 = vmatpush3.bf16.msra.mxu0 %v3669_v23 }
  0xd9   : > { %3341 = vmatprep.mubr.bf16.mxu1 %v796_v26 }
  0xdb   : > { %2137 = vmatmul.mubr.bf16.vlgmr.msra.gmra.mrb[80].mxu0 %v5143_v44  ;;  %v3673_v44 = vld [vmem:[%s5078_s1 + $0x218] sm:$0xff]  }
  0xdc   : > { %2144 = vmatprep.mubr.bf16.mxu0 %v5144_v55  ;;  %v3676_v55 = vld [vmem:[%s5078_s1 + $0x230] sm:$0xff]  }
  0xe0   : > { %3342 = vmatmul.mubr.bf16.vlgmr.msra.gmra.mrb[80].mxu1 %v4475_v36  ;;  %v3674_v36 = vld [vmem:[%s5078_s1 + $0x220] sm:$0xff]  }
  0xe1   : > { %3374 = vmatpush3.bf16.msra.mxu1 %v4545_v37  ;;  %3345 = vmatprep.mubr.bf16.mxu1 %v4485_v10 }
  0xe2   : > { %3375 = vmatprep.subr.bf16.mxu1 %v3671_v53 }
  0xe3   : > { %2145 = vmatmul.mubr.bf16.gmra.mrb[84].mxu0 %v5145_v48 }
  0xe4   : > { %2152 = vmatprep.mubr.bf16.mxu0 %v4251_v43  ;;  %v3675_v43 = vld [vmem:[%s5078_s1 + $0x228] sm:$0xff]  }
  0xe5   : > { %3376 = vmatpush3.bf16.msra.mxu1 %v3671_v53 }
  0xe6   : > { %3377 = vmatprep.subr.bf16.mxu1 %v3672_v49 }
  0xe8   : > { %3346 = vmatmul.mubr.bf16.gmra.mrb[84].mxu1 %v4498_v54 }
  0xe9   : > { %3349 = vmatprep.mubr.bf16.mxu1 %v4503_v35  ;;  %3378 = vmatpush3.bf16.msra.mxu1 %v3672_v49 }
  0xea   : > { %3379 = vmatprep.subr.bf16.mxu1 %v3673_v44 }
  0xeb   : > { %2153 = vmatmul.mubr.bf16.gmra.mrb[88].mxu0 %v4242_v31  ;;  %v3677_v31 = vld [vmem:[%s5078_s1 + $0x238] sm:$0xff]  }
  0xec   : > { %2160 = vmatprep.mubr.bf16.mxu0 %v4299_v57  ;;  %v5150_v57 = vld [vmem:[#allocation4_spill] sm:$0xff] }
  0xed   : > { %3380 = vmatpush3.bf16.msra.mxu1 %v3673_v44 }
  0xee   : > { %3381 = vmatprep.subr.bf16.mxu1 %v3674_v36 }
  0xf0   : > { %3350 = vmatmul.mubr.bf16.gmra.mrb[88].mxu1 %v4517_v58 }
  0xf1   : > { %3353 = vmatprep.mubr.bf16.mxu1 %v4526_v40  ;;  %3382 = vmatpush3.bf16.msra.mxu1 %v3674_v36 }
  0xf2   : > { %3383 = vmatprep.subr.bf16.mxu1 %v3675_v43 }
  0xf3   : > { %2161 = vmatmul.mubr.bf16.gmra.mrb[92].mxu0 %v4291_v11  ;;  %v5149_v11 = vld [vmem:[#allocation3_spill] sm:$0xff] }
  0xf4   : > { %2168 = vmatprep.mubr.bf16.mxu0 %v4366_v38  ;;  %v5151_v38 = vld [vmem:[#allocation6_spill] sm:$0xff] }
  0xf5   : > { %3384 = vmatpush3.bf16.msra.mxu1 %v3675_v43 }
  0xf6   : > { %3385 = vmatprep.subr.bf16.mxu1 %v3676_v55 }
  0xf8   : > { %3354 = vmatmul.mubr.bf16.gmra.mrb[92].mxu1 %v4530_v5 }
  0xf9   : > { %3357 = vmatprep.mubr.bf16.mxu1 %v4535_v12  ;;  %3386 = vmatpush3.bf16.msra.mxu1 %v3676_v55 }
  0xfa   : > { %3387 = vmatprep.subr.bf16.mxu1 %v3677_v31 }
  0xfb   : > { %2169 = vmatmul.mubr.bf16.gmra.mrb[96].mxu0 %v4344_v8 }
  0xfc   : > { %2176 = vmatprep.mubr.bf16.mxu0 %v4389_v13 }
  0xfd   : > { %3388 = vmatpush3.bf16.msra.mxu1 %v3677_v31  ;;  %v519_v31 = vld [vmem:[#allocation2 + $0x1a8] sm:$0x3] }
 0x100   : > { %3358 = vmatmul.mubr.bf16.gmra.mrb[0].mxu1 %v5149_v11 }
 0x101   : > { %3361 = vmatprep.mubr.bf16.mxu1 %v5150_v57 }
 0x103   : > { %2177 = vmatmul.mubr.bf16.gmra.mrb[100].mxu0 %v4376_v39  ;;  %v5154_v39 = vld [vmem:[#allocation19_spill] sm:$0xff] }
 0x104   : > { %2184 = vmatprep.mubr.bf16.mxu0 %v4431_v33 }
 0x108   : > { %3362 = vmatmul.mubr.bf16.gmra.mrb[4].mxu1 %v5151_v38 }
 0x109   : > { %3365 = vmatprep.mubr.bf16.mxu1 %v5152_v28  ;;  %v2885_v56 = vpop.f32.mrb[0].mxu0 }
 0x10a   : > { %v2886_v41 = vpop.f32.mrb[1].mxu0 }
 0x10b   : > { %2185 = vmatmul.mubr.bf16.gmra.mrb[104].mxu0 %v4418_v47  ;;  %v4696_v8 = vadd.f32 %v2886_v41, %v2885_v56  ;;  %v2888_v13 = vpop.f32.mrb[2].mxu0 }
 0x10c   : > { %v2889_v48 = vpop.f32.mrb[3].mxu0  ;;  %2192 = vmatprep.mubr.bf16.mxu0 %v4323_v29 }
 0x10d   : > { %v4699_v37 = vadd.f32 %v2889_v48, %v2888_v13  ;;  %v1897_v13 = vrot.slane %v519_v31, 1 }
 0x110   : > { %3366 = vmatmul.mubr.bf16.gmra.mrb[8].mxu1 %v5153_v45 }
 0x111   : > { %3369 = vmatprep.mubr.bf16.mxu1 %v5154_v39  ;;  %v2891_v33 = vpop.f32.mrb[4].mxu0 }
 0x112   : > { %v2892_v22 = vpop.f32.mrb[5].mxu0 }
 0x113   : > { %2193 = vmatmul.mubr.bf16.gmra.mrb[108].mxu0 %v5146_v4  ;;  %v4704_v24 = vadd.f32 %v2892_v22, %v2891_v33  ;;  %v2894_v0 = vpop.f32.mrb[6].mxu0 }
 0x114   : > { %v2895_v47 = vpop.f32.mrb[7].mxu0  ;;  %2200 = vmatprep.mubr.bf16.mxu0 %v4347_v61 }
 0x115   : > { %v4707_v46 = vadd.f32 %v2895_v47, %v2894_v0 }
 0x118   : > { %3370 = vmatmul.mubr.bf16.gmra.mrb[12].mxu1 %v5155_v15 }
 0x119   : > { %3389 = vmatprep.mubr.bf16.mxu1 %v4485_v10 }
 0x11b   : > { %2201 = vmatmul.mubr.bf16.gmra.mrb[112].mxu0 %v5147_v7 }
 0x11c   : > { %2208 = vmatprep.mubr.bf16.mxu0 %v4349_v59 }
 0x11d   : > { %v2897_v29 = vpop.f32.mrb[8].mxu0 }
 0x11e   : > { %v2898_v4 = vpop.f32.mrb[9].mxu0 }
 0x11f   : > { %v4714_v60 = vadd.f32 %v2898_v4, %v2897_v29  ;;  %v2900_v14 = vpop.f32.mrb[10].mxu0 }
 0x120   : > { %3390 = vmatmul.mubr.bf16.vlgmr.msra.gmra.mrb[80].mxu1 %v4498_v54  ;;  %v2901_v61 = vpop.f32.mrb[11].mxu0 }
 0x121   : > { %3393 = vmatprep.mubr.bf16.mxu1 %v4503_v35  ;;  %v4717_v19 = vadd.f32 %v2901_v61, %v2900_v14 }
 0x123   : > { %2209 = vmatmul.mubr.bf16.gmra.mrb[116].mxu0 %v4337_v50 }
 0x124   : > { %2216 = vmatprep.mubr.bf16.mxu0 %v4384_v6 }
 0x126   : > { %v2903_v10 = vpop.f32.mrb[12].mxu0 }
 0x127   : > { %v2904_v59 = vpop.f32.mrb[13].mxu0 }
 0x128   : > { %3394 = vmatmul.mubr.bf16.gmra.mrb[84].mxu1 %v4517_v58  ;;  %v4722_v7 = vadd.f32 %v2904_v59, %v2903_v10  ;;  %v2906_v54 = vpop.f32.mrb[14].mxu0 }
 0x129   : > { %3397 = vmatprep.mubr.bf16.mxu1 %v4526_v40  ;;  %v2907_v63 = vpop.f32.mrb[15].mxu0 }
 0x12a   : > { %v4725_v30 = vadd.f32 %v2907_v63, %v2906_v54 }
 0x12b   : > { %2217 = vmatmul.mubr.bf16.gmra.mrb[120].mxu0 %v4364_v34 }
 0x12c   : > { %2224 = vmatprep.mubr.bf16.mxu0 %v4428_v51 }
 0x12e   : > { %v2909_v35 = vpop.f32.mrb[16].mxu0 }
 0x12f   : > { %v2910_v50 = vpop.f32.mrb[17].mxu0 }
 0x130   : > { %3398 = vmatmul.mubr.bf16.gmra.mrb[88].mxu1 %v4530_v5  ;;  %v4730_v6 = vadd.f32 %v2910_v50, %v2909_v35  ;;  %v2912_v58 = vpop.f32.mrb[18].mxu0  ;;  %v1904_v50 = vrot.slane %v519_v31, 2 }
 0x131   : > { %3401 = vmatprep.mubr.bf16.mxu1 %v4535_v12  ;;  %v2913_v20 = vpop.f32.mrb[19].mxu0 }
 0x132   : > { %v4733_v3 = vadd.f32 %v2913_v20, %v2912_v58 }
 0x133   : > { %v3021_v42 = vpop.f32.mrb[16].mxu1  ;;  %2225 = vmatmul.mubr.bf16.gmra.mrb[124].mxu0 %v4397_v25 }
 0x134   : > { %v3022_v40 = vpop.f32.mrb[17].mxu1  ;;  %2232 = vmatprep.mubr.bf16.mxu0 %v4436_v21 }
 0x135   : > { %v4736_v18 = vadd.f32 %v3022_v40, %v3021_v42  ;;  %v3024_v34 = vpop.f32.mrb[18].mxu1  ;;  %v1908_v42 = vpack.c.bf16 %v4626_v17, %v4626_v17 }
 0x136   : > { %v3025_v51 = vpop.f32.mrb[19].mxu1  ;;  %v2915_v2 = vpop.f32.mrb[20].mxu0 }
 0x137   : > { %v4739_v5 = vadd.f32 %v3025_v51, %v3024_v34  ;;  %v2916_v9 = vpop.f32.mrb[21].mxu0  ;;  %v5156_v51 = vld [vmem:[#allocation21_spill] sm:$0xff] }
 0x138   : > { %3402 = vmatmul.mubr.bf16.gmra.mrb[92].mxu1 %v5149_v11  ;;  %v4742_v12 = vadd.f32 %v2916_v9, %v2915_v2  ;;  %v2918_v23 = vpop.f32.mrb[22].mxu0 }
 0x139   : > { %3405 = vmatprep.mubr.bf16.mxu1 %v5150_v57  ;;  %v2919_v26 = vpop.f32.mrb[23].mxu0 }
 0x13a   : > { %v4745_v25 = vadd.f32 %v2919_v26, %v2918_v23 }
 0x13b   : > { %v3027_v53 = vpop.f32.mrb[20].mxu1  ;;  %2233 = vmatmul.mubr.bf16.gmra.mrb[128].mxu0 %v4411_v16  ;;  %v1894_v16 = vrot.slane %v4626_v17, 1 }
 0x13c   : > { %v3028_v49 = vpop.f32.mrb[21].mxu1  ;;  %2240 = vmatprep.mubr.bf16.mxu0 %v4459_v62 }
 0x13d   : > { %v4748_v21 = vadd.f32 %v3028_v49, %v3027_v53  ;;  %v3030_v44 = vpop.f32.mrb[22].mxu1  ;;  %v1898_v47 = vsel %vm568_vm0, %v1894_v16, %v1897_v13 }
 0x13e   : > { %v3031_v36 = vpop.f32.mrb[23].mxu1  ;;  %v2921_v55 = vpop.f32.mrb[24].mxu0 }
 0x13f   : > { %v4751_v43 = vadd.f32 %v3031_v36, %v3030_v44  ;;  %v2922_v11 = vpop.f32.mrb[25].mxu0 }
 0x140   : > { %3406 = vmatmul.mubr.bf16.gmra.mrb[0].mxu1 %v5151_v38  ;;  %v4754_v57 = vadd.f32 %v2922_v11, %v2921_v55  ;;  %v2924_v56 = vpop.f32.mrb[26].mxu0 }
 0x141   : > { %3409 = vmatprep.mubr.bf16.mxu1 %v5152_v28  ;;  %v2925_v41 = vpop.f32.mrb[27].mxu0 }
 0x142   : > { %v4758_v33 = vadd.f32 %v2925_v41, %v2924_v56 }
 0x143   : > { %v3033_v48 = vpop.f32.mrb[24].mxu1  ;;  %2241 = vmatmul.mubr.bf16.gmra.mrb[132].mxu0 %v4441_v27  ;;  %v1909_v27 = vpack.c.bf16 %v1898_v47, %v1894_v16 }
 0x144   : > { %v3034_v62 = vpop.f32.mrb[25].mxu1  ;;  %2248 = vmatprep.mubr.bf16.mxu0 %v4464_v52 }
 0x145   : > { %v4761_v22 = vadd.f32 %v3034_v62, %v3033_v48  ;;  %v3036_v0 = vpop.f32.mrb[26].mxu1 }
 0x146   : > { %v3037_v38 = vpop.f32.mrb[27].mxu1  ;;  %v2927_v28 = vpop.f32.mrb[28].mxu0 }
 0x147   : > { %v4765_v29 = vadd.f32 %v3037_v38, %v3036_v0  ;;  %v2928_v4 = vpop.f32.mrb[29].mxu0 }
 0x148   : > { %3410 = vmatmul.mubr.bf16.gmra.mrb[4].mxu1 %v5153_v45  ;;  %v4768_v14 = vadd.f32 %v2928_v4, %v2927_v28  ;;  %v2930_v61 = vpop.f32.mrb[30].mxu0 }
 0x149   : > { %3413 = vmatprep.mubr.bf16.mxu1 %v5154_v39  ;;  %v2931_v10 = vpop.f32.mrb[31].mxu0 }
 0x14a   : > { %v4771_v54 = vadd.f32 %v2931_v10, %v2930_v61 }
 0x14b   : > { %v3039_v59 = vpop.f32.mrb[28].mxu1  ;;  %2249 = vmatmul.mubr.bf16.gmra.mrb[136].mxu0 %v4451_v1  ;;  %v1905_v1 = vsel %vm681_vm1, %v4629_v32, %v1904_v50 }
 0x14c   : > { %v3040_v52 = vpop.f32.mrb[29].mxu1  ;;  %2256 = vmatprep.mubr.bf16.mxu0 %v1909_v27  ;;  %v1910_v53 = vpack.c.bf16 %v1905_v1, %v4629_v32 }
 0x14d   : > { %v4774_v63 = vadd.f32 %v3040_v52, %v3039_v59  ;;  %v3042_v35 = vpop.f32.mrb[30].mxu1 }
 0x14e   : > { %v3043_v45 = vpop.f32.mrb[31].mxu1  ;;  %v2933_v20 = vpop.f32.mrb[32].mxu0 }
 0x14f   : > { %v4776_v58 = vadd.f32 %v3043_v45, %v3042_v35  ;;  %v2934_v39 = vpop.f32.mrb[33].mxu0 }
 0x150   : > { %3414 = vmatmul.mubr.bf16.gmra.mrb[8].mxu1 %v5155_v15  ;;  %v2935_v40 = vadd.f32 %v2934_v39, %v2933_v20  ;;  %v2936_v34 = vpop.f32.mrb[34].mxu0 }
 0x151   : > { %3417 = vmatprep.mubr.bf16.mxu1 %v5156_v51  ;;  %v2937_v2 = vpop.f32.mrb[35].mxu0 }
 0x152   : > { %v2938_v23 = vadd.f32 %v2937_v2, %v2936_v34 }
 0x153   : > { %v3045_v9 = vpop.f32.mrb[32].mxu1  ;;  %2257 = vmatmul.mubr.bf16.gmra.mrb[140].mxu0 %v1908_v42 }
 0x154   : > { %v3046_v26 = vpop.f32.mrb[33].mxu1 }
 0x155   : > { %v4785_v49 = vadd.f32 %v3046_v26, %v3045_v9  ;;  %v3048_v15 = vpop.f32.mrb[34].mxu1 }
 0x156   : > { %v3049_v44 = vpop.f32.mrb[35].mxu1  ;;  %v2939_v17 = vpop.f32.mrb[36].mxu0 }
 0x157   : > { %v4787_v36 = vadd.f32 %v3049_v44, %v3048_v15  ;;  %v2940_v55 = vpop.f32.mrb[37].mxu0 }
 0x158   : > { %3418 = vmatmul.mubr.bf16.gmra.mrb[12].mxu1 %v1910_v53  ;;  %v2941_v31 = vadd.f32 %v2940_v55, %v2939_v17  ;;  %v2942_v11 = vpop.f32.mrb[38].mxu0 }
 0x159   : > { %v2943_v56 = vpop.f32.mrb[39].mxu0 }
 0x15a   : > { %v2944_v16 = vadd.f32 %v2943_v56, %v2942_v11 }
 0x15b   : > { %v3051_v41 = vpop.f32.mrb[36].mxu1 }
 0x15c   : > { %v3052_v13 = vpop.f32.mrb[37].mxu1 }
 0x15d   : > { %v4789_v48 = vadd.f32 %v3052_v13, %v3051_v41  ;;  %v3054_v62 = vpop.f32.mrb[38].mxu1 }
 0x15e   : > { %v3055_v0 = vpop.f32.mrb[39].mxu1  ;;  %v2945_v38 = vpop.f32.mrb[40].mxu0 }
 0x15f   : > { %v4791_v32 = vadd.f32 %v3055_v0, %v3054_v62  ;;  %v2946_v47 = vpop.f32.mrb[41].mxu0 }
 0x160   : > { %v2947_v28 = vadd.f32 %v2946_v47, %v2945_v38  ;;  %v2948_v4 = vpop.f32.mrb[42].mxu0 }
 0x161   : > { %v2949_v61 = vpop.f32.mrb[43].mxu0 }
 0x162   : > { %v2950_v10 = vadd.f32 %v2949_v61, %v2948_v4 }
 0x163   : > { %v3057_v27 = vpop.f32.mrb[40].mxu1 }
 0x164   : > { %v3058_v59 = vpop.f32.mrb[41].mxu1 }
 0x165   : > { %v4793_v52 = vadd.f32 %v3058_v59, %v3057_v27  ;;  %v3060_v35 = vpop.f32.mrb[42].mxu1 }
 0x166   : > { %v3061_v50 = vpop.f32.mrb[43].mxu1  ;;  %v2951_v20 = vpop.f32.mrb[44].mxu0 }
 0x167   : > { %v4795_v45 = vadd.f32 %v3061_v50, %v3060_v35  ;;  %v2952_v39 = vpop.f32.mrb[45].mxu0 }
 0x168   : > { %v4797_v42 = vadd.f32 %v2952_v39, %v2951_v20  ;;  %v2954_v34 = vpop.f32.mrb[46].mxu0 }
 0x169   : > { %v2955_v51 = vpop.f32.mrb[47].mxu0 }
 0x16a   : > { %v4799_v2 = vadd.f32 %v2955_v51, %v2954_v34 }
 0x16b   : > { %v3063_v1 = vpop.f32.mrb[44].mxu1 }
 0x16c   : > { %v3064_v9 = vpop.f32.mrb[45].mxu1 }
 0x16d   : > { %v4801_v26 = vadd.f32 %v3064_v9, %v3063_v1  ;;  %v3066_v53 = vpop.f32.mrb[46].mxu1 }
 0x16e   : > { %v3067_v15 = vpop.f32.mrb[47].mxu1  ;;  %v2957_v17 = vpop.f32.mrb[48].mxu0 }
 0x16f   : > { %v4803_v44 = vadd.f32 %v3067_v15, %v3066_v53  ;;  %v2958_v55 = vpop.f32.mrb[49].mxu0 }
 0x170   : > { %v4805_v11 = vadd.f32 %v2958_v55, %v2957_v17  ;;  %v2960_v56 = vpop.f32.mrb[50].mxu0 }
 0x171   : > { %v2961_v41 = vpop.f32.mrb[51].mxu0 }
 0x172   : > { %v4807_v62 = vadd.f32 %v2961_v41, %v2960_v56 }
 0x173   : > { %v3069_v13 = vpop.f32.mrb[48].mxu1 }
 0x174   : > { %v3070_v0 = vpop.f32.mrb[49].mxu1 }
 0x175   : > { %v3071_v38 = vadd.f32 %v3070_v0, %v3069_v13  ;;  %v3072_v47 = vpop.f32.mrb[50].mxu1 }
 0x176   : > { %v3073_v4 = vpop.f32.mrb[51].mxu1  ;;  %v2963_v59 = vpop.f32.mrb[52].mxu0 }
 0x177   : > { %v4809_v61 = vadd.f32 %v3071_v38, %v2935_v40  ;;  %v3074_v27 = vadd.f32 %v3073_v4, %v3072_v47  ;;  %v2964_v35 = vpop.f32.mrb[53].mxu0 }
 0x178   : > { %v4813_v20 = vadd.f32 %v2964_v35, %v2963_v59  ;;  %v2966_v39 = vpop.f32.mrb[54].mxu0 }
 0x179   : > { %v4811_v50 = vadd.f32 %v3074_v27, %v2938_v23  ;;  %v2967_v34 = vpop.f32.mrb[55].mxu0 }
 0x17a   : > { %v4815_v1 = vadd.f32 %v2967_v34, %v2966_v39 }
 0x17b   : > { %v3075_v51 = vpop.f32.mrb[52].mxu1 }
 0x17c   : > { %v3076_v9 = vpop.f32.mrb[53].mxu1 }
 0x17d   : > { %v3077_v53 = vadd.f32 %v3076_v9, %v3075_v51  ;;  %v3078_v15 = vpop.f32.mrb[54].mxu1 }
 0x17e   : > { %v3079_v17 = vpop.f32.mrb[55].mxu1  ;;  %v2969_v56 = vpop.f32.mrb[56].mxu0 }
 0x17f   : > { %v4817_v55 = vadd.f32 %v3077_v53, %v2941_v31  ;;  %v3080_v40 = vadd.f32 %v3079_v17, %v3078_v15  ;;  %v2970_v41 = vpop.f32.mrb[57].mxu0 }
 0x180   : > { %v4821_v23 = vadd.f32 %v2970_v41, %v2969_v56  ;;  %v2972_v0 = vpop.f32.mrb[58].mxu0 }
 0x181   : > { %v4819_v13 = vadd.f32 %v3080_v40, %v2944_v16  ;;  %v2973_v38 = vpop.f32.mrb[59].mxu0 }
 0x182   : > { %v4823_v4 = vadd.f32 %v2973_v38, %v2972_v0 }
 0x183   : > { %v3081_v47 = vpop.f32.mrb[56].mxu1 }
 0x184   : > { %v3082_v27 = vpop.f32.mrb[57].mxu1 }
 0x185   : > { %v3083_v59 = vadd.f32 %v3082_v27, %v3081_v47  ;;  %v3084_v35 = vpop.f32.mrb[58].mxu1 }
 0x186   : > { %v3085_v39 = vpop.f32.mrb[59].mxu1  ;;  %v2975_v51 = vpop.f32.mrb[60].mxu0 }
 0x187   : > { %v4825_v34 = vadd.f32 %v3083_v59, %v2947_v28  ;;  %v3086_v31 = vadd.f32 %v3085_v39, %v3084_v35  ;;  %v2976_v9 = vpop.f32.mrb[61].mxu0 }
 0x188   : > { %v4829_v16 = vadd.f32 %v2976_v9, %v2975_v51  ;;  %v2978_v15 = vpop.f32.mrb[62].mxu0 }
 0x189   : > { %v4827_v53 = vadd.f32 %v3086_v31, %v2950_v10  ;;  %v2979_v17 = vpop.f32.mrb[63].mxu0 }
 0x18a   : > { %v4831_v56 = vadd.f32 %v2979_v17, %v2978_v15 }
 0x18b   : > { %v3087_v40 = vpop.f32.mrb[60].mxu1 }
 0x18c   : > { %v3088_v41 = vpop.f32.mrb[61].mxu1 }
 0x18d   : > { %v3089_v0 = vadd.f32 %v3088_v41, %v3087_v40  ;;  %v3090_v38 = vpop.f32.mrb[62].mxu1 }
 0x18e   : > { %v3091_v47 = vpop.f32.mrb[63].mxu1  ;;  %v3295_v59 = vpop.f32.mrb[64].mxu0 }
 0x18f   : > { %v4834_v27 = vadd.f32 %v3089_v0, %v4797_v42  ;;  %v3092_v28 = vadd.f32 %v3091_v47, %v3090_v38  ;;  %v1307_v35 = vadd.f32 %v3295_v59, %v4704_v24  ;;  %v1298_v10 = vpop.f32.mrb[65].mxu0 }
 0x190   : > { %v1299_v31 = vadd.f32 %v4696_v8, %v1298_v10  ;;  %v3296_v51 = vpop.f32.mrb[66].mxu0 }
 0x191   : > { %v4838_v39 = vadd.f32 %v3092_v28, %v4799_v2  ;;  %v4842_v9 = vadd.f32 %v4748_v21, %v1307_v35  ;;  %v1310_v15 = vadd.f32 %v3296_v51, %v4707_v46  ;;  %v1301_v17 = vpop.f32.mrb[67].mxu0 }
 0x192   : > { %v4846_v42 = vadd.f32 %v4736_v18, %v1299_v31  ;;  %v1302_v41 = vadd.f32 %v4699_v37, %v1301_v17 }
 0x193   : > { %v3093_v40 = vpop.f32.mrb[64].mxu1  ;;  %v4850_v0 = vadd.f32 %v4751_v43, %v1310_v15 }
 0x194   : > { %v3094_v24 = vpop.f32.mrb[65].mxu1  ;;  %v4853_v8 = vadd.f32 %v4739_v5, %v1302_v41 }
 0x195   : > { %v3095_v2 = vadd.f32 %v3094_v24, %v3093_v40  ;;  %v3096_v38 = vpop.f32.mrb[66].mxu1 }
 0x196   : > { %v3097_v21 = vpop.f32.mrb[67].mxu1  ;;  %v3299_v28 = vpop.f32.mrb[68].mxu0 }
 0x197   : > { %v4856_v47 = vadd.f32 %v3095_v2, %v4805_v11  ;;  %v3098_v46 = vadd.f32 %v3097_v21, %v3096_v38  ;;  %v1323_v18 = vadd.f32 %v3299_v28, %v4722_v7  ;;  %v1314_v59 = vpop.f32.mrb[69].mxu0 }
 0x198   : > { %v1315_v43 = vadd.f32 %v4714_v60, %v1314_v59  ;;  %v3300_v35 = vpop.f32.mrb[70].mxu0 }
 0x199   : > { %v4860_v37 = vadd.f32 %v3098_v46, %v4807_v62  ;;  %v4864_v10 = vadd.f32 %v4774_v63, %v1323_v18  ;;  %v1326_v5 = vadd.f32 %v3300_v35, %v4725_v30  ;;  %v1317_v31 = vpop.f32.mrb[71].mxu0 }
 0x19a   : > { %v4868_v11 = vadd.f32 %v4761_v22, %v1315_v43  ;;  %v1318_v15 = vadd.f32 %v4717_v19, %v1317_v31 }
 0x19b   : > { %v3099_v51 = vpop.f32.mrb[68].mxu1  ;;  %v4872_v17 = vadd.f32 %v4776_v58, %v1326_v5 }
 0x19c   : > { %v3100_v7 = vpop.f32.mrb[69].mxu1  ;;  %v4875_v60 = vadd.f32 %v4765_v29, %v1318_v15 }
 0x19d   : > { %v3101_v62 = vadd.f32 %v3100_v7, %v3099_v51  ;;  %v3102_v40 = vpop.f32.mrb[70].mxu1 }
 0x19e   : > { %v3103_v63 = vpop.f32.mrb[71].mxu1  ;;  %v3303_v24 = vpop.f32.mrb[72].mxu0 }
 0x19f   : > { %v4878_v41 = vadd.f32 %v3101_v62, %v4813_v20  ;;  %v3104_v30 = vadd.f32 %v3103_v63, %v3102_v40  ;;  %v1339_v22 = vadd.f32 %v3303_v24, %v4742_v12  ;;  %v1330_v2 = vpop.f32.mrb[73].mxu0 }
 0x1a0   : > { %v1331_v58 = vadd.f32 %v4730_v6, %v1330_v2  ;;  %v3304_v38 = vpop.f32.mrb[74].mxu0 }
 0x1a1   : > { %v4882_v19 = vadd.f32 %v3104_v30, %v4815_v1  ;;  %v4886_v21 = vadd.f32 %v4789_v48, %v1339_v22  ;;  %v1342_v29 = vadd.f32 %v3304_v38, %v4745_v25  ;;  %v1333_v46 = vpop.f32.mrb[75].mxu0 }
 0x1a2   : > { %v4890_v20 = vadd.f32 %v4785_v49, %v1331_v58  ;;  %v1334_v18 = vadd.f32 %v4733_v3, %v1333_v46 }
 0x1a3   : > { %v3105_v28 = vpop.f32.mrb[72].mxu1  ;;  %v4894_v59 = vadd.f32 %v4791_v32, %v1342_v29 }
 0x1a4   : > { %v3106_v12 = vpop.f32.mrb[73].mxu1  ;;  %v4897_v6 = vadd.f32 %v4787_v36, %v1334_v18 }
 0x1a5   : > { %v3107_v1 = vadd.f32 %v3106_v12, %v3105_v28  ;;  %v3108_v43 = vpop.f32.mrb[74].mxu1 }
 0x1a6   : > { %v3109_v48 = vpop.f32.mrb[75].mxu1  ;;  %v3307_v5 = vpop.f32.mrb[76].mxu0 }
 0x1a7   : > { %v4900_v35 = vadd.f32 %v3107_v1, %v4821_v23  ;;  %v3110_v25 = vadd.f32 %v3109_v48, %v3108_v43  ;;  %v1355_v49 = vadd.f32 %v3307_v5, %v4768_v14  ;;  %v1346_v31 = vpop.f32.mrb[77].mxu0 }
 0x1a8   : > { %v1347_v32 = vadd.f32 %v4754_v57, %v1346_v31  ;;  %v3308_v51 = vpop.f32.mrb[78].mxu0 }
 0x1a9   : > { %v4904_v3 = vadd.f32 %v3110_v25, %v4823_v4  ;;  %v4908_v15 = vadd.f32 %v4801_v26, %v1355_v49  ;;  %v1358_v36 = vadd.f32 %v3308_v51, %v4771_v54  ;;  %v1349_v7 = vpop.f32.mrb[79].mxu0 }
 0x1aa   : > { %v4912_v23 = vadd.f32 %v4793_v52, %v1347_v32  ;;  %v1350_v40 = vadd.f32 %v4758_v33, %v1349_v7 }
 0x1ab   : > { %v3111_v62 = vpop.f32.mrb[76].mxu1  ;;  %v4916_v63 = vadd.f32 %v4803_v44, %v1358_v36 }
 0x1ac   : > { %v3112_v14 = vpop.f32.mrb[77].mxu1  ;;  %v1655_v57 = vadd.f32 %v4795_v45, %v1350_v40 }
 0x1ad   : > { %v3113_v4 = vadd.f32 %v3112_v14, %v3111_v62  ;;  %v3114_v30 = vpop.f32.mrb[78].mxu1 }
 0x1ae   : > { %v3115_v24 = vpop.f32.mrb[79].mxu1  ;;  %v3157_v22 = vpop.f32.mrb[80].mxu0 }
 0x1af   : > { %v4920_v26 = vadd.f32 %v3113_v4, %v4829_v16  ;;  %v3116_v54 = vadd.f32 %v3115_v24, %v3114_v30  ;;  %v3158_v2 = vpop.f32.mrb[81].mxu0 }
 0x1b0   : > { %v3159_v58 = vadd.f32 %v3158_v2, %v3157_v22  ;;  %v3160_v33 = vpop.f32.mrb[82].mxu0 }
 0x1b1   : > { %v4923_v52 = vadd.f32 %v3116_v54, %v4831_v56  ;;  %v3161_v38 = vpop.f32.mrb[83].mxu0 }
 0x1b2   : > { %v3162_v29 = vadd.f32 %v3161_v38, %v3160_v33  ;;  %v4926_v44 = vadd.f32 %v3159_v58, %v4846_v42 }
 0x1b4   : > { %v4929_v46 = vadd.f32 %v3162_v29, %v4853_v8 }
 0x1b6   : > { %v3163_v45 = vpop.f32.mrb[84].mxu0 }
 0x1b7   : > { %v3164_v28 = vpop.f32.mrb[85].mxu0 }
 0x1b8   : > { %v3165_v16 = vadd.f32 %v3164_v28, %v3163_v45  ;;  %v3166_v18 = vpop.f32.mrb[86].mxu0 }
 0x1b9   : > { %v3167_v12 = vpop.f32.mrb[87].mxu0 }
 0x1ba   : > { %v3168_v1 = vadd.f32 %v3167_v12, %v3166_v18  ;;  %v3439_v43 = vadd.f32 %v3165_v16, %v4842_v9 }
 0x1bc   : > { %v4933_v56 = vadd.f32 %v3168_v1, %v4850_v0 }
 0x1be   : > { %v3169_v48 = vpop.f32.mrb[88].mxu0 }
 0x1bf   : > { %v3170_v25 = vpop.f32.mrb[89].mxu0 }
 0x1c0   : > { %v3171_v5 = vadd.f32 %v3170_v25, %v3169_v48  ;;  %v3172_v49 = vpop.f32.mrb[90].mxu0 }
 0x1c1   : > { %v3173_v42 = vpop.f32.mrb[91].mxu0 }
 0x1c2   : > { %v3174_v31 = vadd.f32 %v3173_v42, %v3172_v49  ;;  %v4936_v8 = vadd.f32 %v3171_v5, %v4868_v11 }
 0x1c4   : > { %v4939_v32 = vadd.f32 %v3174_v31, %v4875_v60 }
 0x1c6   : > { %v3175_v51 = vpop.f32.mrb[92].mxu0 }
 0x1c7   : > { %v3176_v36 = vpop.f32.mrb[93].mxu0 }
 0x1c8   : > { %v3177_v7 = vadd.f32 %v3176_v36, %v3175_v51  ;;  %v3178_v62 = vpop.f32.mrb[94].mxu0 }
 0x1c9   : > { %v3179_v9 = vpop.f32.mrb[95].mxu0 }
 0x1ca   : > { %v3180_v40 = vadd.f32 %v3179_v9, %v3178_v62  ;;  %v4942_v0 = vadd.f32 %v3177_v7, %v4864_v10 }
 0x1cc   : > { %v4945_v14 = vadd.f32 %v3180_v40, %v4872_v17 }
 0x1ce   : > { %v3181_v4 = vpop.f32.mrb[96].mxu0 }
 0x1cf   : > { %v3182_v30 = vpop.f32.mrb[97].mxu0 }
 0x1d0   : > { %v3183_v24 = vadd.f32 %v3182_v30, %v3181_v4  ;;  %v3184_v11 = vpop.f32.mrb[98].mxu0 }
 0x1d1   : > { %v3185_v54 = vpop.f32.mrb[99].mxu0 }
 0x1d2   : > { %v3186_v22 = vadd.f32 %v3185_v54, %v3184_v11  ;;  %v4948_v60 = vadd.f32 %v3183_v24, %v4890_v20 }
 0x1d4   : > { %v4951_v2 = vadd.f32 %v3186_v22, %v4897_v6 }
 0x1d6   : > { %v3187_v58 = vpop.f32.mrb[100].mxu0 }
 0x1d7   : > { %v3188_v33 = vpop.f32.mrb[101].mxu0 }
 0x1d8   : > { %v3189_v38 = vadd.f32 %v3188_v33, %v3187_v58  ;;  %v3190_v10 = vpop.f32.mrb[102].mxu0 }
 0x1d9   : > { %v3191_v29 = vpop.f32.mrb[103].mxu0 }
 0x1da   : > { %v3192_v45 = vadd.f32 %v3191_v29, %v3190_v10  ;;  %v4954_v17 = vadd.f32 %v3189_v38, %v4886_v21 }
 0x1dc   : > { %v4957_v28 = vadd.f32 %v3192_v45, %v4894_v59 }
 0x1de   : > { %v3193_v16 = vpop.f32.mrb[104].mxu0 }
 0x1df   : > { %v3194_v18 = vpop.f32.mrb[105].mxu0 }
 0x1e0   : > { %v3195_v12 = vadd.f32 %v3194_v18, %v3193_v16  ;;  %v3196_v20 = vpop.f32.mrb[106].mxu0 }
 0x1e1   : > { %v3197_v1 = vpop.f32.mrb[107].mxu0 }
 0x1e2   : > { %v3198_v48 = vadd.f32 %v3197_v1, %v3196_v20  ;;  %v4960_v6 = vadd.f32 %v3195_v12, %v4912_v23 }
 0x1e4   : > { %v4962_v25 = vadd.f32 %v3198_v48, %v1655_v57 }
 0x1e6   : > { %v3199_v5 = vpop.f32.mrb[108].mxu0 }
 0x1e7   : > { %v3200_v49 = vpop.f32.mrb[109].mxu0 }
 0x1e8   : > { %v3201_v42 = vadd.f32 %v3200_v49, %v3199_v5  ;;  %v3202_v21 = vpop.f32.mrb[110].mxu0 }
 0x1e9   : > { %v3203_v31 = vpop.f32.mrb[111].mxu0 }
 0x1ea   : > { %v3204_v51 = vadd.f32 %v3203_v31, %v3202_v21  ;;  %v4965_v59 = vadd.f32 %v3201_v42, %v4908_v15 }
 0x1ec   : > { %v4968_v36 = vadd.f32 %v3204_v51, %v4916_v63 }
 0x1ee   : > { %v3205_v7 = vpop.f32.mrb[112].mxu0 }
 0x1ef   : > { %v3206_v62 = vpop.f32.mrb[113].mxu0 }
 0x1f0   : > { %v3207_v9 = vadd.f32 %v3206_v62, %v3205_v7  ;;  %v3208_v40 = vpop.f32.mrb[114].mxu0 }
 0x1f1   : > { %v3209_v23 = vpop.f32.mrb[115].mxu0 }
 0x1f2   : > { %v3210_v15 = vadd.f32 %v3209_v23, %v3208_v40  ;;  %v4978_v63 = vadd.f32 %v4809_v61, %v3207_v9 }
 0x1f3   : > { %v3391_v57 = vpop.f32.mrb[80].mxu1 }
 0x1f4   : > { %v3440_v4 = vadd.f32 %v3439_v43, %v3391_v57  ;;  %v2299_v30 = vpop.f32.mrb[81].mxu1  ;;  %v4982_v54 = vadd.f32 %v4811_v50, %v3210_v15 }
 0x1f5   : > { %v3444_v24 = vadd.f32 %v4926_v44, %v2299_v30  ;;  %v3392_v11 = vpop.f32.mrb[82].mxu1 }
 0x1f6   : > { %2460 = vst [vmem:[%s4975_s15 + $0x10] sm:$0xff] %v3440_v4  ;;  %v3448_v22 = vadd.f32 %v4933_v56, %v3392_v11  ;;  %v2302_v58 = vpop.f32.mrb[83].mxu1  ;;  %v3211_v38 = vpop.f32.mrb[116].mxu0  ;;  %v2529_v16 = vmul.f32 %v3440_v4, %v3440_v4 }
 0x1f7   : > { %2458 = vst [vmem:[%s4975_s15] sm:$0xff] %v3444_v24  ;;  %v3452_v33 = vadd.f32 %v4929_v46, %v2302_v58  ;;  %v3212_v10 = vpop.f32.mrb[117].mxu0  ;;  %v2527_v61 = vmul.f32 %v3444_v24, %v3444_v24 }
 0x1f8   : > { %2461 = vst [vmem:[%s4975_s15 + $0x18] sm:$0xff] %v3448_v22  ;;  %v3213_v45 = vadd.f32 %v3212_v10, %v3211_v38  ;;  %v3214_v44 = vpop.f32.mrb[118].mxu0  ;;  %v2530_v46 = vmul.f32 %v3448_v22, %v3448_v22 }
 0x1f9   : > { %2459 = vst [vmem:[%s4975_s15 + $0x8] sm:$0xff] %v3452_v33  ;;  %v2490_v43 = vadd.f32 %v3452_v33, %v3444_v24  ;;  %v2528_v29 = vmul.f32 %v3452_v33, %v3452_v33  ;;  %v3215_v50 = vpop.f32.mrb[119].mxu0 }
 0x1fa   : > { %v3216_v20 = vadd.f32 %v3215_v50, %v3214_v44  ;;  %v4991_v1 = vadd.f32 %v4817_v55, %v3213_v45 }
 0x1fb   : > { %v2491_v18 = vadd.f32 %v3440_v4, %v2490_v43  ;;  %v2559_v12 = vadd.f32 %v2528_v29, %v2527_v61  ;;  %v3395_v56 = vpop.f32.mrb[84].mxu1 }
 0x1fc   : > { %v3456_v48 = vadd.f32 %v4942_v0, %v3395_v56  ;;  %v2315_v5 = vpop.f32.mrb[85].mxu1  ;;  %v4996_v51 = vadd.f32 %v4819_v13, %v3216_v20 }
 0x1fd   : > { %v2560_v49 = vadd.f32 %v2559_v12, %v2529_v16  ;;  %v3460_v42 = vadd.f32 %v4936_v8, %v2315_v5  ;;  %v2492_v21 = vadd.f32 %v3448_v22, %v2491_v18  ;;  %v3396_v31 = vpop.f32.mrb[86].mxu1 }
 0x1fe   : > { %2464 = vst [vmem:[%s4975_s15 + $0x30] sm:$0xff] %v3456_v48  ;;  %v3464_v7 = vadd.f32 %v4945_v14, %v3396_v31  ;;  %v2318_v62 = vpop.f32.mrb[87].mxu1  ;;  %v3217_v23 = vpop.f32.mrb[120].mxu0  ;;  %v2533_v24 = vmul.f32 %v3456_v48, %v3456_v48 }
 0x1ff   : > { %2462 = vst [vmem:[%s4975_s15 + $0x20] sm:$0xff] %v3460_v42  ;;  %v2493_v55 = vadd.f32 %v3460_v42, %v2492_v21  ;;  %v2531_v9 = vmul.f32 %v3460_v42, %v3460_v42  ;;  %v2561_v40 = vadd.f32 %v2560_v49, %v2530_v46  ;;  %v3468_v0 = vadd.f32 %v4939_v32, %v2318_v62  ;;  %v3218_v57 = vpop.f32.mrb[121].mxu0 }
 0x200   : > { %2465 = vst [vmem:[%s4975_s15 + $0x38] sm:$0xff] %v3464_v7  ;;  %v3219_v30 = vadd.f32 %v3218_v57, %v3217_v23  ;;  %v3220_v13 = vpop.f32.mrb[122].mxu0  ;;  %v2534_v32 = vmul.f32 %v3464_v7, %v3464_v7 }
 0x201   : > { %v2562_v8 = vadd.f32 %v2561_v40, %v2531_v9  ;;  %2463 = vst [vmem:[%s4975_s15 + $0x28] sm:$0xff] %v3468_v0  ;;  %v2494_v15 = vadd.f32 %v3468_v0, %v2493_v55  ;;  %v2532_v4 = vmul.f32 %v3468_v0, %v3468_v0  ;;  %v3221_v11 = vpop.f32.mrb[123].mxu0 }
 0x202   : > { %v3222_v33 = vadd.f32 %v3221_v11, %v3220_v13  ;;  %v5005_v38 = vadd.f32 %v4825_v34, %v3219_v30 }
 0x203   : > { %v2495_v14 = vadd.f32 %v3456_v48, %v2494_v15  ;;  %v2563_v22 = vadd.f32 %v2562_v8, %v2532_v4  ;;  %v3399_v58 = vpop.f32.mrb[88].mxu1 }
 0x204   : > { %v3472_v10 = vadd.f32 %v4954_v17, %v3399_v58  ;;  %v2331_v61 = vpop.f32.mrb[89].mxu1  ;;  %v5010_v16 = vadd.f32 %v4827_v53, %v3222_v33 }
 0x205   : > { %v2564_v43 = vadd.f32 %v2563_v22, %v2533_v24  ;;  %v3476_v29 = vadd.f32 %v4948_v60, %v2331_v61  ;;  %v2496_v45 = vadd.f32 %v3464_v7, %v2495_v14  ;;  %v3400_v44 = vpop.f32.mrb[90].mxu1 }
 0x206   : > { %2468 = vst [vmem:[%s4975_s15 + $0x50] sm:$0xff] %v3472_v10  ;;  %v3480_v50 = vadd.f32 %v4957_v28, %v3400_v44  ;;  %v2334_v18 = vpop.f32.mrb[91].mxu1  ;;  %v3223_v20 = vpop.f32.mrb[124].mxu0  ;;  %v2537_v42 = vmul.f32 %v3472_v10, %v3472_v10 }
 0x207   : > { %2466 = vst [vmem:[%s4975_s15 + $0x40] sm:$0xff] %v3476_v29  ;;  %v2497_v34 = vadd.f32 %v3476_v29, %v2496_v45  ;;  %v2535_v12 = vmul.f32 %v3476_v29, %v3476_v29  ;;  %v2565_v56 = vadd.f32 %v2564_v43, %v2534_v32  ;;  %v3484_v17 = vadd.f32 %v4951_v2, %v2334_v18  ;;  %v3224_v46 = vpop.f32.mrb[125].mxu0 }
 0x208   : > { %2469 = vst [vmem:[%s4975_s15 + $0x58] sm:$0xff] %v3480_v50  ;;  %v3225_v49 = vadd.f32 %v3224_v46, %v3223_v20  ;;  %v3226_v53 = vpop.f32.mrb[126].mxu0  ;;  %v2538_v2 = vmul.f32 %v3480_v50, %v3480_v50 }
 0x209   : > { %v2566_v60 = vadd.f32 %v2565_v56, %v2535_v12  ;;  %2467 = vst [vmem:[%s4975_s15 + $0x48] sm:$0xff] %v3484_v17  ;;  %v2498_v48 = vadd.f32 %v3484_v17, %v2497_v34  ;;  %v2536_v5 = vmul.f32 %v3484_v17, %v3484_v17  ;;  %v3227_v21 = vpop.f32.mrb[127].mxu0 }
 0x20a   : > { %v3228_v62 = vadd.f32 %v3227_v21, %v3226_v53  ;;  %v5019_v55 = vadd.f32 %v4834_v27, %v3225_v49 }
 0x20b   : > { %v2499_v28 = vadd.f32 %v3472_v10, %v2498_v48  ;;  %v2567_v31 = vadd.f32 %v2566_v60, %v2536_v5  ;;  %v3403_v7 = vpop.f32.mrb[92].mxu1 }
 0x20c   : > { %v3488_v9 = vadd.f32 %v4965_v59, %v3403_v7  ;;  %v2347_v40 = vpop.f32.mrb[93].mxu1  ;;  %v5024_v15 = vadd.f32 %v4838_v39, %v3228_v62 }
 0x20d   : > { %v2568_v0 = vadd.f32 %v2567_v31, %v2537_v42  ;;  %v3492_v23 = vadd.f32 %v4960_v6, %v2347_v40  ;;  %v2500_v57 = vadd.f32 %v3480_v50, %v2499_v28  ;;  %v3404_v8 = vpop.f32.mrb[94].mxu1 }
 0x20e   : > { %2472 = vst [vmem:[%s4975_s15 + $0x70] sm:$0xff] %v3488_v9  ;;  %v3496_v4 = vadd.f32 %v4968_v36, %v3404_v8  ;;  %v2350_v30 = vpop.f32.mrb[95].mxu1  ;;  %v3229_v11 = vpop.f32.mrb[128].mxu0  ;;  %v2541_v32 = vmul.f32 %v3488_v9, %v3488_v9 }
 0x20f   : > { %2470 = vst [vmem:[%s4975_s15 + $0x60] sm:$0xff] %v3492_v23  ;;  %v2501_v27 = vadd.f32 %v3492_v23, %v2500_v57  ;;  %v2539_v13 = vmul.f32 %v3492_v23, %v3492_v23  ;;  %v2569_v24 = vadd.f32 %v2568_v0, %v2538_v2  ;;  %v3500_v59 = vadd.f32 %v4962_v25, %v2350_v30  ;;  %v3230_v14 = vpop.f32.mrb[129].mxu0 }
 0x210   : > { %2473 = vst [vmem:[%s4975_s15 + $0x78] sm:$0xff] %v3496_v4  ;;  %v3231_v33 = vadd.f32 %v3230_v14, %v3229_v11  ;;  %v3232_v39 = vpop.f32.mrb[130].mxu0  ;;  %v2542_v25 = vmul.f32 %v3496_v4, %v3496_v4 }
 0x211   : > { %v2570_v6 = vadd.f32 %v2569_v24, %v2539_v13  ;;  %2471 = vst [vmem:[%s4975_s15 + $0x68] sm:$0xff] %v3500_v59  ;;  %v2502_v22 = vadd.f32 %v3500_v59, %v2501_v27  ;;  %v2540_v58 = vmul.f32 %v3500_v59, %v3500_v59  ;;  %v3233_v10 = vpop.f32.mrb[131].mxu0 }
 0x212   : > { %v3234_v29 = vadd.f32 %v3233_v10, %v3232_v39  ;;  %v5033_v45 = vadd.f32 %v4856_v47, %v3231_v33 }
 0x213   : > { %v2503_v36 = vadd.f32 %v3488_v9, %v2502_v22  ;;  %v2571_v61 = vadd.f32 %v2570_v6, %v2540_v58  ;;  %v3407_v43 = vpop.f32.mrb[0].mxu1 }
 0x214   : > { %v3503_v44 = vadd.f32 %v4991_v1, %v3407_v43  ;;  %v2363_v50 = vpop.f32.mrb[1].mxu1  ;;  %v5038_v17 = vadd.f32 %v4860_v37, %v3234_v29 }
 0x215   : > { %v2572_v18 = vadd.f32 %v2571_v61, %v2541_v32  ;;  %v3506_v34 = vadd.f32 %v4978_v63, %v2363_v50  ;;  %v2504_v12 = vadd.f32 %v3496_v4, %v2503_v36  ;;  %v3408_v56 = vpop.f32.mrb[2].mxu1 }
 0x216   : > { %2476 = vst [vmem:[%s4975_s15 + $0x90] sm:$0xff] %v3503_v44  ;;  %v3509_v20 = vadd.f32 %v4996_v51, %v3408_v56  ;;  %v2366_v46 = vpop.f32.mrb[3].mxu1  ;;  %v3235_v5 = vpop.f32.mrb[132].mxu0  ;;  %v2545_v28 = vmul.f32 %v3503_v44, %v3503_v44 }
 0x217   : > { %2474 = vst [vmem:[%s4975_s15 + $0x80] sm:$0xff] %v3506_v34  ;;  %v2505_v47 = vadd.f32 %v3506_v34, %v2504_v12  ;;  %v2543_v60 = vmul.f32 %v3506_v34, %v3506_v34  ;;  %v2573_v48 = vadd.f32 %v2572_v18, %v2542_v25  ;;  %v3512_v1 = vadd.f32 %v4982_v54, %v2366_v46  ;;  %v3236_v49 = vpop.f32.mrb[133].mxu0 }
 0x218   : > { %2477 = vst [vmem:[%s4975_s15 + $0x98] sm:$0xff] %v3509_v20  ;;  %v3237_v21 = vadd.f32 %v3236_v49, %v3235_v5  ;;  %v3238_v37 = vpop.f32.mrb[134].mxu0  ;;  %v2546_v54 = vmul.f32 %v3509_v20, %v3509_v20 }
 0x219   : > { %v2574_v63 = vadd.f32 %v2573_v48, %v2543_v60  ;;  %2475 = vst [vmem:[%s4975_s15 + $0x88] sm:$0xff] %v3512_v1  ;;  %v2506_v53 = vadd.f32 %v3512_v1, %v2505_v47  ;;  %v2544_v42 = vmul.f32 %v3512_v1, %v3512_v1  ;;  %v3239_v31 = vpop.f32.mrb[135].mxu0 }
 0x21a   : > { %v3240_v2 = vadd.f32 %v3239_v31, %v3238_v37  ;;  %v3526_v9 = vadd.f32 %v4878_v41, %v3237_v21 }
 0x21b   : > { %v2507_v51 = vadd.f32 %v3503_v44, %v2506_v53  ;;  %v2575_v7 = vadd.f32 %v2574_v63, %v2544_v42  ;;  %v3411_v62 = vpop.f32.mrb[4].mxu1 }
 0x21c   : > { %v3515_v40 = vadd.f32 %v5019_v55, %v3411_v62  ;;  %v2379_v0 = vpop.f32.mrb[5].mxu1  ;;  %v3532_v30 = vadd.f32 %v4882_v19, %v3240_v2 }
 0x21d   : > { %v2576_v23 = vadd.f32 %v2575_v7, %v2545_v28  ;;  %v3518_v57 = vadd.f32 %v5005_v38, %v2379_v0  ;;  %v2508_v8 = vadd.f32 %v3509_v20, %v2507_v51  ;;  %v3412_v4 = vpop.f32.mrb[6].mxu1 }
 0x21e   : > { %2480 = vst [vmem:[%s4975_s15 + $0xb0] sm:$0xff] %v3515_v40  ;;  %v3521_v27 = vadd.f32 %v5024_v15, %v3412_v4  ;;  %v2382_v13 = vpop.f32.mrb[7].mxu1  ;;  %v3241_v11 = vpop.f32.mrb[136].mxu0  ;;  %v2549_v19 = vmul.f32 %v3515_v40, %v3515_v40 }
 0x21f   : > { %2478 = vst [vmem:[%s4975_s15 + $0xa0] sm:$0xff] %v3518_v57  ;;  %v2509_v24 = vadd.f32 %v3518_v57, %v2508_v8  ;;  %v2547_v41 = vmul.f32 %v3518_v57, %v3518_v57  ;;  %v2577_v59 = vadd.f32 %v2576_v23, %v2546_v54  ;;  %v3524_v55 = vadd.f32 %v5010_v16, %v2382_v13  ;;  %v3242_v14 = vpop.f32.mrb[137].mxu0 }
 0x220   : > { %2481 = vst [vmem:[%s4975_s15 + $0xb8] sm:$0xff] %v3521_v27  ;;  %v3243_v58 = vadd.f32 %v3242_v14, %v3241_v11  ;;  %v3244_v33 = vpop.f32.mrb[138].mxu0  ;;  %v2550_v16 = vmul.f32 %v3521_v27, %v3521_v27 }
 0x221   : > { %v2578_v6 = vadd.f32 %v2577_v59, %v2547_v41  ;;  %2479 = vst [vmem:[%s4975_s15 + $0xa8] sm:$0xff] %v3524_v55  ;;  %v2510_v38 = vadd.f32 %v3524_v55, %v2509_v24  ;;  %v2548_v22 = vmul.f32 %v3524_v55, %v3524_v55  ;;  %v3245_v39 = vpop.f32.mrb[139].mxu0 }
 0x222   : > { %v3246_v36 = vadd.f32 %v3245_v39, %v3244_v33  ;;  %v3541_v61 = vadd.f32 %v4900_v35, %v3243_v58 }
 0x223   : > { %v2511_v15 = vadd.f32 %v3515_v40, %v2510_v38  ;;  %v2579_v32 = vadd.f32 %v2578_v6, %v2548_v22  ;;  %v3415_v10 = vpop.f32.mrb[8].mxu1 }
 0x224   : > { %v3527_v43 = vadd.f32 %v3526_v9, %v3415_v10  ;;  %v2395_v29 = vpop.f32.mrb[9].mxu1  ;;  %v3547_v34 = vadd.f32 %v4904_v3, %v3246_v36 }
 0x225   : > { %v2580_v25 = vadd.f32 %v2579_v32, %v2549_v19  ;;  %v3530_v44 = vadd.f32 %v5033_v45, %v2395_v29  ;;  %v2512_v50 = vadd.f32 %v3521_v27, %v2511_v15  ;;  %v3416_v18 = vpop.f32.mrb[10].mxu1 }
 0x226   : > { %2484 = vst [vmem:[%s4975_s15 + $0xd0] sm:$0xff] %v3527_v43  ;;  %v3533_v12 = vadd.f32 %v3532_v30, %v3416_v18  ;;  %v2398_v56 = vpop.f32.mrb[11].mxu1  ;;  %v3247_v60 = vpop.f32.mrb[140].mxu0  ;;  %v2553_v53 = vmul.f32 %v3527_v43, %v3527_v43 }
 0x227   : > { %2482 = vst [vmem:[%s4975_s15 + $0xc0] sm:$0xff] %v3530_v44  ;;  %v2513_v20 = vadd.f32 %v3530_v44, %v2512_v50  ;;  %v2551_v46 = vmul.f32 %v3530_v44, %v3530_v44  ;;  %v2581_v47 = vadd.f32 %v2580_v25, %v2550_v16  ;;  %v3536_v35 = vadd.f32 %v5038_v17, %v2398_v56  ;;  %v3248_v48 = vpop.f32.mrb[141].mxu0 }
 0x228   : > { %2485 = vst [vmem:[%s4975_s15 + $0xd8] sm:$0xff] %v3533_v12  ;;  %v3249_v49 = vadd.f32 %v3248_v48, %v3247_v60  ;;  %v3250_v63 = vpop.f32.mrb[142].mxu0  ;;  %v2554_v17 = vmul.f32 %v3533_v12, %v3533_v12 }
 0x229   : > { %v2582_v1 = vadd.f32 %v2581_v47, %v2551_v46  ;;  %2483 = vst [vmem:[%s4975_s15 + $0xc8] sm:$0xff] %v3536_v35  ;;  %v2514_v45 = vadd.f32 %v3536_v35, %v2513_v20  ;;  %v2552_v5 = vmul.f32 %v3536_v35, %v3536_v35  ;;  %v3251_v3 = vpop.f32.mrb[143].mxu0 }
 0x22a   : > { %v3538_v28 = vadd.f32 %v4920_v26, %v3249_v49  ;;  %v3252_v31 = vadd.f32 %v3251_v3, %v3250_v63 }
 0x22b   : > { %v2515_v42 = vadd.f32 %v3527_v43, %v2514_v45  ;;  %v2583_v21 = vadd.f32 %v2582_v1, %v2552_v5  ;;  %v3419_v37 = vpop.f32.mrb[12].mxu1 }
 0x22c   : > { %v2411_v51 = vpop.f32.mrb[13].mxu1  ;;  %v3539_v62 = vadd.f32 %v3538_v28, %v3419_v37  ;;  %v3544_v40 = vadd.f32 %v4923_v52, %v3252_v31 }
 0x22d   : > { %v2584_v7 = vadd.f32 %v2583_v21, %v2553_v53  ;;  %v3542_v2 = vadd.f32 %v3541_v61, %v2411_v51  ;;  %v2516_v9 = vadd.f32 %v3533_v12, %v2515_v42  ;;  %v3420_v54 = vpop.f32.mrb[14].mxu1 }
 0x22e   : > { %v2414_v0 = vpop.f32.mrb[15].mxu1  ;;  %2488 = vst [vmem:[%s4975_s15 + $0xf0] sm:$0xff] %v3539_v62  ;;  %v3545_v4 = vadd.f32 %v3544_v40, %v3420_v54  ;;  %v2557_v27 = vmul.f32 %v3539_v62, %v3539_v62 }
 0x22f   : > { %2486 = vst [vmem:[%s4975_s15 + $0xe0] sm:$0xff] %v3542_v2  ;;  %v2517_v23 = vadd.f32 %v3542_v2, %v2516_v9  ;;  %v2555_v57 = vmul.f32 %v3542_v2, %v3542_v2  ;;  %v2585_v8 = vadd.f32 %v2584_v7, %v2554_v17  ;;  %v3548_v26 = vadd.f32 %v3547_v34, %v2414_v0 }
 0x230   : > { %2489 = vst [vmem:[%s4975_s15 + $0xf8] sm:$0xff] %v3545_v4  ;;  %v2558_v41 = vmul.f32 %v3545_v4, %v3545_v4 }
 0x231   : > { %v2586_v30 = vadd.f32 %v2585_v8, %v2555_v57  ;;  %2487 = vst [vmem:[%s4975_s15 + $0xe8] sm:$0xff] %v3548_v26  ;;  %v2518_v13 = vadd.f32 %v3548_v26, %v2517_v23  ;;  %v2556_v24 = vmul.f32 %v3548_v26, %v3548_v26 }
 0x233   : > { %v2519_v59 = vadd.f32 %v3539_v62, %v2518_v13  ;;  %v2587_v55 = vadd.f32 %v2586_v30, %v2556_v24 }
 0x235   : > { %v2520_v11 = vadd.f32 %v3545_v4, %v2519_v59  ;;  %v2588_v52 = vadd.f32 %v2587_v55, %v2557_v27 }
 0x237   : > { %v2521_v14 = vrot.slane %v2520_v11, 4  ;;  %v2589_v6 = vadd.f32 %v2588_v52, %v2558_v41 }
 0x239   : > { %v2522_v38 = vadd.f32 %v2521_v14, %v2520_v11  ;;  %v2590_v22 = vrot.slane %v2589_v6, 4 }
 0x23b   : > { %v2523_v58 = vrot.slane %v2522_v38, 2  ;;  %v2591_v33 = vadd.f32 %v2590_v22, %v2589_v6 }
 0x23d   : > { %v2524_v19 = vadd.f32 %v2523_v58, %v2522_v38  ;;  %v2592_v39 = vrot.slane %v2591_v33, 2 }
 0x23f   : > { %v2525_v15 = vrot.slane %v2524_v19, 1  ;;  %v2593_v32 = vadd.f32 %v2592_v39, %v2591_v33 }
 0x241   : > { %v2594_v10 = vrot.slane %v2593_v32, 1  ;;  %v2526_v36 = vadd.f32 %v2525_v15, %v2524_v19 }
 0x243   : > { %v2595_v61 = vadd.f32 %v2594_v10, %v2593_v32 }
 0x245   : > { %v2597_v16 = vsel %vm2596_vm2, %v2526_v36, %v2595_v61 }
 0x246   : > { %2598 = vst [vmem:[%s235_s22] sm:$0x3] %v2597_v16 }
 0x247 PF: > { %s16_s18 = sadd.s32 1, %s3685_s18  }
 0x248   : > { %p13_p4 = scmp.ge.s32.totalorder %s16_s18, 4  }
 0x24a   :  { %15 = sbr.rel (!%p13_p4) target bundleno = 1 (0x1), region = 81 }

// kernel: _lambda_.3
= control target key start
LH: loop header
LB: loop body
LE: loop exit
PB: predicated region body
PF: predicated region fallthrough
CT: control target
= control target key end

     0   :  { %s3606_s18 = smov 0   ;;  %s4851_s0 = inlined_call_operand.vmem [shape: f32[2,16,16,128], index: 0, kind: input, shape index: {}]   ;;  %s4852_s1 = inlined_call_operand.vmem [shape: bf16[3,384,128], index: 1, kind: input, shape index: {}]   ;;  %s4853_s2 = inlined_call_operand.vmem [shape: f32[1,128], index: 2, kind: input, shape index: {}]   ;;  %s4854_s3 = inlined_call_operand.vmem [shape: f32[1,128], index: 3, kind: input, shape index: {}]   ;;  %s4855_s4 = inlined_call_operand.vmem [shape: f32[2,16,16,128], index: 4, kind: output, shape index: {0}]   ;;  %s4856_s5 = inlined_call_operand.vmem [shape: f32[2,2,128], index: 5, kind: output, shape index: {1}]  }
   0x1 LB: > { %s2575_s2 = sadd.s32 4294967295, %s3573_s18   ;;  %p2579_p0 = scmp.ge.s32.totalorder %s3573_s18, 1  ;;  %s3573_s18 = sphi %s3606_s18, %s16_s18  }
   0x2   : > { %p190_p1 = scmp.lt.s32.totalorder %s3573_s18, 3 }
   0x4   : > { %p191_p2 = pnand %p2579_p0, %p190_p1 }
   0x6   : > { %194 = sbr.rel (%p191_p2) target bundleno = 579 (0x243), region = 36 }
   0xd   : > { %v3494_v0 = vld [vmem:[%s4852_s1 + $0x100] sm:$0xff]   ;;  %v3575_v3 = vmov 0.0   ;;  %v3497_v4 = vld [vmem:[%s4852_s1 + $0x108] sm:$0xff]   ;;  %v3500_v7 = vld [vmem:[%s4852_s1 + $0x110] sm:$0xff]   ;;  %p222_p3 = scmp.lt.s32.totalorder %s2575_s2, 1  ;;  %vm458_vm0 = vcmask 1046528  }
   0xe   : > { %v3620_v1 = vld [vmem:[%s4852_s1 + $0x140] sm:$0xff]   ;;  %2757 = vmatprep.subr.bf16.mxu0 %v3494_v0  ;;  %272 = vst [vmem:[#allocation2 + $0x18] sm:$0xff] %v3575_v3  ;;  %273 = vst [vmem:[#allocation2 + $0x20] sm:$0xff] %v3575_v3  ;;  %v3684_v5 = vld [vmem:[%s4852_s1 + $0x148] sm:$0xff]   ;;  %vm571_vm1 = vcmask 1045504   ;;  %vm2486_vm2 = vcmask 1040384  }
   0xf   : > { %v3496_v2 = vld [vmem:[%s4852_s1 + $0xc0] sm:$0xff]   ;;  %274 = vst [vmem:[#allocation2 + $0x28] sm:$0x3] %v3575_v3  ;;  %269 = vst [vmem:[#allocation2] sm:$0xff] %v3575_v3  ;;  %3309 = vmatprep.subr.bf16.mxu1 %v3620_v1  ;;  %v3499_v6 = vld [vmem:[%s4852_s1 + $0xc8] sm:$0xff]   ;;  %s4892_s2 = smov (!%p222_p3, %s2575_s2), 1 }
  0x10   : > { %271 = vst [vmem:[#allocation2 + $0x10] sm:$0x3] %v3575_v3  ;;  %275 = vst [vmem:[#allocation2 + $0x30] sm:$0xff] %v3575_v3  ;;  %2758 = vmatpush3.bf16.msra.mxu0 %v3496_v2  ;;  %3317 = vmatpush3.bf16.msra.mxu1 %v3620_v1  ;;  %v3696_v8 = vld [vmem:[%s4852_s1 + $0x150] sm:$0xff]   ;;  %v3503_v10 = vld [vmem:[%s4852_s1 + $0x118] sm:$0xff]   ;;  %s2755_s27 = sshll.u32 %s4892_s2, 8 }
  0x11   : > { %276 = vst [vmem:[#allocation2 + $0x38] sm:$0xff] %v3575_v3  ;;  %277 = vst [vmem:[#allocation2 + $0x40] sm:$0x3] %v3575_v3  ;;  %2759 = vmatprep.subr.bf16.mxu0 %v3497_v4  ;;  %3310 = vmatprep.subr.bf16.mxu1 %v3684_v5  ;;  %v3502_v9 = vld [vmem:[%s4852_s1 + $0xd0] sm:$0xff]   ;;  %v3709_v11 = vld [vmem:[%s4852_s1 + $0x158] sm:$0xff]   ;;  %s3762_s11 = scalar_lea.vmem %s4851_s0, %s2755_s27  ;;  %s4762_s23 = scalar_lea.vmem %s4855_s4, %s2755_s27 }
  0x12   : > { %278 = vst [vmem:[#allocation2 + $0x48] sm:$0xff] %v3575_v3  ;;  %279 = vst [vmem:[#allocation2 + $0x50] sm:$0xff] %v3575_v3  ;;  %v3505_v12 = vld [vmem:[%s4852_s1 + $0xd8] sm:$0xff]   ;;  %v3506_v13 = vld [vmem:[%s4852_s1 + $0x120] sm:$0xff]   ;;  %s2584_s27 = sshll.u32 %s4892_s2, 1 }
  0x13   : > { %280 = vst [vmem:[#allocation2 + $0x58] sm:$0x3] %v3575_v3  ;;  %281 = vst [vmem:[#allocation2 + $0x60] sm:$0xff] %v3575_v3  ;;  %v3724_v14 = vld [vmem:[%s4852_s1 + $0x160] sm:$0xff]   ;;  %v3509_v16 = vld [vmem:[%s4852_s1 + $0x128] sm:$0xff]   ;;  %s235_s26 = scalar_lea.vmem %s4856_s5, %s2584_s27 }
  0x14   : > { %282 = vst [vmem:[#allocation2 + $0x68] sm:$0xff] %v3575_v3  ;;  %283 = vst [vmem:[#allocation2 + $0x70] sm:$0x3] %v3575_v3  ;;  %2760 = vmatpush3.bf16.msra.mxu0 %v3499_v6  ;;  %3318 = vmatpush3.bf16.msra.mxu1 %v3684_v5  ;;  %v3508_v15 = vld [vmem:[%s4852_s1 + $0xe0] sm:$0xff]   ;;  %v3741_v17 = vld [vmem:[%s4852_s1 + $0x168] sm:$0xff]  }
  0x15   : > { %284 = vst [vmem:[#allocation2 + $0x78] sm:$0xff] %v3575_v3  ;;  %285 = vst [vmem:[#allocation2 + $0x80] sm:$0xff] %v3575_v3  ;;  %2761 = vmatprep.subr.bf16.mxu0 %v3500_v7  ;;  %3311 = vmatprep.subr.bf16.mxu1 %v3696_v8  ;;  %v3511_v18 = vld [vmem:[%s4852_s1 + $0xe8] sm:$0xff]   ;;  %v3512_v19 = vld [vmem:[%s4852_s1 + $0x130] sm:$0xff]  }
  0x16   : > { %286 = vst [vmem:[#allocation2 + $0x88] sm:$0x3] %v3575_v3  ;;  %287 = vst [vmem:[#allocation2 + $0x90] sm:$0xff] %v3575_v3  ;;  %v3755_v20 = vld [vmem:[%s4852_s1 + $0x170] sm:$0xff]   ;;  %v3515_v22 = vld [vmem:[%s4852_s1 + $0x138] sm:$0xff]  }
  0x17   : > { %288 = vst [vmem:[#allocation2 + $0x98] sm:$0xff] %v3575_v3  ;;  %289 = vst [vmem:[#allocation2 + $0xa0] sm:$0x3] %v3575_v3  ;;  %v3514_v21 = vld [vmem:[%s4852_s1 + $0xf0] sm:$0xff]   ;;  %v3773_v23 = vld [vmem:[%s4852_s1 + $0x178] sm:$0xff]  }
  0x18   : > { %290 = vst [vmem:[#allocation2 + $0xa8] sm:$0xff] %v3575_v3  ;;  %291 = vst [vmem:[#allocation2 + $0xb0] sm:$0xff] %v3575_v3  ;;  %2762 = vmatpush3.bf16.msra.mxu0 %v3502_v9  ;;  %3319 = vmatpush3.bf16.msra.mxu1 %v3696_v8  ;;  %v237_v24 = vld [vmem:[%s3762_s11] sm:$0xff]  ;;  %v238_v25 = vld [vmem:[%s3762_s11 + $0x8] sm:$0xff] }
  0x19   : > { %292 = vst [vmem:[#allocation2 + $0xb8] sm:$0x3] %v3575_v3  ;;  %293 = vst [vmem:[#allocation2 + $0xc0] sm:$0xff] %v3575_v3  ;;  %2763 = vmatprep.subr.bf16.mxu0 %v3503_v10  ;;  %3312 = vmatprep.subr.bf16.mxu1 %v3709_v11  ;;  %v253_v26 = vld [vmem:[%s3762_s11 + $0x80] sm:$0xff]  ;;  %v254_v27 = vld [vmem:[%s3762_s11 + $0x88] sm:$0xff] }
  0x1a   : > { %294 = vst [vmem:[#allocation2 + $0xc8] sm:$0xff] %v3575_v3  ;;  %295 = vst [vmem:[#allocation2 + $0xd0] sm:$0x3] %v3575_v3  ;;  %v255_v28 = vld [vmem:[%s3762_s11 + $0x90] sm:$0xff]  ;;  %v256_v29 = vld [vmem:[%s3762_s11 + $0x98] sm:$0xff] }
  0x1b   : > { %296 = vst [vmem:[#allocation2 + $0xd8] sm:$0xff] %v3575_v3  ;;  %297 = vst [vmem:[#allocation2 + $0xe0] sm:$0xff] %v3575_v3  ;;  %v3517_v30 = vld [vmem:[%s4852_s1 + $0xf8] sm:$0xff]   ;;  %v3518_v31 = vld [vmem:[%s4852_s1 + $0x40] sm:$0xff]  }
  0x1c   : > { %298 = vst [vmem:[#allocation2 + $0xe8] sm:$0x3] %v3575_v3  ;;  %299 = vst [vmem:[#allocation2 + $0xf0] sm:$0xff] %v3575_v3  ;;  %2764 = vmatpush3.bf16.msra.mxu0 %v3505_v12  ;;  %3320 = vmatpush3.bf16.msra.mxu1 %v3709_v11  ;;  %v239_v32 = vld [vmem:[%s3762_s11 + $0x10] sm:$0xff]  ;;  %v240_v33 = vld [vmem:[%s3762_s11 + $0x18] sm:$0xff] }
  0x1d   : > { %300 = vst [vmem:[#allocation2 + $0xf8] sm:$0xff] %v3575_v3  ;;  %301 = vst [vmem:[#allocation2 + $0x100] sm:$0x3] %v3575_v3  ;;  %2765 = vmatprep.subr.bf16.mxu0 %v3506_v13  ;;  %3313 = vmatprep.subr.bf16.mxu1 %v3724_v14  ;;  %v257_v34 = vld [vmem:[%s3762_s11 + $0xa0] sm:$0xff]  ;;  %v258_v35 = vld [vmem:[%s3762_s11 + $0xa8] sm:$0xff]  ;;  %v3862_v13 = vrot.slane %v3575_v3, 1 }
  0x1e   : > { %302 = vst [vmem:[#allocation2 + $0x108] sm:$0xff] %v3575_v3  ;;  %303 = vst [vmem:[#allocation2 + $0x110] sm:$0xff] %v3575_v3  ;;  %v259_v36 = vld [vmem:[%s3762_s11 + $0xb0] sm:$0xff]  ;;  %v260_v37 = vld [vmem:[%s3762_s11 + $0xb8] sm:$0xff] }
  0x1f   : > { %304 = vst [vmem:[#allocation2 + $0x118] sm:$0x3] %v3575_v3  ;;  %305 = vst [vmem:[#allocation2 + $0x120] sm:$0xff] %v3575_v3  ;;  %v3519_v62 = vld [vmem:[%s4852_s1] sm:$0xff]   ;;  %v3520_v0 = vld [vmem:[%s4852_s1 + $0x48] sm:$0xff]  }
  0x20   : > { %306 = vst [vmem:[#allocation2 + $0x128] sm:$0xff] %v3575_v3  ;;  %307 = vst [vmem:[#allocation2 + $0x130] sm:$0x3] %v3575_v3  ;;  %2766 = vmatpush3.bf16.msra.mxu0 %v3508_v15  ;;  %3321 = vmatpush3.bf16.msra.mxu1 %v3724_v14 }
  0x21   : > { %308 = vst [vmem:[#allocation2 + $0x138] sm:$0xff] %v3575_v3  ;;  %309 = vst [vmem:[#allocation2 + $0x140] sm:$0xff] %v3575_v3  ;;  %2767 = vmatprep.subr.bf16.mxu0 %v3509_v16  ;;  %3314 = vmatprep.subr.bf16.mxu1 %v3741_v17 }
  0x22   : > { %310 = vst [vmem:[#allocation2 + $0x148] sm:$0x3] %v3575_v3  ;;  %311 = vst [vmem:[#allocation2 + $0x150] sm:$0xff] %v3575_v3 }
  0x23   : > { %312 = vst [vmem:[#allocation2 + $0x158] sm:$0xff] %v3575_v3  ;;  %313 = vst [vmem:[#allocation2 + $0x160] sm:$0x3] %v3575_v3 }
  0x24   : > { %314 = vst [vmem:[#allocation2 + $0x168] sm:$0xff] %v3575_v3  ;;  %315 = vst [vmem:[#allocation2 + $0x170] sm:$0xff] %v3575_v3  ;;  %2768 = vmatpush3.bf16.msra.mxu0 %v3511_v18  ;;  %3322 = vmatpush3.bf16.msra.mxu1 %v3741_v17 }
  0x25   : > { %316 = vst [vmem:[#allocation2 + $0x178] sm:$0x3] %v3575_v3  ;;  %317 = vst [vmem:[#allocation2 + $0x180] sm:$0xff] %v3575_v3  ;;  %2769 = vmatprep.subr.bf16.mxu0 %v3512_v19  ;;  %3315 = vmatprep.subr.bf16.mxu1 %v3755_v20 }
  0x26   : > { %318 = vst [vmem:[#allocation2 + $0x188] sm:$0xff] %v3575_v3  ;;  %319 = vst [vmem:[#allocation2 + $0x190] sm:$0x3] %v3575_v3 }
  0x27   : > { %322 = vst [vmem:[#allocation2 + $0x1a8] sm:$0x3] %v3575_v3  ;;  %324 = vst [vmem:[#allocation2 + $0x19] sm:$0xff] %v237_v24 }
  0x28   : > { %325 = vst [vmem:[#allocation2 + $0x21] sm:$0xff] %v238_v25  ;;  %340 = vst [vmem:[#allocation2 + $0xd9] sm:$0xff] %v253_v26  ;;  %2770 = vmatpush3.bf16.msra.mxu0 %v3514_v21  ;;  %3323 = vmatpush3.bf16.msra.mxu1 %v3755_v20 }
  0x29   : > { %341 = vst [vmem:[#allocation2 + $0xe1] sm:$0xff] %v254_v27  ;;  %342 = vst [vmem:[#allocation2 + $0xf1] sm:$0xff] %v255_v28  ;;  %2771 = vmatprep.subr.bf16.mxu0 %v3515_v22  ;;  %3316 = vmatprep.subr.bf16.mxu1 %v3773_v23 }
  0x2a   : > { %343 = vst [vmem:[#allocation2 + $0xf9] sm:$0xff] %v256_v29  ;;  %326 = vst [vmem:[#allocation2 + $0x31] sm:$0xff] %v239_v32  ;;  %v3521_v29 = vld [vmem:[%s4852_s1 + $0x8] sm:$0xff]  }
  0x2b   : > { %327 = vst [vmem:[#allocation2 + $0x39] sm:$0xff] %v240_v33  ;;  %344 = vst [vmem:[#allocation2 + $0x109] sm:$0xff] %v257_v34 }
  0x2c   : > { %2772 = vmatpush3.bf16.msra.mxu0 %v3517_v30  ;;  %3324 = vmatpush3.bf16.msra.mxu1 %v3773_v23  ;;  %345 = vst [vmem:[#allocation2 + $0x111] sm:$0xff] %v258_v35  ;;  %346 = vst [vmem:[#allocation2 + $0x121] sm:$0xff] %v259_v36 }
  0x2d   : > { %347 = vst [vmem:[#allocation2 + $0x129] sm:$0xff] %v260_v37  ;;  %3165 = vmatprep.subr.bf16.mxu0 %v3620_v1  ;;  %2893 = vmatprep.subr.bf16.mxu1 %v3518_v31 }
  0x2e   : > { %v3798_v38 = vld [vmem:[#allocation2 + $0x18] sm:$0xff] }
  0x2f   : > { %v3800_v39 = vld [vmem:[#allocation2 + $0x20] sm:$0xff]  ;;  %v3802_v40 = vld [vmem:[#allocation2 + $0x28] sm:$0x3]  ;;  %v464_v41 = vrot.slane %v3798_v38, 1  ;;  %v3807_v44 = vld [vmem:[#allocation2 + $0xd8] sm:$0xff] }
  0x30   : > { %v465_v42 = vrot.slane %v3800_v39, 1  ;;  %v467_v43 = vrot.slane %v3802_v40, 1  ;;  %v3809_v45 = vld [vmem:[#allocation2 + $0xe0] sm:$0xff]  ;;  %v3812_v46 = vld [vmem:[#allocation2 + $0xe8] sm:$0x3]  ;;  %v617_v47 = vrot.slane %v3807_v44, 2  ;;  %v3818_v49 = vpack.c.bf16 %v3800_v39, %v3798_v38 }
  0x31   : > { %v618_v48 = vrot.slane %v3809_v45, 2  ;;  %v3820_v50 = vld [vmem:[#allocation2 + $0xf0] sm:$0xff]  ;;  %v3822_v51 = vld [vmem:[#allocation2 + $0xf8] sm:$0xff]  ;;  %v3826_v52 = vpack.c.bf16 %v3809_v45, %v3807_v44  ;;  %v620_v55 = vrot.slane %v3812_v46, 2  ;;  %v3831_v56 = vld [vmem:[#allocation2 + $0x100] sm:$0x3] }
  0x32   : > { %v466_v53 = vsel %vm458_vm0, %v464_v41, %v465_v42  ;;  %v468_v54 = vsel %vm458_vm0, %v465_v42, %v467_v43  ;;  %v622_v57 = vrot.slane %v3820_v50, 2  ;;  %v623_v60 = vrot.slane %v3822_v51, 2  ;;  %v3855_v9 = vld [vmem:[#allocation2 + $0x30] sm:$0xff]  ;;  %v3857_v10 = vld [vmem:[#allocation2 + $0x38] sm:$0xff]  ;;  %v3859_v12 = vld [vmem:[#allocation2 + $0x40] sm:$0x3] }
  0x33   : > { %v3834_v58 = vpack.c.bf16 %v468_v54, %v466_v53  ;;  %v619_v59 = vsel %vm571_vm1, %v617_v47, %v618_v48  ;;  %v625_v61 = vrot.slane %v3831_v56, 2  ;;  %v621_v63 = vsel %vm571_vm1, %v618_v48, %v620_v55  ;;  %v3870_v21 = vld [vmem:[#allocation2 + $0x108] sm:$0xff]  ;;  %v3872_v22 = vld [vmem:[#allocation2 + $0x110] sm:$0xff]  ;;  %v3874_v24 = vld [vmem:[#allocation2 + $0x120] sm:$0xff] }
  0x34   : > { %v3848_v2 = vpack.c.bf16 %v3822_v51, %v3820_v50  ;;  %v3851_v4 = vpack.c.bf16 %v621_v63, %v619_v59  ;;  %v624_v6 = vsel %vm571_vm1, %v622_v57, %v623_v60  ;;  %v469_v16 = vrot.slane %v3855_v9, 1  ;;  %v3881_v27 = vld [vmem:[#allocation2 + $0x118] sm:$0x3]  ;;  %v3892_v33 = vld [vmem:[#allocation2 + $0x128] sm:$0xff]  ;;  %v3894_v34 = vld [vmem:[#allocation2 + $0x130] sm:$0x3] }
  0x35   : > { %1025 = vmatprep.mubr.bf16.mxu0 %v3834_v58  ;;  %v626_v7 = vsel %vm571_vm1, %v623_v60, %v625_v61  ;;  %v470_v18 = vrot.slane %v3857_v10, 1  ;;  %v472_v19 = vrot.slane %v3859_v12, 1  ;;  %v580_v25 = vrot.slane %v3802_v40, 2  ;;  %v3522_v48 = vld [vmem:[%s4852_s1 + $0x50] sm:$0xff]   ;;  %v241_v53 = vld [vmem:[%s3762_s11 + $0x20] sm:$0xff]  ;;  %v242_v59 = vld [vmem:[%s3762_s11 + $0x28] sm:$0xff] }
  0x36   : > { %1026 = vmatmul.mubr.bf16.vlgmr.msra.gmra.mrb[0].mxu0 %v3818_v49  ;;  %v3865_v15 = vpack.c.bf16 %v626_v7, %v624_v6  ;;  %3197 = vmatprep.mubr.bf16.mxu1 %v3851_v4  ;;  %v582_v3 = vrot.slane %v3855_v9, 2  ;;  %v583_v26 = vrot.slane %v3857_v10, 2  ;;  %v627_v28 = vrot.slane %v3870_v21, 2  ;;  %328 = vst [vmem:[#allocation2 + $0x49] sm:$0xff] %v241_v53  ;;  %v261_v60 = vld [vmem:[%s3762_s11 + $0xc0] sm:$0xff]  ;;  %v262_v61 = vld [vmem:[%s3762_s11 + $0xc8] sm:$0xff] }
  0x37   : > { %3166 = vmatpush3.bf16.msra.mxu0 %v3620_v1  ;;  %v471_v30 = vsel %vm458_vm0, %v469_v16, %v470_v18  ;;  %v473_v31 = vsel %vm458_vm0, %v470_v18, %v472_v19  ;;  %v628_v1 = vrot.slane %v3872_v22, 2  ;;  %v630_v32 = vrot.slane %v3881_v27, 2  ;;  %329 = vst [vmem:[#allocation2 + $0x51] sm:$0xff] %v242_v59  ;;  %348 = vst [vmem:[#allocation2 + $0x139] sm:$0xff] %v261_v60  ;;  %v264_v6 = vld [vmem:[%s3762_s11 + $0xd8] sm:$0xff]  ;;  %v3527_v60 = vld [vmem:[%s4852_s1 + $0x20] sm:$0xff]  }
  0x38   : > { %4871 = vst [vmem:[#allocation3_spill] sm:$0xff] %v3865_v15  ;;  %3198 = vmatmul.mubr.bf16.vlgmr.msra.gmra.mrb[0].mxu1 %v3865_v15  ;;  %3167 = vmatprep.subr.bf16.mxu0 %v3684_v5  ;;  %v3897_v35 = vpack.c.bf16 %v473_v31, %v471_v30  ;;  %v632_v36 = vrot.slane %v3874_v24, 2  ;;  %v633_v37 = vrot.slane %v3892_v33, 2  ;;  %v3905_v43 = vpack.c.bf16 %v3857_v10, %v3855_v9  ;;  %v267_v10 = vld [vmem:[%s3762_s11 + $0xf0] sm:$0xff] }
  0x39   : > { %2894 = vmatpush3.bf16.msra.mxu1 %v3519_v62  ;;  %v629_v41 = vsel %vm571_vm1, %v627_v28, %v628_v1  ;;  %v631_v42 = vsel %vm571_vm1, %v628_v1, %v630_v32  ;;  %v635_v47 = vrot.slane %v3894_v34, 2  ;;  %v585_v54 = vrot.slane %v3859_v12, 2  ;;  %349 = vst [vmem:[#allocation2 + $0x141] sm:$0xff] %v262_v61  ;;  %351 = vst [vmem:[#allocation2 + $0x159] sm:$0xff] %v264_v6  ;;  %v243_v1 = vld [vmem:[%s3762_s11 + $0x30] sm:$0xff] }
  0x3a   : > { %2895 = vmatprep.subr.bf16.mxu1 %v3520_v0  ;;  %1033 = vmatprep.mubr.bf16.mxu0 %v3897_v35  ;;  %v3914_v55 = vpack.c.bf16 %v631_v42, %v629_v41  ;;  %v634_v57 = vsel %vm571_vm1, %v632_v36, %v633_v37  ;;  %v509_v62 = vrot.slane %v3820_v50, 1  ;;  %v263_v0 = vld [vmem:[%s3762_s11 + $0xd0] sm:$0xff]  ;;  %v510_v7 = vrot.slane %v3822_v51, 1  ;;  %v3524_v51 = vld [vmem:[%s4852_s1 + $0x58] sm:$0xff]   ;;  %330 = vst [vmem:[#allocation2 + $0x61] sm:$0xff] %v243_v1  ;;  %v266_v41 = vld [vmem:[%s3762_s11 + $0xe8] sm:$0xff] }
  0x3b   : > { %3168 = vmatpush3.bf16.msra.mxu0 %v3684_v5  ;;  %v636_v63 = vsel %vm571_vm1, %v633_v37, %v635_v47  ;;  %v512_v12 = vrot.slane %v3831_v56, 1  ;;  %v3523_v5 = vld [vmem:[%s4852_s1 + $0x10] sm:$0xff]   ;;  %350 = vst [vmem:[#allocation2 + $0x151] sm:$0xff] %v263_v0  ;;  %v514_v50 = vrot.slane %v3870_v21, 1  ;;  %v3937_v18 = vpack.c.bf16 %v3872_v22, %v3870_v21  ;;  %v265_v37 = vld [vmem:[%s3762_s11 + $0xe0] sm:$0xff]  ;;  %353 = vst [vmem:[#allocation2 + $0x171] sm:$0xff] %v266_v41 }
  0x3c   : > { %4872 = vst [vmem:[#allocation4_spill] sm:$0xff] %v3914_v55  ;;  %3169 = vmatprep.subr.bf16.mxu0 %v3696_v8  ;;  %3201 = vmatprep.mubr.bf16.mxu1 %v3914_v55  ;;  %v3929_v16 = vpack.c.bf16 %v636_v63, %v634_v57  ;;  %v511_v56 = vsel %vm458_vm0, %v509_v62, %v510_v7  ;;  %v515_v28 = vrot.slane %v3872_v22, 1  ;;  %v517_v30 = vrot.slane %v3881_v27, 1  ;;  %v246_v55 = vld [vmem:[%s3762_s11 + $0x48] sm:$0xff]  ;;  %v4124_v15 = vld [vmem:[#allocation2 + $0x10] sm:$0x3] }
  0x3d   : > { %2896 = vmatpush3.bf16.msra.mxu1 %v3521_v29  ;;  %v513_v19 = vsel %vm458_vm0, %v510_v7, %v512_v12  ;;  %v3525_v29 = vld [vmem:[%s4852_s1 + $0x18] sm:$0xff]   ;;  %v3955_v31 = vpack.c.bf16 %v3892_v33, %v3874_v24  ;;  %v584_v22 = vsel %vm571_vm1, %v582_v3, %v583_v26  ;;  %v519_v32 = vrot.slane %v3874_v24, 1  ;;  %352 = vst [vmem:[#allocation2 + $0x169] sm:$0xff] %v265_v37  ;;  %v3529_v37 = vld [vmem:[%s4852_s1 + $0x28] sm:$0xff]  }
  0x3e   : > { %4873 = vst [vmem:[#allocation5_spill] sm:$0xff] %v3929_v16  ;;  %1034 = vmatmul.mubr.bf16.gmra.mrb[4].mxu0 %v3905_v43  ;;  %2897 = vmatprep.subr.bf16.mxu1 %v3522_v48  ;;  %v3950_v21 = vpack.c.bf16 %v513_v19, %v511_v56  ;;  %v516_v27 = vsel %vm458_vm0, %v514_v50, %v515_v28  ;;  %v520_v36 = vrot.slane %v3892_v33, 1  ;;  %v244_v3 = vld [vmem:[%s3762_s11 + $0x38] sm:$0xff]  ;;  %v522_v47 = vrot.slane %v3894_v34, 1  ;;  %v3981_v33 = vld [vmem:[#allocation2 + $0x48] sm:$0xff]  ;;  %v3990_v59 = vld [vmem:[#allocation2 + $0x50] sm:$0xff] }
  0x3f   : > { %3170 = vmatpush3.bf16.msra.mxu0 %v3696_v8  ;;  %v3526_v8 = vld [vmem:[%s4852_s1 + $0x60] sm:$0xff]   ;;  %v586_v9 = vsel %vm571_vm1, %v583_v26, %v585_v54  ;;  %v518_v42 = vsel %vm458_vm0, %v515_v28, %v517_v30  ;;  %v577_v48 = vrot.slane %v3798_v38, 2  ;;  %v578_v24 = vrot.slane %v3800_v39, 2  ;;  %331 = vst [vmem:[#allocation2 + $0x69] sm:$0xff] %v244_v3  ;;  %v268_v26 = vld [vmem:[%s3762_s11 + $0xf8] sm:$0xff]  ;;  %354 = vst [vmem:[#allocation2 + $0x181] sm:$0xff] %v267_v10 }
  0x40   : > { %3202 = vmatmul.mubr.bf16.gmra.mrb[4].mxu1 %v3929_v16  ;;  %3171 = vmatprep.subr.bf16.mxu0 %v3709_v11  ;;  %v3985_v53 = vpack.c.bf16 %v518_v42, %v516_v27  ;;  %v521_v54 = vsel %vm458_vm0, %v519_v32, %v520_v36  ;;  %v3988_v57 = vpack.c.bf16 %v586_v9, %v584_v22  ;;  %v3992_v34 = vld [vmem:[#allocation2 + $0x58] sm:$0x3]  ;;  %v474_v38 = vrot.slane %v3981_v33, 1  ;;  %v4012_v7 = vld [vmem:[#allocation2 + $0x140] sm:$0xff]  ;;  %v4014_v12 = vld [vmem:[#allocation2 + $0x148] sm:$0x3] }
  0x41   : > { %2898 = vmatpush3.bf16.msra.mxu1 %v3523_v5  ;;  %v3995_v39 = vld [vmem:[#allocation2 + $0x138] sm:$0xff]  ;;  %355 = vst [vmem:[#allocation2 + $0x189] sm:$0xff] %v268_v26  ;;  %v523_v61 = vsel %vm458_vm0, %v520_v36, %v522_v47  ;;  %v4003_v62 = vsel %vm571_vm1, %v577_v48, %v578_v24  ;;  %v4008_v63 = vsel %vm571_vm1, %v578_v24, %v580_v25  ;;  %v475_v0 = vrot.slane %v3990_v59, 1  ;;  %v4028_v56 = vld [vmem:[#allocation2 + $0x160] sm:$0x3]  ;;  %v3528_v19 = vld [vmem:[%s4852_s1 + $0x68] sm:$0xff]  }
  0x42   : > { %2899 = vmatprep.subr.bf16.mxu1 %v3524_v51  ;;  %v477_v6 = vrot.slane %v3992_v34, 1  ;;  %v4019_v5 = vpack.c.bf16 %v3990_v59, %v3981_v33  ;;  %v638_v40 = vrot.slane %v4012_v7, 2  ;;  %v640_v25 = vrot.slane %v4014_v12, 2  ;;  %v4024_v50 = vld [vmem:[#allocation2 + $0x150] sm:$0xff]  ;;  %v4026_v51 = vld [vmem:[#allocation2 + $0x158] sm:$0xff]  ;;  %v4055_v47 = vld [vmem:[#allocation2 + $0x60] sm:$0xff] }
  0x43   : > { %3172 = vmatpush3.bf16.msra.mxu0 %v3709_v11  ;;  %v637_v11 = vrot.slane %v3995_v39, 2  ;;  %v4033_v28 = vpack.c.bf16 %v523_v61, %v521_v54  ;;  %v4037_v30 = vpack.c.bf16 %v4012_v7, %v3995_v39  ;;  %v642_v1 = vrot.slane %v4024_v50, 2  ;;  %333 = vst [vmem:[#allocation2 + $0x81] sm:$0xff] %v246_v55 }
  0x44   : > { %3173 = vmatprep.subr.bf16.mxu0 %v3724_v14  ;;  %v478_v22 = vsel %vm458_vm0, %v475_v0, %v477_v6  ;;  %v643_v27 = vrot.slane %v4026_v51, 2  ;;  %v641_v9 = vsel %vm571_vm1, %v638_v40, %v640_v25  ;;  %v645_v3 = vrot.slane %v4028_v56, 2 }
  0x45   : > { %2900 = vmatpush3.bf16.msra.mxu1 %v3525_v29  ;;  %v476_v29 = vsel %vm458_vm0, %v474_v38, %v475_v0  ;;  %v639_v36 = vsel %vm571_vm1, %v637_v11, %v638_v40  ;;  %v524_v48 = vrot.slane %v3995_v39, 1  ;;  %v525_v24 = vrot.slane %v4012_v7, 1  ;;  %v4070_v38 = vld [vmem:[#allocation2 + $0x168] sm:$0xff]  ;;  %v4083_v7 = vld [vmem:[#allocation2 + $0x170] sm:$0xff]  ;;  %v4085_v11 = vld [vmem:[#allocation2 + $0x178] sm:$0x3] }
  0x46   : > { %2901 = vmatprep.subr.bf16.mxu1 %v3526_v8  ;;  %v4043_v32 = vpack.c.bf16 %v478_v22, %v476_v29  ;;  %v4052_v41 = vpack.c.bf16 %v641_v9, %v639_v36  ;;  %v644_v42 = vsel %vm571_vm1, %v642_v1, %v643_v27  ;;  %v3530_v8 = vld [vmem:[%s4852_s1 + $0x70] sm:$0xff]   ;;  %v4065_v10 = vld [vmem:[#allocation2 + $0x68] sm:$0xff]  ;;  %v479_v54 = vrot.slane %v4055_v47, 1  ;;  %v4094_v22 = vld [vmem:[#allocation2 + $0x180] sm:$0xff] }
  0x47   : > { %3174 = vmatpush3.bf16.msra.mxu0 %v3724_v14  ;;  %v646_v14 = vsel %vm571_vm1, %v643_v27, %v645_v3  ;;  %v4067_v26 = vld [vmem:[#allocation2 + $0x70] sm:$0x3]  ;;  %v527_v61 = vrot.slane %v4014_v12, 1  ;;  %v4075_v39 = vpack.c.bf16 %v4026_v51, %v4024_v50  ;;  %v647_v12 = vrot.slane %v4070_v38, 2 }
  0x48   : > { %4874 = vst [vmem:[#allocation6_spill] sm:$0xff] %v4052_v41  ;;  %3175 = vmatprep.subr.bf16.mxu0 %v3741_v17  ;;  %1041 = vmatprep.mubr.bf16.mxu0 %v4043_v32  ;;  %v4079_v0 = vpack.c.bf16 %v646_v14, %v644_v42  ;;  %v482_v6 = vrot.slane %v4067_v26, 1  ;;  %v648_v40 = vrot.slane %v4083_v7, 2  ;;  %v650_v25 = vrot.slane %v4085_v11, 2  ;;  %v4096_v1 = vld [vmem:[#allocation2 + $0x188] sm:$0xff]  ;;  %v3531_v14 = vld [vmem:[%s4852_s1 + $0x30] sm:$0xff]  }
  0x49   : > { %2902 = vmatpush3.bf16.msra.mxu1 %v3527_v60  ;;  %3205 = vmatprep.mubr.bf16.mxu1 %v4052_v41  ;;  %v480_v60 = vrot.slane %v4065_v10, 1  ;;  %v4092_v29 = vpack.c.bf16 %v4065_v10, %v4055_v47  ;;  %v4098_v27 = vld [vmem:[#allocation2 + $0x190] sm:$0x3]  ;;  %v526_v36 = vsel %vm458_vm0, %v524_v48, %v525_v24  ;;  %v790_v3 = vrot.slane %v4094_v22, 2 }
  0x4a   : > { %1042 = vmatmul.mubr.bf16.gmra.mrb[8].mxu0 %v4019_v5  ;;  %4875 = vst [vmem:[#allocation7_spill] sm:$0xff] %v4079_v0  ;;  %2903 = vmatprep.subr.bf16.mxu1 %v3528_v19  ;;  %v791_v42 = vrot.slane %v4096_v1, 2  ;;  %v534_v55 = vrot.slane %v4070_v38, 1 }
  0x4b   : > { %3176 = vmatpush3.bf16.msra.mxu0 %v3741_v17  ;;  %3206 = vmatmul.mubr.bf16.gmra.mrb[8].mxu1 %v4079_v0  ;;  %v481_v19 = vsel %vm458_vm0, %v479_v54, %v480_v60  ;;  %v483_v9 = vsel %vm458_vm0, %v480_v60, %v482_v6  ;;  %v3532_v17 = vld [vmem:[%s4852_s1 + $0x78] sm:$0xff]   ;;  %v649_v54 = vsel %vm571_vm1, %v647_v12, %v648_v40  ;;  %v793_v6 = vrot.slane %v4098_v27, 2  ;;  %v245_v0 = vld [vmem:[%s3762_s11 + $0x40] sm:$0xff] }
  0x4c   : > { %3177 = vmatprep.subr.bf16.mxu0 %v3755_v20  ;;  %v4114_v48 = vpack.c.bf16 %v483_v9, %v481_v19  ;;  %v651_v60 = vsel %vm571_vm1, %v648_v40, %v650_v25  ;;  %v792_v16 = vsel %vm571_vm1, %v790_v3, %v791_v42  ;;  %332 = vst [vmem:[#allocation2 + $0x79] sm:$0xff] %v245_v0  ;;  %v529_v12 = vrot.slane %v4024_v50, 1  ;;  %v3533_v25 = vld [vmem:[%s4852_s1 + $0x38] sm:$0xff]   ;;  %v247_v0 = vld [vmem:[%s3762_s11 + $0x50] sm:$0xff]  ;;  %v249_v9 = vld [vmem:[%s3762_s11 + $0x60] sm:$0xff] }
  0x4d   : > { %2904 = vmatpush3.bf16.msra.mxu1 %v3529_v37  ;;  %v4120_v41 = vpack.c.bf16 %v651_v60, %v649_v54  ;;  %v528_v37 = vsel %vm458_vm0, %v525_v24, %v527_v61  ;;  %v794_v40 = vsel %vm571_vm1, %v791_v42, %v793_v6  ;;  %v530_v24 = vrot.slane %v4026_v51, 1  ;;  %v248_v61 = vld [vmem:[%s3762_s11 + $0x58] sm:$0xff]  ;;  %334 = vst [vmem:[#allocation2 + $0x91] sm:$0xff] %v247_v0  ;;  %v250_v3 = vld [vmem:[%s3762_s11 + $0x68] sm:$0xff]  ;;  %v251_v60 = vld [vmem:[%s3762_s11 + $0x70] sm:$0xff] }
  0x4e   : > { %2905 = vmatprep.subr.bf16.mxu1 %v3530_v8  ;;  %1049 = vmatprep.mubr.bf16.mxu0 %v4114_v48  ;;  %v462_v8 = vrot.slane %v4124_v15, 1  ;;  %v4135_v19 = vpack.c.bf16 %v528_v37, %v526_v36  ;;  %v4140_v50 = vpack.c.bf16 %v794_v40, %v792_v16  ;;  %v532_v42 = vrot.slane %v4028_v56, 1  ;;  %v4154_v16 = vld [vmem:[%s4852_s1 + $0x80] sm:$0xff]   ;;  %335 = vst [vmem:[#allocation2 + $0x99] sm:$0xff] %v248_v61  ;;  %v252_v6 = vld [vmem:[%s3762_s11 + $0x78] sm:$0xff] }
  0x4f   : > { %4876 = vst [vmem:[#allocation8_spill] sm:$0xff] %v4120_v41  ;;  %3178 = vmatpush3.bf16.msra.mxu0 %v3755_v20  ;;  %3209 = vmatprep.mubr.bf16.mxu1 %v4120_v41  ;;  %v535_v36 = vrot.slane %v4083_v7, 1  ;;  %336 = vst [vmem:[#allocation2 + $0xa9] sm:$0xff] %v249_v9  ;;  %v531_v51 = vsel %vm458_vm0, %v529_v12, %v530_v24  ;;  %v537_v56 = vrot.slane %v4085_v11, 1  ;;  %v786_v12 = vrot.slane %v4098_v27, 1 }
  0x50   : > { %4877 = vst [vmem:[#allocation9_spill] sm:$0xff] %v4140_v50  ;;  %3179 = vmatprep.subr.bf16.mxu0 %v3773_v23  ;;  %v463_v20 = vsel %vm458_vm0, %v3862_v13, %v462_v8  ;;  %337 = vst [vmem:[#allocation2 + $0xb1] sm:$0xff] %v250_v3  ;;  %v4160_v54 = vpack.c.bf16 %v4083_v7, %v4070_v38  ;;  %v533_v37 = vsel %vm458_vm0, %v530_v24, %v532_v42  ;;  %v4193_v9 = vld [vmem:[#allocation2 + $0x88] sm:$0x3]  ;;  %v4200_v3 = vld [vmem:[#allocation2] sm:$0xff] }
  0x51   : > { %2906 = vmatpush3.bf16.msra.mxu1 %v3531_v14  ;;  %v685_v14 = vpack.c.bf16 %v463_v20, %v3862_v13  ;;  %v536_v40 = vsel %vm458_vm0, %v534_v55, %v535_v36  ;;  %v783_v8 = vrot.slane %v4094_v22, 1  ;;  %338 = vst [vmem:[#allocation2 + $0xc1] sm:$0xff] %v251_v60  ;;  %339 = vst [vmem:[#allocation2 + $0xc9] sm:$0xff] %v252_v6  ;;  %v784_v7 = vrot.slane %v4096_v1, 1 }
  0x52   : > { %1050 = vmatmul.mubr.bf16.gmra.mrb[12].mxu0 %v4092_v29  ;;  %2907 = vmatprep.subr.bf16.mxu1 %v3532_v17  ;;  %v4169_v11 = vpack.c.bf16 %v533_v37, %v531_v51  ;;  %v538_v38 = vsel %vm458_vm0, %v535_v36, %v537_v56  ;;  %v4176_v13 = vpack.c.bf16 %v4096_v1, %v4094_v22  ;;  %v587_v61 = vrot.slane %v3981_v33, 2 }
  0x53   : > { %3180 = vmatpush3.bf16.msra.mxu0 %v3773_v23  ;;  %3210 = vmatmul.mubr.bf16.gmra.mrb[12].mxu1 %v4140_v50  ;;  %v4179_v17 = vpack.c.bf16 %v538_v38, %v536_v40  ;;  %v4184_v0 = vpack.c.bf16 %v4008_v63, %v4003_v62  ;;  %v4186_v24 = vld [vmem:[#allocation2 + $0x78] sm:$0xff]  ;;  %v785_v23 = vsel %vm458_vm0, %v783_v8, %v784_v7  ;;  %v588_v22 = vrot.slane %v3990_v59, 2  ;;  %v4191_v1 = vld [vmem:[#allocation2 + $0x80] sm:$0xff] }
  0x54   : > { %1491 = vmatprep.mubr.bf16.mxu1 %v685_v14  ;;  %v484_v27 = vrot.slane %v4186_v24, 1  ;;  %v787_v62 = vsel %vm458_vm0, %v784_v7, %v786_v12  ;;  %v485_v63 = vrot.slane %v4191_v1, 1  ;;  %v4204_v33 = vpack.c.bf16 %v4200_v3, %v4200_v3  ;;  %v4206_v59 = vld [vmem:[#allocation2 + $0x90] sm:$0xff] }
  0x55   : > { %2908 = vmatpush3.bf16.msra.mxu1 %v3533_v25  ;;  %v487_v25 = vrot.slane %v4193_v9, 1  ;;  %v4208_v42 = vpack.c.bf16 %v787_v62, %v785_v23  ;;  %v4212_v55 = vpack.c.bf16 %v4191_v1, %v4186_v24  ;;  %v4214_v36 = vld [vmem:[#allocation2 + $0x98] sm:$0xff]  ;;  %v4216_v20 = vld [vmem:[#allocation2 + $0xa0] sm:$0x3]  ;;  %v489_v51 = vrot.slane %v4206_v59, 1 }
  0x56   : > { %3213 = vmatprep.subr.bf16.mxu1 %v4154_v16  ;;  %4878 = vst [vmem:[#allocation10_spill] sm:$0xff] %v4204_v33  ;;  %v4219_v56 = vld [vmem:[#allocation2 + $0xa8] sm:$0xff]  ;;  %v589_v14 = vsel %vm571_vm1, %v587_v61, %v588_v22  ;;  %v590_v60 = vrot.slane %v3992_v34, 2  ;;  %v486_v6 = vsel %vm458_vm0, %v484_v27, %v485_v63  ;;  %v490_v40 = vrot.slane %v4214_v36, 1 }
  0x57   : > { %v488_v37 = vsel %vm458_vm0, %v485_v63, %v487_v25  ;;  %v492_v8 = vrot.slane %v4216_v20, 1  ;;  %v4227_v38 = vld [vmem:[#allocation2 + $0xb0] sm:$0xff]  ;;  %v4229_v7 = vld [vmem:[#allocation2 + $0xb8] sm:$0x3]  ;;  %v494_v23 = vrot.slane %v4219_v56, 1  ;;  %v3535_v34 = vld [vmem:[%s4852_s1 + $0x88] sm:$0xff]  }
  0x58   : > { %v4231_v12 = vpack.c.bf16 %v488_v37, %v486_v6  ;;  %v495_v61 = vrot.slane %v4227_v38, 1  ;;  %v491_v27 = vsel %vm458_vm0, %v489_v51, %v490_v40  ;;  %v497_v63 = vrot.slane %v4229_v7, 1  ;;  %v3541_v25 = vld [vmem:[%s4852_s1 + $0x1c0] sm:$0xff]   ;;  %v3536_v51 = vld [vmem:[%s4852_s1 + $0x90] sm:$0xff]   ;;  %v4263_v50 = vld [vmem:[#allocation2 + $0xc8] sm:$0xff] }
  0x59   : > { %v493_v62 = vsel %vm458_vm0, %v490_v40, %v492_v8  ;;  %v591_v37 = vsel %vm571_vm1, %v588_v22, %v590_v60  ;;  %v4256_v40 = vld [vmem:[#allocation2 + $0xc0] sm:$0xff]  ;;  %v382_v8 = vld [vmem:[#allocation2 + $0xd0] sm:$0x3]  ;;  %3029 = vmatprep.subr.bf16.mxu0 %v3541_v25  ;;  %v593_v22 = vrot.slane %v4065_v10, 2  ;;  %v595_v60 = vrot.slane %v4067_v26, 2 }
  0x5a   : > { %1057 = vmatprep.mubr.bf16.mxu0 %v4231_v12  ;;  %v4246_v6 = vpack.c.bf16 %v493_v62, %v491_v27  ;;  %v592_v27 = vrot.slane %v4055_v47, 2  ;;  %v496_v62 = vsel %vm458_vm0, %v494_v23, %v495_v61  ;;  %v3537_v47 = vld [vmem:[%s4852_s1 + $0x98] sm:$0xff]   ;;  %v500_v10 = vrot.slane %v4263_v50, 1 }
  0x5b   : > { %1492 = vmatmul.mubr.bf16.vlgmr.msra.gmra.mrb[16].mxu1 %v4204_v33  ;;  %1058 = vmatmul.mubr.bf16.gmra.mrb[16].mxu0 %v4212_v55  ;;  %v4258_v33 = vpack.c.bf16 %v591_v37, %v589_v14  ;;  %v499_v14 = vrot.slane %v4256_v40, 1  ;;  %v596_v26 = vsel %vm571_vm1, %v593_v22, %v595_v60  ;;  %v598_v25 = vrot.slane %v4191_v1, 2 }
  0x5c   : > { %3214 = vmatpush3.bf16.msra.mxu1 %v4154_v16  ;;  %1065 = vmatprep.mubr.bf16.mxu0 %v4246_v6  ;;  %v498_v16 = vsel %vm458_vm0, %v495_v61, %v497_v63  ;;  %v594_v23 = vsel %vm571_vm1, %v592_v27, %v593_v22  ;;  %v597_v61 = vrot.slane %v4186_v24, 2  ;;  %v600_v41 = vrot.slane %v4193_v9, 2 }
  0x5d   : > { %1499 = vmatprep.mubr.bf16.mxu1 %v3834_v58  ;;  %3215 = vmatprep.subr.bf16.mxu1 %v3535_v34  ;;  %v4269_v58 = vpack.c.bf16 %v4214_v36, %v4206_v59  ;;  %v4277_v63 = vpack.c.bf16 %v498_v16, %v496_v62  ;;  %v4282_v37 = vpack.c.bf16 %v596_v26, %v594_v23  ;;  %v602_v24 = vrot.slane %v4206_v59, 2 }
  0x5e   : > { %v599_v27 = vsel %vm571_vm1, %v597_v61, %v598_v25  ;;  %v603_v62 = vrot.slane %v4214_v36, 2  ;;  %v605_v16 = vrot.slane %v4216_v20, 2  ;;  %v601_v1 = vsel %vm571_vm1, %v598_v25, %v600_v41  ;;  %v3538_v41 = vld [vmem:[%s4852_s1 + $0xa0] sm:$0xff]  }
  0x5f   : > { %v4294_v9 = vpack.c.bf16 %v601_v1, %v599_v27  ;;  %v607_v59 = vrot.slane %v4219_v56, 2  ;;  %v501_v36 = vsel %vm458_vm0, %v499_v14, %v500_v10  ;;  %v4309_v23 = vpack.c.bf16 %v4227_v38, %v4219_v56 }
  0x60   : > { %3216 = vmatpush3.bf16.msra.mxu1 %v3535_v34  ;;  %v502_v34 = vrot.slane %v382_v8, 1  ;;  %v606_v22 = vsel %vm571_vm1, %v603_v62, %v605_v16  ;;  %v610_v61 = vrot.slane %v4229_v7, 2  ;;  %v612_v14 = vrot.slane %v4256_v40, 2 }
  0x61   : > { %3217 = vmatprep.subr.bf16.mxu1 %v3536_v51  ;;  %v615_v25 = vrot.slane %v382_v8, 2  ;;  %v504_v27 = vrot.slane %v3807_v44, 1  ;;  %v507_v56 = vrot.slane %v3812_v46, 1  ;;  %v4341_v1 = vpack.c.bf16 %v4263_v50, %v4256_v40  ;;  %v3542_v40 = vld [vmem:[%s4852_s1 + $0x180] sm:$0xff]  }
  0x62   : > { %v503_v20 = vsel %vm458_vm0, %v500_v10, %v502_v34  ;;  %v613_v10 = vrot.slane %v4263_v50, 2  ;;  %v4355_v50 = vld [vmem:[%s4852_s1 + $0x200] sm:$0xff]  }
  0x63   : > { %1500 = vmatmul.mubr.bf16.gmra.mrb[20].mxu1 %v3818_v49  ;;  %1066 = vmatmul.mubr.bf16.gmra.mrb[20].mxu0 %v4269_v58  ;;  %v604_v49 = vsel %vm571_vm1, %v602_v24, %v603_v62  ;;  %v4315_v34 = vpack.c.bf16 %v503_v20, %v501_v36  ;;  %v505_v24 = vrot.slane %v3809_v45, 1  ;;  %v3544_v36 = vld [vmem:[%s4852_s1 + $0x188] sm:$0xff]   ;;  %v3545_v20 = vld [vmem:[%s4852_s1 + $0x1d0] sm:$0xff]  }
  0x64   : > { %1507 = vmatprep.mubr.bf16.mxu1 %v3897_v35  ;;  %1073 = vmatprep.mubr.bf16.mxu0 %v4277_v63  ;;  %v4304_v60 = vpack.c.bf16 %v606_v22, %v604_v49  ;;  %v614_v8 = vsel %vm571_vm1, %v612_v14, %v613_v10  ;;  %v616_v16 = vsel %vm571_vm1, %v613_v10, %v615_v25  ;;  %v3549_v49 = vld [vmem:[%s4852_s1 + $0xb8] sm:$0xff]   ;;  %v3551_v14 = vld [vmem:[%s4852_s1 + $0x1a0] sm:$0xff]   ;;  %v4426_v10 = vrot.slane %v4200_v3, 2 }
  0x65   : > { %3218 = vmatpush3.bf16.msra.mxu1 %v3536_v51  ;;  %v608_v51 = vrot.slane %v4227_v38, 2  ;;  %v3539_v38 = vld [vmem:[%s4852_s1 + $0xa8] sm:$0xff]   ;;  %v4329_v44 = vpack.c.bf16 %v616_v16, %v614_v8  ;;  %v506_v45 = vsel %vm458_vm0, %v504_v27, %v505_v24  ;;  %v508_v46 = vsel %vm458_vm0, %v505_v24, %v507_v56  ;;  %v3556_v8 = vld [vmem:[%s4852_s1 + $0x1f8] sm:$0xff]  }
  0x66   : > { %3219 = vmatprep.subr.bf16.mxu1 %v3537_v47  ;;  %v4346_v22 = vpack.c.bf16 %v508_v46, %v506_v45  ;;  %v575_v25 = vrot.slane %v4124_v15, 2  ;;  %v3552_v27 = vld [vmem:[%s4852_s1 + $0x1e8] sm:$0xff]   ;;  %v3557_v16 = vld [vmem:[%s4852_s1 + $0x1b8] sm:$0xff]  }
  0x67   : > { %v609_v26 = vsel %vm571_vm1, %v607_v59, %v608_v51  ;;  %v611_v62 = vsel %vm571_vm1, %v608_v51, %v610_v61  ;;  %v3543_v59 = vld [vmem:[%s4852_s1 + $0x1c8] sm:$0xff]   ;;  %v3547_v51 = vld [vmem:[%s4852_s1 + $0x1d8] sm:$0xff]  }
  0x68   : > { %v4324_v7 = vpack.c.bf16 %v611_v62, %v609_v26  ;;  %v3548_v61 = vld [vmem:[%s4852_s1 + $0x198] sm:$0xff]   ;;  %v3550_v26 = vld [vmem:[%s4852_s1 + $0x1e0] sm:$0xff]   ;;  %v3553_v24 = vld [vmem:[%s4852_s1 + $0x1a8] sm:$0xff]   ;;  %v576_v15 = vsel %vm571_vm1, %v4426_v10, %v575_v25 }
  0x69   : > { %3220 = vmatpush3.bf16.msra.mxu1 %v3537_v47  ;;  %v3540_v47 = vld [vmem:[%s4852_s1 + $0xb0] sm:$0xff]   ;;  %v686_v56 = vpack.c.bf16 %v576_v15, %v4426_v10  ;;  %v3559_v45 = vld [vmem:[%s4852_s1 + $0x208] sm:$0xff]   ;;  %v3561_v46 = vld [vmem:[%s4852_s1 + $0x218] sm:$0xff]  }
  0x6a   : > { %3221 = vmatprep.subr.bf16.mxu1 %v3538_v41  ;;  %v3554_v62 = vld [vmem:[%s4852_s1 + $0x1f0] sm:$0xff]  }
  0x6b   : > { %1508 = vmatmul.mubr.bf16.gmra.mrb[24].mxu1 %v3905_v43  ;;  %1074 = vmatmul.mubr.bf16.gmra.mrb[24].mxu0 %v4309_v23 }
  0x6c   : > { %1515 = vmatprep.mubr.bf16.mxu1 %v4043_v32  ;;  %1081 = vmatprep.mubr.bf16.mxu0 %v4315_v34 }
  0x6d   : > { %3222 = vmatpush3.bf16.msra.mxu1 %v3538_v41  ;;  %v3546_v41 = vld [vmem:[%s4852_s1 + $0x190] sm:$0xff]  }
  0x6e   : > { %3223 = vmatprep.subr.bf16.mxu1 %v3539_v38 }
  0x71   : > { %3224 = vmatpush3.bf16.msra.mxu1 %v3539_v38  ;;  %v3555_v38 = vld [vmem:[%s4852_s1 + $0x1b0] sm:$0xff]  }
  0x72   : > { %3225 = vmatprep.subr.bf16.mxu1 %v3540_v47 }
  0x73   : > { %1516 = vmatmul.mubr.bf16.gmra.mrb[28].mxu1 %v4019_v5  ;;  %1082 = vmatmul.mubr.bf16.gmra.mrb[28].mxu0 %v4341_v1 }
  0x74   : > { %1523 = vmatprep.mubr.bf16.mxu1 %v4114_v48  ;;  %1089 = vmatprep.mubr.bf16.mxu0 %v4346_v22 }
  0x75   : > { %3226 = vmatpush3.bf16.msra.mxu1 %v3540_v47 }
  0x76   : > { %3227 = vmatprep.subr.bf16.mxu1 %v3549_v49 }
  0x79   : > { %3228 = vmatpush3.bf16.msra.mxu1 %v3549_v49 }
  0x7a   : > { %3261 = vmatprep.subr.bf16.mxu1 %v4355_v50 }
  0x7b   : > { %1524 = vmatmul.mubr.bf16.gmra.mrb[32].mxu1 %v4092_v29  ;;  %1090 = vmatmul.mubr.bf16.gmra.mrb[32].mxu0 %v3826_v52 }
  0x7c   : > { %1531 = vmatprep.mubr.bf16.mxu1 %v4231_v12  ;;  %1097 = vmatprep.mubr.bf16.mxu0 %v3950_v21 }
  0x83   : > { %1532 = vmatmul.mubr.bf16.gmra.mrb[36].mxu1 %v4212_v55  ;;  %1098 = vmatmul.mubr.bf16.gmra.mrb[36].mxu0 %v3848_v2 }
  0x84   : > { %1539 = vmatprep.mubr.bf16.mxu1 %v4246_v6  ;;  %1105 = vmatprep.mubr.bf16.mxu0 %v3985_v53 }
  0x8b   : > { %1540 = vmatmul.mubr.bf16.gmra.mrb[40].mxu1 %v4269_v58  ;;  %1106 = vmatmul.mubr.bf16.gmra.mrb[40].mxu0 %v3937_v18 }
  0x8c   : > { %1547 = vmatprep.mubr.bf16.mxu1 %v4277_v63  ;;  %1113 = vmatprep.mubr.bf16.mxu0 %v4033_v28 }
  0x93   : > { %1548 = vmatmul.mubr.bf16.gmra.mrb[44].mxu1 %v4309_v23  ;;  %1114 = vmatmul.mubr.bf16.gmra.mrb[44].mxu0 %v3955_v31 }
  0x94   : > { %1555 = vmatprep.mubr.bf16.mxu1 %v4315_v34  ;;  %1121 = vmatprep.mubr.bf16.mxu0 %v4135_v19 }
  0x9b   : > { %1556 = vmatmul.mubr.bf16.gmra.mrb[48].mxu1 %v4341_v1  ;;  %1122 = vmatmul.mubr.bf16.gmra.mrb[48].mxu0 %v4037_v30 }
  0x9c   : > { %1563 = vmatprep.mubr.bf16.mxu1 %v4346_v22  ;;  %1129 = vmatprep.mubr.bf16.mxu0 %v4169_v11 }
  0xa3   : > { %1564 = vmatmul.mubr.bf16.gmra.mrb[52].mxu1 %v3826_v52  ;;  %1130 = vmatmul.mubr.bf16.gmra.mrb[52].mxu0 %v4075_v39 }
  0xa4   : > { %1571 = vmatprep.mubr.bf16.mxu1 %v3950_v21  ;;  %1137 = vmatprep.mubr.bf16.mxu0 %v4179_v17 }
  0xab   : > { %1572 = vmatmul.mubr.bf16.gmra.mrb[56].mxu1 %v3848_v2  ;;  %1138 = vmatmul.mubr.bf16.gmra.mrb[56].mxu0 %v4160_v54 }
  0xac   : > { %1579 = vmatprep.mubr.bf16.mxu1 %v3985_v53  ;;  %1145 = vmatprep.mubr.bf16.mxu0 %v4208_v42 }
  0xb3   : > { %1580 = vmatmul.mubr.bf16.gmra.mrb[60].mxu1 %v3937_v18  ;;  %1146 = vmatmul.mubr.bf16.gmra.mrb[60].mxu0 %v4176_v13 }
  0xb4   : > { %1587 = vmatprep.mubr.bf16.mxu1 %v4033_v28  ;;  %3181 = vmatprep.mubr.bf16.mxu0 %v4184_v0 }
  0xbb   : > { %1588 = vmatmul.mubr.bf16.gmra.mrb[64].mxu1 %v3955_v31  ;;  %3182 = vmatmul.mubr.bf16.vlgmr.msra.gmra.mrb[64].mxu0 %v3988_v57 }
  0xbc   : > { %1595 = vmatprep.mubr.bf16.mxu1 %v4135_v19  ;;  %3030 = vmatpush3.bf16.msra.mxu0 %v3542_v40 }
  0xbd   : > { %3185 = vmatprep.mubr.bf16.mxu0 %v4258_v33  ;;  %3031 = vmatprep.subr.bf16.mxu0 %v3543_v59 }
  0xc0   : > { %3032 = vmatpush3.bf16.msra.mxu0 %v3544_v36 }
  0xc1   : > { %3033 = vmatprep.subr.bf16.mxu0 %v3545_v20  ;;  %v4884_v20 = vld [vmem:[#allocation8_spill] sm:$0xff] }
  0xc3   : > { %1596 = vmatmul.mubr.bf16.gmra.mrb[68].mxu1 %v4037_v30  ;;  %3186 = vmatmul.mubr.bf16.gmra.mrb[68].mxu0 %v4282_v37 }
  0xc4   : > { %1603 = vmatprep.mubr.bf16.mxu1 %v4169_v11  ;;  %3034 = vmatpush3.bf16.msra.mxu0 %v3546_v41 }
  0xc5   : > { %3189 = vmatprep.mubr.bf16.mxu0 %v4294_v9  ;;  %3035 = vmatprep.subr.bf16.mxu0 %v3547_v51 }
  0xc8   : > { %3036 = vmatpush3.bf16.msra.mxu0 %v3548_v61 }
  0xc9   : > { %3037 = vmatprep.subr.bf16.mxu0 %v3550_v26 }
  0xcb   : > { %1604 = vmatmul.mubr.bf16.gmra.mrb[72].mxu1 %v4075_v39  ;;  %3190 = vmatmul.mubr.bf16.gmra.mrb[72].mxu0 %v4304_v60 }
  0xcc   : > { %1611 = vmatprep.mubr.bf16.mxu1 %v4179_v17  ;;  %3038 = vmatpush3.bf16.msra.mxu0 %v3551_v14 }
  0xcd   : > { %3193 = vmatprep.mubr.bf16.mxu0 %v4324_v7  ;;  %3039 = vmatprep.subr.bf16.mxu0 %v3552_v27 }
  0xd0   : > { %3040 = vmatpush3.bf16.msra.mxu0 %v3553_v24 }
  0xd1   : > { %3041 = vmatprep.subr.bf16.mxu0 %v3554_v62 }
  0xd3   : > { %1612 = vmatmul.mubr.bf16.gmra.mrb[76].mxu1 %v4160_v54  ;;  %3194 = vmatmul.mubr.bf16.gmra.mrb[76].mxu0 %v4329_v44 }
  0xd4   : > { %3229 = vmatprep.mubr.bf16.mxu1 %v686_v56  ;;  %3042 = vmatpush3.bf16.msra.mxu0 %v3555_v38 }
  0xd5   : > { %2026 = vmatprep.mubr.bf16.mxu0 %v3897_v35  ;;  %3043 = vmatprep.subr.bf16.mxu0 %v3556_v8  ;;  %v3560_v35 = vld [vmem:[%s4852_s1 + $0x210] sm:$0xff]  }
  0xd8   : > { %3044 = vmatpush3.bf16.msra.mxu0 %v3557_v16 }
  0xdb   : > { %3230 = vmatmul.mubr.bf16.vlgmr.msra.gmra.mrb[80].mxu1 %v4184_v0  ;;  %2027 = vmatmul.mubr.bf16.vlgmr.msra.gmra.mrb[80].mxu0 %v3905_v43  ;;  %v3562_v43 = vld [vmem:[%s4852_s1 + $0x220] sm:$0xff]   ;;  %v4880_v0 = vld [vmem:[#allocation4_spill] sm:$0xff] }
  0xdc   : > { %3262 = vmatpush3.bf16.msra.mxu1 %v4355_v50  ;;  %3233 = vmatprep.mubr.bf16.mxu1 %v3988_v57  ;;  %v4882_v50 = vld [vmem:[#allocation6_spill] sm:$0xff] }
  0xdd   : > { %2034 = vmatprep.mubr.bf16.mxu0 %v4043_v32  ;;  %3263 = vmatprep.subr.bf16.mxu1 %v3559_v45  ;;  %v3563_v32 = vld [vmem:[%s4852_s1 + $0x228] sm:$0xff]  }
  0xe0   : > { %3264 = vmatpush3.bf16.msra.mxu1 %v3559_v45 }
  0xe1   : > { %3265 = vmatprep.subr.bf16.mxu1 %v3560_v35 }
  0xe3   : > { %3234 = vmatmul.mubr.bf16.gmra.mrb[84].mxu1 %v4258_v33  ;;  %2035 = vmatmul.mubr.bf16.gmra.mrb[84].mxu0 %v4019_v5  ;;  %v3564_v5 = vld [vmem:[%s4852_s1 + $0x230] sm:$0xff]  }
  0xe4   : > { %3237 = vmatprep.mubr.bf16.mxu1 %v4282_v37  ;;  %2042 = vmatprep.mubr.bf16.mxu0 %v4114_v48  ;;  %v3565_v48 = vld [vmem:[%s4852_s1 + $0x238] sm:$0xff]  }
  0xe5   : > { %3266 = vmatpush3.bf16.msra.mxu1 %v3560_v35 }
  0xe6   : > { %3267 = vmatprep.subr.bf16.mxu1 %v3561_v46 }
  0xe9   : > { %3268 = vmatpush3.bf16.msra.mxu1 %v3561_v46 }
  0xea   : > { %3269 = vmatprep.subr.bf16.mxu1 %v3562_v43 }
  0xeb   : > { %3238 = vmatmul.mubr.bf16.gmra.mrb[88].mxu1 %v4294_v9  ;;  %2043 = vmatmul.mubr.bf16.gmra.mrb[88].mxu0 %v4092_v29  ;;  %v4879_v29 = vld [vmem:[#allocation3_spill] sm:$0xff] }
  0xec   : > { %3241 = vmatprep.mubr.bf16.mxu1 %v4304_v60  ;;  %2050 = vmatprep.mubr.bf16.mxu0 %v4231_v12 }
  0xed   : > { %3270 = vmatpush3.bf16.msra.mxu1 %v3562_v43 }
  0xee   : > { %3271 = vmatprep.subr.bf16.mxu1 %v3563_v32 }
  0xf1   : > { %3272 = vmatpush3.bf16.msra.mxu1 %v3563_v32 }
  0xf2   : > { %3273 = vmatprep.subr.bf16.mxu1 %v3564_v5 }
  0xf3   : > { %3242 = vmatmul.mubr.bf16.gmra.mrb[92].mxu1 %v4324_v7  ;;  %2051 = vmatmul.mubr.bf16.gmra.mrb[92].mxu0 %v4212_v55  ;;  %v4881_v55 = vld [vmem:[#allocation5_spill] sm:$0xff] }
  0xf4   : > { %3245 = vmatprep.mubr.bf16.mxu1 %v4329_v44  ;;  %2058 = vmatprep.mubr.bf16.mxu0 %v4246_v6 }
  0xf5   : > { %3274 = vmatpush3.bf16.msra.mxu1 %v3564_v5 }
  0xf6   : > { %3275 = vmatprep.subr.bf16.mxu1 %v3565_v48 }
  0xf9   : > { %3276 = vmatpush3.bf16.msra.mxu1 %v3565_v48 }
  0xfb   : > { %3246 = vmatmul.mubr.bf16.gmra.mrb[0].mxu1 %v3851_v4  ;;  %2059 = vmatmul.mubr.bf16.gmra.mrb[96].mxu0 %v4269_v58 }
  0xfc   : > { %3249 = vmatprep.mubr.bf16.mxu1 %v4879_v29  ;;  %2066 = vmatprep.mubr.bf16.mxu0 %v4277_v63  ;;  %v4883_v63 = vld [vmem:[#allocation7_spill] sm:$0xff] }
 0x103   : > { %3250 = vmatmul.mubr.bf16.gmra.mrb[4].mxu1 %v4880_v0  ;;  %2067 = vmatmul.mubr.bf16.gmra.mrb[100].mxu0 %v4309_v23 }
 0x104   : > { %3253 = vmatprep.mubr.bf16.mxu1 %v4881_v55  ;;  %2074 = vmatprep.mubr.bf16.mxu0 %v4315_v34 }
 0x109   : > { %v2773_v12 = vpop.f32.mrb[0].mxu0 }
 0x10a   : > { %v2774_v6 = vpop.f32.mrb[1].mxu0 }
 0x10b   : > { %v4503_v47 = vadd.f32 %v2774_v6, %v2773_v12  ;;  %v2776_v49 = vpop.f32.mrb[2].mxu0  ;;  %3254 = vmatmul.mubr.bf16.gmra.mrb[8].mxu1 %v4882_v50  ;;  %2075 = vmatmul.mubr.bf16.gmra.mrb[104].mxu0 %v4341_v1 }
 0x10c   : > { %v2777_v58 = vpop.f32.mrb[3].mxu0  ;;  %3257 = vmatprep.mubr.bf16.mxu1 %v4883_v63  ;;  %2082 = vmatprep.mubr.bf16.mxu0 %v4346_v22 }
 0x10d   : > { %v4507_v40 = vadd.f32 %v2777_v58, %v2776_v49 }
 0x111   : > { %v2779_v23 = vpop.f32.mrb[4].mxu0 }
 0x112   : > { %v2780_v59 = vpop.f32.mrb[5].mxu0 }
 0x113   : > { %v4511_v36 = vadd.f32 %v2780_v59, %v2779_v23  ;;  %v2782_v34 = vpop.f32.mrb[6].mxu0  ;;  %3258 = vmatmul.mubr.bf16.gmra.mrb[12].mxu1 %v4884_v20  ;;  %2083 = vmatmul.mubr.bf16.gmra.mrb[108].mxu0 %v3826_v52 }
 0x114   : > { %v2783_v41 = vpop.f32.mrb[7].mxu0  ;;  %3277 = vmatprep.mubr.bf16.mxu1 %v3988_v57  ;;  %2090 = vmatprep.mubr.bf16.mxu0 %v3950_v21 }
 0x115   : > { %v4515_v51 = vadd.f32 %v2783_v41, %v2782_v34 }
 0x11b   : > { %3278 = vmatmul.mubr.bf16.vlgmr.msra.gmra.mrb[80].mxu1 %v4258_v33  ;;  %2091 = vmatmul.mubr.bf16.gmra.mrb[112].mxu0 %v3848_v2 }
 0x11c   : > { %3281 = vmatprep.mubr.bf16.mxu1 %v4282_v37  ;;  %2098 = vmatprep.mubr.bf16.mxu0 %v3985_v53 }
 0x11d   : > { %v2785_v1 = vpop.f32.mrb[8].mxu0 }
 0x11e   : > { %v2786_v22 = vpop.f32.mrb[9].mxu0 }
 0x11f   : > { %v4523_v61 = vadd.f32 %v2786_v22, %v2785_v1  ;;  %v2788_v26 = vpop.f32.mrb[10].mxu0 }
 0x120   : > { %v2789_v52 = vpop.f32.mrb[11].mxu0 }
 0x121   : > { %v4525_v14 = vadd.f32 %v2789_v52, %v2788_v26 }
 0x123   : > { %3282 = vmatmul.mubr.bf16.gmra.mrb[84].mxu1 %v4294_v9  ;;  %2099 = vmatmul.mubr.bf16.gmra.mrb[116].mxu0 %v3937_v18 }
 0x124   : > { %3285 = vmatprep.mubr.bf16.mxu1 %v4304_v60  ;;  %2106 = vmatprep.mubr.bf16.mxu0 %v4033_v28 }
 0x125   : > { %v2791_v21 = vpop.f32.mrb[12].mxu0 }
 0x126   : > { %v2792_v2 = vpop.f32.mrb[13].mxu0 }
 0x127   : > { %v4531_v57 = vadd.f32 %v2792_v2, %v2791_v21  ;;  %v2794_v33 = vpop.f32.mrb[14].mxu0 }
 0x128   : > { %v2795_v53 = vpop.f32.mrb[15].mxu0 }
 0x129   : > { %v4533_v37 = vadd.f32 %v2795_v53, %v2794_v33 }
 0x12b   : > { %3286 = vmatmul.mubr.bf16.gmra.mrb[88].mxu1 %v4324_v7  ;;  %2107 = vmatmul.mubr.bf16.gmra.mrb[120].mxu0 %v3955_v31 }
 0x12c   : > { %3289 = vmatprep.mubr.bf16.mxu1 %v4329_v44  ;;  %2114 = vmatprep.mubr.bf16.mxu0 %v4135_v19 }
 0x12e   : > { %v2909_v18 = vpop.f32.mrb[16].mxu1  ;;  %v2797_v9 = vpop.f32.mrb[16].mxu0 }
 0x12f   : > { %v2910_v60 = vpop.f32.mrb[17].mxu1  ;;  %v2798_v25 = vpop.f32.mrb[17].mxu0 }
 0x130   : > { %v4539_v27 = vadd.f32 %v2910_v60, %v2909_v18  ;;  %v2912_v28 = vpop.f32.mrb[18].mxu1  ;;  %v4541_v24 = vadd.f32 %v2798_v25, %v2797_v9  ;;  %v2800_v15 = vpop.f32.mrb[18].mxu0 }
 0x131   : > { %v2913_v62 = vpop.f32.mrb[19].mxu1  ;;  %v2801_v56 = vpop.f32.mrb[19].mxu0 }
 0x132   : > { %v4543_v38 = vadd.f32 %v2913_v62, %v2912_v28  ;;  %v4545_v7 = vadd.f32 %v2801_v56, %v2800_v15 }
 0x133   : > { %3290 = vmatmul.mubr.bf16.gmra.mrb[92].mxu1 %v3851_v4  ;;  %2115 = vmatmul.mubr.bf16.gmra.mrb[124].mxu0 %v4037_v30 }
 0x134   : > { %3293 = vmatprep.mubr.bf16.mxu1 %v4879_v29  ;;  %2122 = vmatprep.mubr.bf16.mxu0 %v4169_v11  ;;  %v409_v29 = vld [vmem:[#allocation2 + $0x1a8] sm:$0x3] }
 0x135   : > { %v1794_v2 = vrot.slane %v409_v29, 2 }
 0x136   : > { %v2915_v31 = vpop.f32.mrb[20].mxu1  ;;  %v2803_v19 = vpop.f32.mrb[20].mxu0 }
 0x137   : > { %v2916_v44 = vpop.f32.mrb[21].mxu1  ;;  %v2804_v8 = vpop.f32.mrb[21].mxu0  ;;  %v1795_v60 = vsel %vm571_vm1, %v4426_v10, %v1794_v2 }
 0x138   : > { %v4551_v16 = vadd.f32 %v2916_v44, %v2915_v31  ;;  %v2918_v45 = vpop.f32.mrb[22].mxu1  ;;  %v4553_v35 = vadd.f32 %v2804_v8, %v2803_v19  ;;  %v2806_v46 = vpop.f32.mrb[22].mxu0  ;;  %v1800_v62 = vpack.c.bf16 %v1795_v60, %v4426_v10 }
 0x139   : > { %v2919_v43 = vpop.f32.mrb[23].mxu1  ;;  %v2807_v32 = vpop.f32.mrb[23].mxu0 }
 0x13a   : > { %v4555_v5 = vadd.f32 %v2919_v43, %v2918_v45  ;;  %v4557_v4 = vadd.f32 %v2807_v32, %v2806_v46  ;;  %v4886_v43 = vld [vmem:[#allocation10_spill] sm:$0xff] }
 0x13b   : > { %3294 = vmatmul.mubr.bf16.gmra.mrb[0].mxu1 %v4880_v0  ;;  %2123 = vmatmul.mubr.bf16.gmra.mrb[128].mxu0 %v4075_v39  ;;  %v1784_v39 = vrot.slane %v4200_v3, 1 }
 0x13c   : > { %3297 = vmatprep.mubr.bf16.mxu1 %v4881_v55  ;;  %2130 = vmatprep.mubr.bf16.mxu0 %v4179_v17  ;;  %v1787_v55 = vrot.slane %v409_v29, 1 }
 0x13e   : > { %v2921_v30 = vpop.f32.mrb[24].mxu1  ;;  %v2809_v11 = vpop.f32.mrb[24].mxu0  ;;  %v1788_v1 = vsel %vm458_vm0, %v1784_v39, %v1787_v55 }
 0x13f   : > { %v2922_v48 = vpop.f32.mrb[25].mxu1  ;;  %v2810_v12 = vpop.f32.mrb[25].mxu0  ;;  %v1799_v18 = vpack.c.bf16 %v1788_v1, %v1784_v39 }
 0x140   : > { %v4563_v6 = vadd.f32 %v2922_v48, %v2921_v30  ;;  %v2924_v49 = vpop.f32.mrb[26].mxu1  ;;  %v4565_v58 = vadd.f32 %v2810_v12, %v2809_v11  ;;  %v2812_v23 = vpop.f32.mrb[26].mxu0 }
 0x141   : > { %v2925_v59 = vpop.f32.mrb[27].mxu1  ;;  %v2813_v34 = vpop.f32.mrb[27].mxu0 }
 0x142   : > { %v4567_v0 = vadd.f32 %v2925_v59, %v2924_v49  ;;  %v4570_v41 = vadd.f32 %v2813_v34, %v2812_v23 }
 0x143   : > { %3298 = vmatmul.mubr.bf16.gmra.mrb[4].mxu1 %v4882_v50  ;;  %2131 = vmatmul.mubr.bf16.gmra.mrb[132].mxu0 %v4160_v54 }
 0x144   : > { %3301 = vmatprep.mubr.bf16.mxu1 %v4883_v63  ;;  %2138 = vmatprep.mubr.bf16.mxu0 %v4208_v42  ;;  %v4885_v42 = vld [vmem:[#allocation9_spill] sm:$0xff] }
 0x146   : > { %v2927_v17 = vpop.f32.mrb[28].mxu1  ;;  %v2815_v22 = vpop.f32.mrb[28].mxu0 }
 0x147   : > { %v2928_v26 = vpop.f32.mrb[29].mxu1  ;;  %v2816_v52 = vpop.f32.mrb[29].mxu0 }
 0x148   : > { %v4577_v21 = vadd.f32 %v2928_v26, %v2927_v17  ;;  %v2930_v3 = vpop.f32.mrb[30].mxu1  ;;  %v4579_v33 = vadd.f32 %v2816_v52, %v2815_v22  ;;  %v2818_v53 = vpop.f32.mrb[30].mxu0 }
 0x149   : > { %v2931_v50 = vpop.f32.mrb[31].mxu1  ;;  %v2819_v54 = vpop.f32.mrb[31].mxu0 }
 0x14a   : > { %v4581_v9 = vadd.f32 %v2931_v50, %v2930_v3  ;;  %v4583_v63 = vadd.f32 %v2819_v54, %v2818_v53 }
 0x14b   : > { %3302 = vmatmul.mubr.bf16.gmra.mrb[8].mxu1 %v4884_v20  ;;  %2139 = vmatmul.mubr.bf16.gmra.mrb[136].mxu0 %v4176_v13 }
 0x14c   : > { %3305 = vmatprep.mubr.bf16.mxu1 %v4885_v42  ;;  %2146 = vmatprep.mubr.bf16.mxu0 %v1799_v18 }
 0x14e   : > { %v2933_v25 = vpop.f32.mrb[32].mxu1  ;;  %v2821_v28 = vpop.f32.mrb[32].mxu0 }
 0x14f   : > { %v2934_v15 = vpop.f32.mrb[33].mxu1  ;;  %v2822_v56 = vpop.f32.mrb[33].mxu0 }
 0x150   : > { %v4591_v31 = vadd.f32 %v2934_v15, %v2933_v25  ;;  %v2936_v19 = vpop.f32.mrb[34].mxu1  ;;  %v2823_v44 = vadd.f32 %v2822_v56, %v2821_v28  ;;  %v2824_v8 = vpop.f32.mrb[34].mxu0 }
 0x151   : > { %v2937_v20 = vpop.f32.mrb[35].mxu1  ;;  %v2825_v45 = vpop.f32.mrb[35].mxu0 }
 0x152   : > { %v4593_v13 = vadd.f32 %v2937_v20, %v2936_v19  ;;  %v2826_v46 = vadd.f32 %v2825_v45, %v2824_v8 }
 0x153   : > { %3306 = vmatmul.mubr.bf16.gmra.mrb[12].mxu1 %v1800_v62  ;;  %2147 = vmatmul.mubr.bf16.gmra.mrb[140].mxu0 %v4886_v43 }
 0x156   : > { %v2939_v32 = vpop.f32.mrb[36].mxu1  ;;  %v2827_v30 = vpop.f32.mrb[36].mxu0 }
 0x157   : > { %v2940_v11 = vpop.f32.mrb[37].mxu1  ;;  %v2828_v48 = vpop.f32.mrb[37].mxu0 }
 0x158   : > { %v4596_v29 = vadd.f32 %v2940_v11, %v2939_v32  ;;  %v2942_v10 = vpop.f32.mrb[38].mxu1  ;;  %v2829_v12 = vadd.f32 %v2828_v48, %v2827_v30  ;;  %v2830_v49 = vpop.f32.mrb[38].mxu0 }
 0x159   : > { %v2943_v23 = vpop.f32.mrb[39].mxu1  ;;  %v2831_v59 = vpop.f32.mrb[39].mxu0 }
 0x15a   : > { %v4598_v34 = vadd.f32 %v2943_v23, %v2942_v10  ;;  %v2832_v39 = vadd.f32 %v2831_v59, %v2830_v49 }
 0x15e   : > { %v2945_v55 = vpop.f32.mrb[40].mxu1  ;;  %v2833_v17 = vpop.f32.mrb[40].mxu0 }
 0x15f   : > { %v2946_v1 = vpop.f32.mrb[41].mxu1  ;;  %v2834_v22 = vpop.f32.mrb[41].mxu0 }
 0x160   : > { %v4600_v26 = vadd.f32 %v2946_v1, %v2945_v55  ;;  %v2948_v52 = vpop.f32.mrb[42].mxu1  ;;  %v2835_v3 = vadd.f32 %v2834_v22, %v2833_v17  ;;  %v2836_v2 = vpop.f32.mrb[42].mxu0 }
 0x161   : > { %v2949_v53 = vpop.f32.mrb[43].mxu1  ;;  %v2837_v50 = vpop.f32.mrb[43].mxu0 }
 0x162   : > { %v4602_v18 = vadd.f32 %v2949_v53, %v2948_v52  ;;  %v2838_v54 = vadd.f32 %v2837_v50, %v2836_v2 }
 0x166   : > { %v2951_v42 = vpop.f32.mrb[44].mxu1  ;;  %v2839_v60 = vpop.f32.mrb[44].mxu0 }
 0x167   : > { %v2952_v25 = vpop.f32.mrb[45].mxu1  ;;  %v2840_v28 = vpop.f32.mrb[45].mxu0 }
 0x168   : > { %v4604_v15 = vadd.f32 %v2952_v25, %v2951_v42  ;;  %v2954_v62 = vpop.f32.mrb[46].mxu1  ;;  %v2841_v56 = vadd.f32 %v2840_v28, %v2839_v60  ;;  %v2842_v19 = vpop.f32.mrb[46].mxu0 }
 0x169   : > { %v2955_v8 = vpop.f32.mrb[47].mxu1  ;;  %v2843_v20 = vpop.f32.mrb[47].mxu0 }
 0x16a   : > { %v4606_v45 = vadd.f32 %v2955_v8, %v2954_v62  ;;  %v2844_v43 = vadd.f32 %v2843_v20, %v2842_v19 }
 0x16e   : > { %v2957_v32 = vpop.f32.mrb[48].mxu1  ;;  %v2845_v30 = vpop.f32.mrb[48].mxu0 }
 0x16f   : > { %v2958_v11 = vpop.f32.mrb[49].mxu1  ;;  %v2846_v48 = vpop.f32.mrb[49].mxu0 }
 0x170   : > { %v2959_v10 = vadd.f32 %v2958_v11, %v2957_v32  ;;  %v2960_v49 = vpop.f32.mrb[50].mxu1  ;;  %v2847_v23 = vadd.f32 %v2846_v48, %v2845_v30  ;;  %v2848_v59 = vpop.f32.mrb[50].mxu0 }
 0x171   : > { %v2961_v55 = vpop.f32.mrb[51].mxu1  ;;  %v2849_v1 = vpop.f32.mrb[51].mxu0 }
 0x172   : > { %v4608_v17 = vadd.f32 %v2959_v10, %v2823_v44  ;;  %v2962_v22 = vadd.f32 %v2961_v55, %v2960_v49  ;;  %v2850_v52 = vadd.f32 %v2849_v1, %v2848_v59 }
 0x174   : > { %v4610_v2 = vadd.f32 %v2962_v22, %v2826_v46 }
 0x176   : > { %v2963_v53 = vpop.f32.mrb[52].mxu1  ;;  %v2851_v50 = vpop.f32.mrb[52].mxu0 }
 0x177   : > { %v2964_v42 = vpop.f32.mrb[53].mxu1  ;;  %v2852_v60 = vpop.f32.mrb[53].mxu0 }
 0x178   : > { %v2965_v25 = vadd.f32 %v2964_v42, %v2963_v53  ;;  %v2966_v28 = vpop.f32.mrb[54].mxu1  ;;  %v4612_v62 = vadd.f32 %v2852_v60, %v2851_v50  ;;  %v2854_v19 = vpop.f32.mrb[54].mxu0 }
 0x179   : > { %v2967_v8 = vpop.f32.mrb[55].mxu1  ;;  %v2855_v32 = vpop.f32.mrb[55].mxu0 }
 0x17a   : > { %v4614_v20 = vadd.f32 %v2965_v25, %v2829_v12  ;;  %v2968_v44 = vadd.f32 %v2967_v8, %v2966_v28  ;;  %v4616_v30 = vadd.f32 %v2855_v32, %v2854_v19 }
 0x17c   : > { %v4618_v11 = vadd.f32 %v2968_v44, %v2832_v39 }
 0x17e   : > { %v2969_v46 = vpop.f32.mrb[56].mxu1  ;;  %v2857_v48 = vpop.f32.mrb[56].mxu0 }
 0x17f   : > { %v2970_v10 = vpop.f32.mrb[57].mxu1  ;;  %v2858_v49 = vpop.f32.mrb[57].mxu0 }
 0x180   : > { %v2971_v59 = vadd.f32 %v2970_v10, %v2969_v46  ;;  %v2972_v55 = vpop.f32.mrb[58].mxu1  ;;  %v4620_v1 = vadd.f32 %v2858_v49, %v2857_v48  ;;  %v2860_v22 = vpop.f32.mrb[58].mxu0 }
 0x181   : > { %v2973_v53 = vpop.f32.mrb[59].mxu1  ;;  %v2861_v12 = vpop.f32.mrb[59].mxu0 }
 0x182   : > { %v4622_v50 = vadd.f32 %v2971_v59, %v2835_v3  ;;  %v2974_v42 = vadd.f32 %v2973_v53, %v2972_v55  ;;  %v4624_v60 = vadd.f32 %v2861_v12, %v2860_v22 }
 0x184   : > { %4887 = vst [vmem:[#allocation3_spill] sm:$0xff] %v4622_v50  ;;  %v4626_v25 = vadd.f32 %v2974_v42, %v2838_v54 }
 0x186   : > { %4888 = vst [vmem:[#allocation4_spill] sm:$0xff] %v4626_v25  ;;  %v2975_v39 = vpop.f32.mrb[60].mxu1  ;;  %v2863_v28 = vpop.f32.mrb[60].mxu0 }
 0x187   : > { %v2976_v19 = vpop.f32.mrb[61].mxu1  ;;  %v2864_v8 = vpop.f32.mrb[61].mxu0 }
 0x188   : > { %v2977_v32 = vadd.f32 %v2976_v19, %v2975_v39  ;;  %v2978_v44 = vpop.f32.mrb[62].mxu1  ;;  %v4628_v46 = vadd.f32 %v2864_v8, %v2863_v28  ;;  %v2866_v48 = vpop.f32.mrb[62].mxu0 }
 0x189   : > { %v2979_v10 = vpop.f32.mrb[63].mxu1  ;;  %v2867_v3 = vpop.f32.mrb[63].mxu0 }
 0x18a   : > { %v4630_v49 = vadd.f32 %v2977_v32, %v2841_v56  ;;  %v2980_v59 = vadd.f32 %v2979_v10, %v2978_v44  ;;  %v4632_v50 = vadd.f32 %v2867_v3, %v2866_v48 }
 0x18c   : > { %v4634_v55 = vadd.f32 %v2980_v59, %v2844_v43 }
 0x18e   : > { %v2981_v54 = vpop.f32.mrb[64].mxu1  ;;  %v3183_v22 = vpop.f32.mrb[64].mxu0 }
 0x18f   : > { %v2982_v53 = vpop.f32.mrb[65].mxu1  ;;  %v1197_v12 = vadd.f32 %v3183_v22, %v4511_v36  ;;  %v1188_v42 = vpop.f32.mrb[65].mxu0 }
 0x190   : > { %v2983_v39 = vadd.f32 %v2982_v53, %v2981_v54  ;;  %v2984_v19 = vpop.f32.mrb[66].mxu1  ;;  %v1189_v28 = vadd.f32 %v4503_v47, %v1188_v42  ;;  %v3184_v8 = vpop.f32.mrb[66].mxu0 }
 0x191   : > { %v2985_v25 = vpop.f32.mrb[67].mxu1  ;;  %v4639_v56 = vadd.f32 %v4551_v16, %v1197_v12  ;;  %v1200_v43 = vadd.f32 %v3184_v8, %v4515_v51  ;;  %v1191_v44 = vpop.f32.mrb[67].mxu0 }
 0x192   : > { %v4641_v32 = vadd.f32 %v2983_v39, %v2847_v23  ;;  %v2986_v48 = vadd.f32 %v2985_v25, %v2984_v19  ;;  %v4645_v10 = vadd.f32 %v4539_v27, %v1189_v28  ;;  %v1192_v36 = vadd.f32 %v4507_v40, %v1191_v44 }
 0x193   : > { %v4649_v3 = vadd.f32 %v4555_v5, %v1200_v43 }
 0x194   : > { %v4651_v47 = vadd.f32 %v2986_v48, %v2850_v52  ;;  %v4654_v59 = vadd.f32 %v4543_v38, %v1192_v36 }
 0x196   : > { %v2987_v16 = vpop.f32.mrb[68].mxu1  ;;  %v3187_v23 = vpop.f32.mrb[68].mxu0 }
 0x197   : > { %v2988_v54 = vpop.f32.mrb[69].mxu1  ;;  %v1213_v51 = vadd.f32 %v3187_v23, %v4531_v57  ;;  %v1204_v22 = vpop.f32.mrb[69].mxu0 }
 0x198   : > { %v2989_v25 = vadd.f32 %v2988_v54, %v2987_v16  ;;  %v2990_v53 = vpop.f32.mrb[70].mxu1  ;;  %v1205_v27 = vadd.f32 %v4523_v61, %v1204_v22  ;;  %v3188_v12 = vpop.f32.mrb[70].mxu0 }
 0x199   : > { %v2991_v40 = vpop.f32.mrb[71].mxu1  ;;  %v4659_v5 = vadd.f32 %v4577_v21, %v1213_v51  ;;  %v1216_v38 = vadd.f32 %v3188_v12, %v4533_v37  ;;  %v1207_v42 = vpop.f32.mrb[71].mxu0 }
 0x19a   : > { %v4662_v52 = vadd.f32 %v2989_v25, %v4612_v62  ;;  %v2992_v39 = vadd.f32 %v2991_v40, %v2990_v53  ;;  %v4666_v19 = vadd.f32 %v4563_v6, %v1205_v27  ;;  %v1208_v57 = vadd.f32 %v4525_v14, %v1207_v42 }
 0x19b   : > { %v4670_v28 = vadd.f32 %v4581_v9, %v1216_v38 }
 0x19c   : > { %v4673_v61 = vadd.f32 %v2992_v39, %v4616_v30  ;;  %v4676_v21 = vadd.f32 %v4567_v0, %v1208_v57 }
 0x19e   : > { %v2993_v62 = vpop.f32.mrb[72].mxu1  ;;  %v3191_v8 = vpop.f32.mrb[72].mxu0 }
 0x19f   : > { %v2994_v43 = vpop.f32.mrb[73].mxu1  ;;  %v1229_v37 = vadd.f32 %v3191_v8, %v4553_v35  ;;  %v1220_v44 = vpop.f32.mrb[73].mxu0 }
 0x1a0   : > { %v2995_v48 = vadd.f32 %v2994_v43, %v2993_v62  ;;  %v2996_v6 = vpop.f32.mrb[74].mxu1  ;;  %v1221_v36 = vadd.f32 %v4541_v24, %v1220_v44  ;;  %v3192_v14 = vpop.f32.mrb[74].mxu0 }
 0x1a1   : > { %v2997_v16 = vpop.f32.mrb[75].mxu1  ;;  %v4681_v9 = vadd.f32 %v4596_v29, %v1229_v37  ;;  %v1232_v0 = vadd.f32 %v3192_v14, %v4557_v4  ;;  %v1223_v23 = vpop.f32.mrb[75].mxu0 }
 0x1a2   : > { %v4684_v30 = vadd.f32 %v2995_v48, %v4620_v1  ;;  %v2998_v54 = vadd.f32 %v2997_v16, %v2996_v6  ;;  %v4688_v51 = vadd.f32 %v4591_v31, %v1221_v36  ;;  %v1224_v35 = vadd.f32 %v4545_v7, %v1223_v23 }
 0x1a3   : > { %v4692_v22 = vadd.f32 %v4598_v34, %v1232_v0 }
 0x1a4   : > { %v4695_v24 = vadd.f32 %v2998_v54, %v4624_v60  ;;  %v1529_v29 = vadd.f32 %v4593_v13, %v1224_v35 }
 0x1a6   : > { %v2999_v25 = vpop.f32.mrb[76].mxu1  ;;  %v3195_v1 = vpop.f32.mrb[76].mxu0 }
 0x1a7   : > { %v3000_v53 = vpop.f32.mrb[77].mxu1  ;;  %v1245_v4 = vadd.f32 %v3195_v1, %v4579_v33  ;;  %v1236_v27 = vpop.f32.mrb[77].mxu0 }
 0x1a8   : > { %v3001_v12 = vadd.f32 %v3000_v53, %v2999_v25  ;;  %v3002_v40 = vpop.f32.mrb[78].mxu1  ;;  %v1237_v31 = vadd.f32 %v4565_v58, %v1236_v27  ;;  %v3196_v38 = vpop.f32.mrb[78].mxu0 }
 0x1a9   : > { %v3003_v7 = vpop.f32.mrb[79].mxu1  ;;  %v4701_v34 = vadd.f32 %v4604_v15, %v1245_v4  ;;  %v1248_v13 = vadd.f32 %v3196_v38, %v4583_v63  ;;  %v1239_v42 = vpop.f32.mrb[79].mxu0 }
 0x1aa   : > { %v4704_v60 = vadd.f32 %v3001_v12, %v4628_v46  ;;  %v3004_v39 = vadd.f32 %v3003_v7, %v3002_v40  ;;  %v1542_v57 = vadd.f32 %v4600_v26, %v1237_v31  ;;  %v1240_v33 = vadd.f32 %v4570_v41, %v1239_v42 }
 0x1ab   : > { %v4710_v62 = vadd.f32 %v4606_v45, %v1248_v13 }
 0x1ac   : > { %v4713_v58 = vadd.f32 %v3004_v39, %v4632_v50  ;;  %v1545_v15 = vadd.f32 %v4602_v18, %v1240_v33 }
 0x1ae   : > { %v3045_v8 = vpop.f32.mrb[80].mxu0 }
 0x1af   : > { %v3046_v43 = vpop.f32.mrb[81].mxu0 }
 0x1b0   : > { %v3047_v46 = vadd.f32 %v3046_v43, %v3045_v8  ;;  %v3048_v37 = vpop.f32.mrb[82].mxu0 }
 0x1b1   : > { %v3049_v44 = vpop.f32.mrb[83].mxu0 }
 0x1b2   : > { %v3050_v63 = vadd.f32 %v3049_v44, %v3048_v37  ;;  %v4717_v48 = vadd.f32 %v3047_v46, %v4645_v10 }
 0x1b4   : > { %v4720_v26 = vadd.f32 %v3050_v63, %v4654_v59 }
 0x1b6   : > { %v3051_v41 = vpop.f32.mrb[84].mxu0 }
 0x1b7   : > { %v3052_v45 = vpop.f32.mrb[85].mxu0 }
 0x1b8   : > { %v3053_v6 = vadd.f32 %v3052_v45, %v3051_v41  ;;  %v3054_v36 = vpop.f32.mrb[86].mxu0 }
 0x1b9   : > { %v3055_v50 = vpop.f32.mrb[87].mxu0 }
 0x1ba   : > { %v3056_v14 = vadd.f32 %v3055_v50, %v3054_v36  ;;  %v3327_v18 = vadd.f32 %v3053_v6, %v4639_v56 }
 0x1bc   : > { %v3335_v16 = vadd.f32 %v3056_v14, %v4649_v3 }
 0x1be   : > { %v3057_v0 = vpop.f32.mrb[88].mxu0 }
 0x1bf   : > { %v3058_v23 = vpop.f32.mrb[89].mxu0 }
 0x1c0   : > { %v3059_v54 = vadd.f32 %v3058_v23, %v3057_v0  ;;  %v3060_v35 = vpop.f32.mrb[90].mxu0 }
 0x1c1   : > { %v3061_v25 = vpop.f32.mrb[91].mxu0 }
 0x1c2   : > { %v3062_v10 = vadd.f32 %v3061_v25, %v3060_v35  ;;  %v4725_v1 = vadd.f32 %v3059_v54, %v4666_v19 }
 0x1c4   : > { %v4728_v59 = vadd.f32 %v3062_v10, %v4676_v21 }
 0x1c6   : > { %v3063_v53 = vpop.f32.mrb[92].mxu0 }
 0x1c7   : > { %v3064_v4 = vpop.f32.mrb[93].mxu0 }
 0x1c8   : > { %v3065_v27 = vadd.f32 %v3064_v4, %v3063_v53  ;;  %v3066_v12 = vpop.f32.mrb[94].mxu0 }
 0x1c9   : > { %v3067_v40 = vpop.f32.mrb[95].mxu0 }
 0x1ca   : > { %v3068_v56 = vadd.f32 %v3067_v40, %v3066_v12  ;;  %v4731_v3 = vadd.f32 %v3065_v27, %v4659_v5 }
 0x1cc   : > { %v4734_v31 = vadd.f32 %v3068_v56, %v4670_v28 }
 0x1ce   : > { %v3069_v38 = vpop.f32.mrb[96].mxu0 }
 0x1cf   : > { %v3070_v7 = vpop.f32.mrb[97].mxu0 }
 0x1d0   : > { %v3071_v13 = vadd.f32 %v3070_v7, %v3069_v38  ;;  %v3072_v19 = vpop.f32.mrb[98].mxu0 }
 0x1d1   : > { %v3073_v42 = vpop.f32.mrb[99].mxu0 }
 0x1d2   : > { %v3074_v39 = vadd.f32 %v3073_v42, %v3072_v19  ;;  %v4737_v21 = vadd.f32 %v3071_v13, %v4688_v51 }
 0x1d4   : > { %v4739_v33 = vadd.f32 %v3074_v39, %v1529_v29 }
 0x1d6   : > { %v3075_v8 = vpop.f32.mrb[100].mxu0 }
 0x1d7   : > { %v3076_v43 = vpop.f32.mrb[101].mxu0 }
 0x1d8   : > { %v3077_v46 = vadd.f32 %v3076_v43, %v3075_v8  ;;  %v3078_v37 = vpop.f32.mrb[102].mxu0 }
 0x1d9   : > { %v3079_v5 = vpop.f32.mrb[103].mxu0 }
 0x1da   : > { %v3080_v44 = vadd.f32 %v3079_v5, %v3078_v37  ;;  %v4742_v28 = vadd.f32 %v3077_v46, %v4681_v9 }
 0x1dc   : > { %v4745_v63 = vadd.f32 %v3080_v44, %v4692_v22 }
 0x1de   : > { %v3081_v41 = vpop.f32.mrb[104].mxu0 }
 0x1df   : > { %v3082_v45 = vpop.f32.mrb[105].mxu0 }
 0x1e0   : > { %v3083_v6 = vadd.f32 %v3082_v45, %v3081_v41  ;;  %v3084_v51 = vpop.f32.mrb[106].mxu0 }
 0x1e1   : > { %v3085_v36 = vpop.f32.mrb[107].mxu0 }
 0x1e2   : > { %v3086_v29 = vadd.f32 %v3085_v36, %v3084_v51  ;;  %v4747_v50 = vadd.f32 %v3083_v6, %v1542_v57 }
 0x1e4   : > { %v4749_v14 = vadd.f32 %v3086_v29, %v1545_v15 }
 0x1e6   : > { %v3087_v0 = vpop.f32.mrb[108].mxu0 }
 0x1e7   : > { %v3088_v23 = vpop.f32.mrb[109].mxu0 }
 0x1e8   : > { %v3089_v54 = vadd.f32 %v3088_v23, %v3087_v0  ;;  %v3090_v35 = vpop.f32.mrb[110].mxu0 }
 0x1e9   : > { %v3091_v9 = vpop.f32.mrb[111].mxu0 }
 0x1ea   : > { %v3092_v25 = vadd.f32 %v3091_v9, %v3090_v35  ;;  %v4752_v22 = vadd.f32 %v3089_v54, %v4701_v34 }
 0x1ec   : > { %v4755_v10 = vadd.f32 %v3092_v25, %v4710_v62 }
 0x1ee   : > { %v3279_v57 = vpop.f32.mrb[80].mxu1  ;;  %v3093_v15 = vpop.f32.mrb[112].mxu0 }
 0x1ef   : > { %v3328_v53 = vadd.f32 %v3327_v18, %v3279_v57  ;;  %v2189_v4 = vpop.f32.mrb[81].mxu1  ;;  %v3094_v27 = vpop.f32.mrb[113].mxu0 }
 0x1f0   : > { %v3332_v34 = vadd.f32 %v4717_v48, %v2189_v4  ;;  %v3280_v12 = vpop.f32.mrb[82].mxu1  ;;  %v3095_v62 = vadd.f32 %v3094_v27, %v3093_v15  ;;  %v3096_v40 = vpop.f32.mrb[114].mxu0 }
 0x1f1   : > { %2350 = vst [vmem:[%s4762_s23 + $0x10] sm:$0xff] %v3328_v53  ;;  %v3336_v56 = vadd.f32 %v3335_v16, %v3280_v12  ;;  %v2192_v38 = vpop.f32.mrb[83].mxu1  ;;  %v3097_v7 = vpop.f32.mrb[115].mxu0  ;;  %v2419_v43 = vmul.f32 %v3328_v53, %v3328_v53 }
 0x1f2   : > { %2348 = vst [vmem:[%s4762_s23] sm:$0xff] %v3332_v34  ;;  %v3340_v13 = vadd.f32 %v4720_v26, %v2192_v38  ;;  %v3098_v19 = vadd.f32 %v3097_v7, %v3096_v40  ;;  %v4770_v42 = vadd.f32 %v4608_v17, %v3095_v62  ;;  %v2417_v18 = vmul.f32 %v3332_v34, %v3332_v34 }
 0x1f3   : > { %2351 = vst [vmem:[%s4762_s23 + $0x18] sm:$0xff] %v3336_v56  ;;  %v2420_v41 = vmul.f32 %v3336_v56, %v3336_v56 }
 0x1f4   : > { %2349 = vst [vmem:[%s4762_s23 + $0x8] sm:$0xff] %v3340_v13  ;;  %v2380_v39 = vadd.f32 %v3340_v13, %v3332_v34  ;;  %v2418_v48 = vmul.f32 %v3340_v13, %v3340_v13  ;;  %v4774_v8 = vadd.f32 %v4610_v2, %v3098_v19 }
 0x1f6   : > { %v2381_v16 = vadd.f32 %v3328_v53, %v2380_v39  ;;  %v2449_v46 = vadd.f32 %v2418_v48, %v2417_v18  ;;  %v3283_v37 = vpop.f32.mrb[84].mxu1  ;;  %v3099_v5 = vpop.f32.mrb[116].mxu0 }
 0x1f7   : > { %v3344_v26 = vadd.f32 %v4731_v3, %v3283_v37  ;;  %v2205_v44 = vpop.f32.mrb[85].mxu1  ;;  %v3100_v45 = vpop.f32.mrb[117].mxu0 }
 0x1f8   : > { %v2450_v17 = vadd.f32 %v2449_v46, %v2419_v43  ;;  %v3348_v6 = vadd.f32 %v4725_v1, %v2205_v44  ;;  %v2382_v51 = vadd.f32 %v3336_v56, %v2381_v16  ;;  %v3284_v36 = vpop.f32.mrb[86].mxu1  ;;  %v3101_v2 = vadd.f32 %v3100_v45, %v3099_v5  ;;  %v3102_v29 = vpop.f32.mrb[118].mxu0  ;;  %v4889_v44 = vld [vmem:[#allocation3_spill] sm:$0xff] }
 0x1f9   : > { %2354 = vst [vmem:[%s4762_s23 + $0x30] sm:$0xff] %v3344_v26  ;;  %v3352_v0 = vadd.f32 %v4734_v31, %v3284_v36  ;;  %v2208_v23 = vpop.f32.mrb[87].mxu1  ;;  %v3103_v9 = vpop.f32.mrb[119].mxu0  ;;  %v2423_v27 = vmul.f32 %v3344_v26, %v3344_v26 }
 0x1fa   : > { %2352 = vst [vmem:[%s4762_s23 + $0x20] sm:$0xff] %v3348_v6  ;;  %v2383_v54 = vadd.f32 %v3348_v6, %v2382_v51  ;;  %v2421_v35 = vmul.f32 %v3348_v6, %v3348_v6  ;;  %v2451_v3 = vadd.f32 %v2450_v17, %v2420_v41  ;;  %v3356_v25 = vadd.f32 %v4728_v59, %v2208_v23  ;;  %v4890_v6 = vld [vmem:[#allocation4_spill] sm:$0xff] }
 0x1fb   : > { %2355 = vst [vmem:[%s4762_s23 + $0x38] sm:$0xff] %v3352_v0  ;;  %v3104_v57 = vadd.f32 %v3103_v9, %v3102_v29  ;;  %v4784_v1 = vadd.f32 %v4614_v20, %v3101_v2  ;;  %v2424_v38 = vmul.f32 %v3352_v0, %v3352_v0 }
 0x1fc   : > { %v2452_v15 = vadd.f32 %v2451_v3, %v2421_v35  ;;  %2353 = vst [vmem:[%s4762_s23 + $0x28] sm:$0xff] %v3356_v25  ;;  %v2384_v53 = vadd.f32 %v3356_v25, %v2383_v54  ;;  %v2422_v4 = vmul.f32 %v3356_v25, %v3356_v25 }
 0x1fd   : > { %v4788_v31 = vadd.f32 %v4618_v11, %v3104_v57 }
 0x1fe   : > { %v2385_v34 = vadd.f32 %v3344_v26, %v2384_v53  ;;  %v2453_v12 = vadd.f32 %v2452_v15, %v2422_v4  ;;  %v3287_v62 = vpop.f32.mrb[88].mxu1  ;;  %v3105_v40 = vpop.f32.mrb[120].mxu0 }
 0x1ff   : > { %v3360_v59 = vadd.f32 %v4742_v28, %v3287_v62  ;;  %v2221_v56 = vpop.f32.mrb[89].mxu1  ;;  %v3106_v7 = vpop.f32.mrb[121].mxu0 }
 0x200   : > { %v2454_v20 = vadd.f32 %v2453_v12, %v2423_v27  ;;  %v3364_v13 = vadd.f32 %v4737_v21, %v2221_v56  ;;  %v2386_v19 = vadd.f32 %v3352_v0, %v2385_v34  ;;  %v3288_v18 = vpop.f32.mrb[90].mxu1  ;;  %v3107_v11 = vadd.f32 %v3106_v7, %v3105_v40  ;;  %v3108_v39 = vpop.f32.mrb[122].mxu0 }
 0x201   : > { %2358 = vst [vmem:[%s4762_s23 + $0x50] sm:$0xff] %v3360_v59  ;;  %v3368_v48 = vadd.f32 %v4745_v63, %v3288_v18  ;;  %v2224_v43 = vpop.f32.mrb[91].mxu1  ;;  %v3109_v37 = vpop.f32.mrb[123].mxu0  ;;  %v2427_v51 = vmul.f32 %v3360_v59, %v3360_v59 }
 0x202   : > { %2356 = vst [vmem:[%s4762_s23 + $0x40] sm:$0xff] %v3364_v13  ;;  %v2387_v16 = vadd.f32 %v3364_v13, %v2386_v19  ;;  %v2425_v46 = vmul.f32 %v3364_v13, %v3364_v13  ;;  %v2455_v28 = vadd.f32 %v2454_v20, %v2424_v38  ;;  %v3372_v5 = vadd.f32 %v4739_v33, %v2224_v43 }
 0x203   : > { %2359 = vst [vmem:[%s4762_s23 + $0x58] sm:$0xff] %v3368_v48  ;;  %v3110_v26 = vadd.f32 %v3109_v37, %v3108_v39  ;;  %v4798_v21 = vadd.f32 %v4889_v44, %v3107_v11  ;;  %v2428_v54 = vmul.f32 %v3368_v48, %v3368_v48 }
 0x204   : > { %v2456_v41 = vadd.f32 %v2455_v28, %v2425_v46  ;;  %2357 = vst [vmem:[%s4762_s23 + $0x48] sm:$0xff] %v3372_v5  ;;  %v2388_v17 = vadd.f32 %v3372_v5, %v2387_v16  ;;  %v2426_v45 = vmul.f32 %v3372_v5, %v3372_v5 }
 0x205   : > { %v4802_v63 = vadd.f32 %v4890_v6, %v3110_v26 }
 0x206   : > { %v2389_v36 = vadd.f32 %v3360_v59, %v2388_v17  ;;  %v2457_v2 = vadd.f32 %v2456_v41, %v2426_v45  ;;  %v3291_v29 = vpop.f32.mrb[92].mxu1  ;;  %v3111_v0 = vpop.f32.mrb[124].mxu0 }
 0x207   : > { %v3376_v33 = vadd.f32 %v4752_v22, %v3291_v29  ;;  %v2237_v23 = vpop.f32.mrb[93].mxu1  ;;  %v3112_v3 = vpop.f32.mrb[125].mxu0 }
 0x208   : > { %v2458_v35 = vadd.f32 %v2457_v2, %v2427_v51  ;;  %v3380_v9 = vadd.f32 %v4747_v50, %v2237_v23  ;;  %v2390_v25 = vadd.f32 %v3368_v48, %v2389_v36  ;;  %v3292_v57 = vpop.f32.mrb[94].mxu1  ;;  %v3113_v15 = vadd.f32 %v3112_v3, %v3111_v0  ;;  %v3114_v53 = vpop.f32.mrb[126].mxu0 }
 0x209   : > { %2362 = vst [vmem:[%s4762_s23 + $0x70] sm:$0xff] %v3376_v33  ;;  %v3384_v4 = vadd.f32 %v4755_v10, %v3292_v57  ;;  %v2240_v27 = vpop.f32.mrb[95].mxu1  ;;  %v3115_v62 = vpop.f32.mrb[127].mxu0  ;;  %v2431_v10 = vmul.f32 %v3376_v33, %v3376_v33 }
 0x20a   : > { %2360 = vst [vmem:[%s4762_s23 + $0x60] sm:$0xff] %v3380_v9  ;;  %v2391_v34 = vadd.f32 %v3380_v9, %v2390_v25  ;;  %v2429_v12 = vmul.f32 %v3380_v9, %v3380_v9  ;;  %v2459_v22 = vadd.f32 %v2458_v35, %v2428_v54  ;;  %v3388_v40 = vadd.f32 %v4749_v14, %v2240_v27 }
 0x20b   : > { %2363 = vst [vmem:[%s4762_s23 + $0x78] sm:$0xff] %v3384_v4  ;;  %v3116_v59 = vadd.f32 %v3115_v62, %v3114_v53  ;;  %v3402_v50 = vadd.f32 %v4630_v49, %v3113_v15  ;;  %v2432_v48 = vmul.f32 %v3384_v4, %v3384_v4 }
 0x20c   : > { %v2460_v56 = vadd.f32 %v2459_v22, %v2429_v12  ;;  %2361 = vst [vmem:[%s4762_s23 + $0x68] sm:$0xff] %v3388_v40  ;;  %v2392_v38 = vadd.f32 %v3388_v40, %v2391_v34  ;;  %v2430_v20 = vmul.f32 %v3388_v40, %v3388_v40 }
 0x20d   : > { %v3408_v7 = vadd.f32 %v4634_v55, %v3116_v59 }
 0x20e   : > { %v2393_v13 = vadd.f32 %v3376_v33, %v2392_v38  ;;  %v2461_v19 = vadd.f32 %v2460_v56, %v2430_v20  ;;  %v3295_v18 = vpop.f32.mrb[0].mxu1  ;;  %v3117_v11 = vpop.f32.mrb[128].mxu0 }
 0x20f   : > { %v3391_v39 = vadd.f32 %v4784_v1, %v3295_v18  ;;  %v2253_v14 = vpop.f32.mrb[1].mxu1  ;;  %v3118_v49 = vpop.f32.mrb[129].mxu0 }
 0x210   : > { %v2462_v43 = vadd.f32 %v2461_v19, %v2431_v10  ;;  %v3394_v16 = vadd.f32 %v4770_v42, %v2253_v14  ;;  %v2394_v46 = vadd.f32 %v3384_v4, %v2393_v13  ;;  %v3296_v28 = vpop.f32.mrb[2].mxu1  ;;  %v3119_v55 = vadd.f32 %v3118_v49, %v3117_v11  ;;  %v3120_v37 = vpop.f32.mrb[130].mxu0 }
 0x211   : > { %2366 = vst [vmem:[%s4762_s23 + $0x90] sm:$0xff] %v3391_v39  ;;  %v3397_v5 = vadd.f32 %v4788_v31, %v3296_v28  ;;  %v2256_v26 = vpop.f32.mrb[3].mxu1  ;;  %v3121_v17 = vpop.f32.mrb[131].mxu0  ;;  %v2435_v31 = vmul.f32 %v3391_v39, %v3391_v39 }
 0x212   : > { %2364 = vst [vmem:[%s4762_s23 + $0x80] sm:$0xff] %v3394_v16  ;;  %v2395_v44 = vadd.f32 %v3394_v16, %v2394_v46  ;;  %v2433_v41 = vmul.f32 %v3394_v16, %v3394_v16  ;;  %v2463_v1 = vadd.f32 %v2462_v43, %v2432_v48  ;;  %v3400_v45 = vadd.f32 %v4774_v8, %v2256_v26 }
 0x213   : > { %2367 = vst [vmem:[%s4762_s23 + $0x98] sm:$0xff] %v3397_v5  ;;  %v3122_v6 = vadd.f32 %v3121_v17, %v3120_v37  ;;  %v3417_v42 = vadd.f32 %v4641_v32, %v3119_v55  ;;  %v2436_v8 = vmul.f32 %v3397_v5, %v3397_v5 }
 0x214   : > { %v2464_v51 = vadd.f32 %v2463_v1, %v2433_v41  ;;  %2365 = vst [vmem:[%s4762_s23 + $0x88] sm:$0xff] %v3400_v45  ;;  %v2396_v36 = vadd.f32 %v3400_v45, %v2395_v44  ;;  %v2434_v2 = vmul.f32 %v3400_v45, %v3400_v45 }
 0x215   : > { %v3423_v29 = vadd.f32 %v4651_v47, %v3122_v6 }
 0x216   : > { %v2397_v0 = vadd.f32 %v3391_v39, %v2396_v36  ;;  %v2465_v33 = vadd.f32 %v2464_v51, %v2434_v2  ;;  %v3299_v23 = vpop.f32.mrb[4].mxu1  ;;  %v3123_v54 = vpop.f32.mrb[132].mxu0 }
 0x217   : > { %v3403_v35 = vadd.f32 %v3402_v50, %v3299_v23  ;;  %v2269_v3 = vpop.f32.mrb[5].mxu1  ;;  %v3124_v25 = vpop.f32.mrb[133].mxu0 }
 0x218   : > { %v2466_v9 = vadd.f32 %v2465_v33, %v2435_v31  ;;  %v3406_v32 = vadd.f32 %v4798_v21, %v2269_v3  ;;  %v2398_v57 = vadd.f32 %v3397_v5, %v2397_v0  ;;  %v3300_v15 = vpop.f32.mrb[6].mxu1  ;;  %v3125_v53 = vadd.f32 %v3124_v25, %v3123_v54  ;;  %v3126_v47 = vpop.f32.mrb[134].mxu0 }
 0x219   : > { %2370 = vst [vmem:[%s4762_s23 + $0xb0] sm:$0xff] %v3403_v35  ;;  %v3409_v4 = vadd.f32 %v3408_v7, %v3300_v15  ;;  %v2272_v27 = vpop.f32.mrb[7].mxu1  ;;  %v3127_v62 = vpop.f32.mrb[135].mxu0  ;;  %v2439_v7 = vmul.f32 %v3403_v35, %v3403_v35 }
 0x21a   : > { %2368 = vst [vmem:[%s4762_s23 + $0xa0] sm:$0xff] %v3406_v32  ;;  %v2399_v34 = vadd.f32 %v3406_v32, %v2398_v57  ;;  %v2437_v12 = vmul.f32 %v3406_v32, %v3406_v32  ;;  %v2467_v22 = vadd.f32 %v2466_v9, %v2436_v8  ;;  %v3412_v40 = vadd.f32 %v4802_v63, %v2272_v27 }
 0x21b   : > { %2371 = vst [vmem:[%s4762_s23 + $0xb8] sm:$0xff] %v3409_v4  ;;  %v3128_v59 = vadd.f32 %v3127_v62, %v3126_v47  ;;  %v3414_v50 = vadd.f32 %v4662_v52, %v3125_v53  ;;  %v2440_v63 = vmul.f32 %v3409_v4, %v3409_v4 }
 0x21c   : > { %v2468_v21 = vadd.f32 %v2467_v22, %v2437_v12  ;;  %2369 = vst [vmem:[%s4762_s23 + $0xa8] sm:$0xff] %v3412_v40  ;;  %v2400_v56 = vadd.f32 %v3412_v40, %v2399_v34  ;;  %v2438_v38 = vmul.f32 %v3412_v40, %v3412_v40 }
 0x21d   : > { %v3420_v20 = vadd.f32 %v4673_v61, %v3128_v59 }
 0x21e   : > { %v2401_v10 = vadd.f32 %v3403_v35, %v2400_v56  ;;  %v2469_v13 = vadd.f32 %v2468_v21, %v2438_v38  ;;  %v3303_v19 = vpop.f32.mrb[8].mxu1  ;;  %v3129_v18 = vpop.f32.mrb[136].mxu0 }
 0x21f   : > { %v3415_v11 = vadd.f32 %v3414_v50, %v3303_v19  ;;  %v2285_v39 = vpop.f32.mrb[9].mxu1  ;;  %v3130_v48 = vpop.f32.mrb[137].mxu0 }
 0x220   : > { %v2470_v14 = vadd.f32 %v2469_v13, %v2439_v7  ;;  %v3418_v52 = vadd.f32 %v3417_v42, %v2285_v39  ;;  %v2402_v43 = vadd.f32 %v3409_v4, %v2401_v10  ;;  %v3304_v49 = vpop.f32.mrb[10].mxu1  ;;  %v3131_v16 = vadd.f32 %v3130_v48, %v3129_v18  ;;  %v3132_v46 = vpop.f32.mrb[138].mxu0 }
 0x221   : > { %2374 = vst [vmem:[%s4762_s23 + $0xd0] sm:$0xff] %v3415_v11  ;;  %v3421_v61 = vadd.f32 %v3420_v20, %v3304_v49  ;;  %v2288_v28 = vpop.f32.mrb[11].mxu1  ;;  %v3133_v26 = vpop.f32.mrb[139].mxu0  ;;  %v2443_v51 = vmul.f32 %v3415_v11, %v3415_v11 }
 0x222   : > { %2372 = vst [vmem:[%s4762_s23 + $0xc0] sm:$0xff] %v3418_v52  ;;  %v2403_v55 = vadd.f32 %v3418_v52, %v2402_v43  ;;  %v2441_v37 = vmul.f32 %v3418_v52, %v3418_v52  ;;  %v2471_v5 = vadd.f32 %v2470_v14, %v2440_v63  ;;  %v3424_v44 = vadd.f32 %v3423_v29, %v2288_v28 }
 0x223   : > { %2375 = vst [vmem:[%s4762_s23 + $0xd8] sm:$0xff] %v3421_v61  ;;  %v3134_v41 = vadd.f32 %v3133_v26, %v3132_v46  ;;  %v3429_v1 = vadd.f32 %v4684_v30, %v3131_v16  ;;  %v2444_v23 = vmul.f32 %v3421_v61, %v3421_v61 }
 0x224   : > { %v2472_v17 = vadd.f32 %v2471_v5, %v2441_v37  ;;  %2373 = vst [vmem:[%s4762_s23 + $0xc8] sm:$0xff] %v3424_v44  ;;  %v2404_v45 = vadd.f32 %v3424_v44, %v2403_v55  ;;  %v2442_v6 = vmul.f32 %v3424_v44, %v3424_v44 }
 0x225   : > { %v3435_v42 = vadd.f32 %v4695_v24, %v3134_v41 }
 0x226   : > { %v2405_v36 = vadd.f32 %v3415_v11, %v2404_v45  ;;  %v2473_v2 = vadd.f32 %v2472_v17, %v2442_v6  ;;  %v3307_v31 = vpop.f32.mrb[12].mxu1  ;;  %v3135_v0 = vpop.f32.mrb[140].mxu0 }
 0x227   : > { %v2301_v33 = vpop.f32.mrb[13].mxu1  ;;  %v3136_v29 = vpop.f32.mrb[141].mxu0 }
 0x228   : > { %v2474_v54 = vadd.f32 %v2473_v2, %v2443_v51  ;;  %v3430_v35 = vadd.f32 %v3429_v1, %v2301_v33  ;;  %v2406_v3 = vadd.f32 %v3421_v61, %v2405_v36  ;;  %v3308_v30 = vpop.f32.mrb[14].mxu1  ;;  %v3137_v8 = vadd.f32 %v3136_v29, %v3135_v0  ;;  %v3138_v9 = vpop.f32.mrb[142].mxu0 }
 0x229   : > { %v2304_v25 = vpop.f32.mrb[15].mxu1  ;;  %v3139_v15 = vpop.f32.mrb[143].mxu0 }
 0x22a   : > { %2376 = vst [vmem:[%s4762_s23 + $0xe0] sm:$0xff] %v3430_v35  ;;  %v2407_v24 = vadd.f32 %v3430_v35, %v2406_v3  ;;  %v2445_v32 = vmul.f32 %v3430_v35, %v3430_v35  ;;  %v2475_v57 = vadd.f32 %v2474_v54, %v2444_v23  ;;  %v3436_v53 = vadd.f32 %v3435_v42, %v2304_v25 }
 0x22b   : > { %v3426_v47 = vadd.f32 %v4704_v60, %v3137_v8  ;;  %v3140_v4 = vadd.f32 %v3139_v15, %v3138_v9 }
 0x22c   : > { %v2476_v27 = vadd.f32 %v2475_v57, %v2445_v32  ;;  %2377 = vst [vmem:[%s4762_s23 + $0xe8] sm:$0xff] %v3436_v53  ;;  %v2408_v34 = vadd.f32 %v3436_v53, %v2407_v24  ;;  %v2446_v12 = vmul.f32 %v3436_v53, %v3436_v53 }
 0x22d   : > { %v3427_v22 = vadd.f32 %v3426_v47, %v3307_v31  ;;  %v3432_v62 = vadd.f32 %v4713_v58, %v3140_v4 }
 0x22e   : > { %v2477_v40 = vadd.f32 %v2476_v27, %v2446_v12 }
 0x22f   : > { %2378 = vst [vmem:[%s4762_s23 + $0xf0] sm:$0xff] %v3427_v22  ;;  %v2447_v59 = vmul.f32 %v3427_v22, %v3427_v22  ;;  %v3433_v50 = vadd.f32 %v3432_v62, %v3308_v30  ;;  %v2409_v21 = vadd.f32 %v3427_v22, %v2408_v34 }
 0x231   : > { %2379 = vst [vmem:[%s4762_s23 + $0xf8] sm:$0xff] %v3433_v50  ;;  %v2448_v56 = vmul.f32 %v3433_v50, %v3433_v50  ;;  %v2410_v38 = vadd.f32 %v3433_v50, %v2409_v21  ;;  %v2478_v20 = vadd.f32 %v2477_v40, %v2447_v59 }
 0x233   : > { %v2411_v7 = vrot.slane %v2410_v38, 4  ;;  %v2479_v60 = vadd.f32 %v2478_v20, %v2448_v56 }
 0x235   : > { %v2412_v10 = vadd.f32 %v2411_v7, %v2410_v38  ;;  %v2480_v13 = vrot.slane %v2479_v60, 4 }
 0x237   : > { %v2413_v19 = vrot.slane %v2412_v10, 2  ;;  %v2481_v18 = vadd.f32 %v2480_v13, %v2479_v60 }
 0x239   : > { %v2414_v11 = vadd.f32 %v2413_v19, %v2412_v10  ;;  %v2482_v39 = vrot.slane %v2481_v18, 2 }
 0x23b   : > { %v2415_v63 = vrot.slane %v2414_v11, 1  ;;  %v2483_v58 = vadd.f32 %v2482_v39, %v2481_v18 }
 0x23d   : > { %v2484_v14 = vrot.slane %v2483_v58, 1  ;;  %v2416_v48 = vadd.f32 %v2415_v63, %v2414_v11 }
 0x23f   : > { %v2485_v52 = vadd.f32 %v2484_v14, %v2483_v58 }
 0x241   : > { %v2487_v43 = vsel %vm2486_vm2, %v2416_v48, %v2485_v52 }
 0x242   : > { %2488 = vst [vmem:[%s235_s26] sm:$0x3] %v2487_v43 }
 0x243 PF: > { %s16_s18 = sadd.s32 1, %s3573_s18  }
 0x244   : > { %p13_p4 = scmp.ge.s32.totalorder %s16_s18, 4  }
 0x246   :  { %15 = sbr.rel (!%p13_p4) target bundleno = 1 (0x1), region = 81 }

</bundles_post_ra>
